<compile_context>
chip_gen: v6e
topology: v6e:2x2x1
jax: 0.10.0
libtpu: 0.0.40
codegen_flags: <defaults>
</compile_context>

<pallas_src>
import functools

import jax
import jax.numpy as jnp
import numpy as np
from jax.experimental import pallas as pl
from jax.experimental.pallas import tpu as pltpu


def _num_groups(c):
    # mirrors Normalize() in the PyTorch module
    return c if c <= 32 else 32


def _vmem_limit(block_bytes):
    # double-buffered pipeline blocks + in-kernel temporaries (generous headroom);
    # clamp to a range valid on v5e/v6e (128 MiB physical) and v7x (64 MiB physical).
    need = int(block_bytes * 4)
    return max(32 * 1024 * 1024, min(need, 64 * 1024 * 1024))


# ----------------------- in-kernel GroupNorm (two-pass) -----------------------
def _gn_affine(xf, gamma, beta, num_groups, eps):
    """xf: (HW, C) f32; gamma/beta: (1, C) f32. Returns per-channel (scale, shift) such that
    GroupNorm(x) == x * scale + shift for this image. Two-pass (mean, centered ssq) in f32."""
    HW, C = xf.shape
    cpg = C // num_groups
    inv_cnt = 1.0 / float(cpg * HW)
    csum = jnp.sum(xf, axis=0, keepdims=True)                         # (1, C)
    if cpg == 1:                                                      # C <= 32 => groups == C
        mean_c = csum * inv_cnt
        d = xf - mean_c
        var_c = jnp.sum(d * d, axis=0, keepdims=True) * inv_cnt
    else:
        # group-average matrix (C, C): lane-friendly group reduce + broadcast via tiny matmul
        gi = jax.lax.broadcasted_iota(jnp.int32, (C, C), 0) // cpg
        gj = jax.lax.broadcasted_iota(jnp.int32, (C, C), 1) // cpg
        gmat = jnp.where(gi == gj, inv_cnt, 0.0).astype(jnp.float32)
        mean_c = jnp.dot(csum, gmat, preferred_element_type=jnp.float32)
        d = xf - mean_c
        var_c = jnp.dot(jnp.sum(d * d, axis=0, keepdims=True), gmat,
                        preferred_element_type=jnp.float32)
    rstd = jax.lax.rsqrt(var_c + eps)
    scale = rstd * gamma
    shift = beta - mean_c * scale
    return scale, shift


def _gn_silu(xf, gamma, beta, num_groups, eps):
    scale, shift = _gn_affine(xf, gamma, beta, num_groups, eps)
    a = xf * scale + shift
    return a * jax.nn.sigmoid(a)            # nonlinearity(x) = x * sigmoid(x)


# ------------------------ folded-tap 3x3 conv (3 matmuls) ---------------------
def _conv3x3_taps(a_bf, w_ref, H, W):
    """3x3 'same' conv with zero padding. a_bf: (H, W, C) bf16 activation.
    w_ref: (3, 3*C, Cout) bf16 folded weights with K index = kw*C + ci, leading dim = kh.
    Returns (H*W, Cout) f32 accumulator (no bias)."""
    C = a_bf.shape[-1]
    Cout = w_ref.shape[-1]
    zrow = jnp.zeros((1, W, C), jnp.bfloat16)
    zcol = jnp.zeros((H, 1, C), jnp.bfloat16)
    ap = jnp.concatenate([zrow, a_bf, zrow], axis=0)                  # (H+2, W, C) vertical pad
    acc = jnp.zeros((H * W, Cout), jnp.float32)
    for dy in range(3):                                               # one MXU matmul per kh
        band = ap[dy:dy + H]                                          # (H, W, C), kh = dy
        left = jnp.concatenate([zcol, band[:, :W - 1, :]], axis=1)    # kw = 0  (x - 1)
        right = jnp.concatenate([band[:, 1:, :], zcol], axis=1)       # kw = 2  (x + 1)
        patch = jnp.concatenate([left, band, right], axis=-1)         # (H, W, 3C)
        acc = acc + jnp.dot(patch.reshape(H * W, 3 * C), w_ref[dy],
                            preferred_element_type=jnp.float32)
    return acc


# ------------------------------- fused kernels --------------------------------
def _gn_silu_conv3x3_kernel(x_ref, g_ref, b_ref, w_ref, bias_ref, o_ref, *, H, W, G, eps):
    C = x_ref.shape[-1]
    xf = x_ref[0].astype(jnp.float32).reshape(H * W, C)
    a = _gn_silu(xf, g_ref[...], b_ref[...], G, eps)
    acc = _conv3x3_taps(a.reshape(H, W, C).astype(jnp.bfloat16), w_ref, H, W) + bias_ref[...]
    o_ref[0] = acc.reshape(H, W, -1).astype(o_ref.dtype)


def _gn_silu_conv3x3_res_kernel(*refs, H, W, G, eps, shortcut):
    if shortcut == "identity":
        h_ref, g_ref, b_ref, w_ref, bias_ref, x_ref, o_ref = refs
    else:
        h_ref, g_ref, b_ref, w_ref, bias_ref, x_ref, ws_ref, bs_ref, o_ref = refs

    C = h_ref.shape[-1]
    hf = h_ref[0].astype(jnp.float32).reshape(H * W, C)     # GN2 stats in f32 from bf16 h1
    a = _gn_silu(hf, g_ref[...], b_ref[...], G, eps)
    # TODO(synk): nn.Dropout(p=0.1) is treated as inference-mode identity (no random mask).
    acc = _conv3x3_taps(a.reshape(H, W, C).astype(jnp.bfloat16), w_ref, H, W) + bias_ref[...]

    x = x_ref[0]                                            # (H, W, Cin) f32 raw input
    Cin = x.shape[-1]
    if shortcut == "identity":
        acc = acc + x.reshape(H * W, Cin)
    elif shortcut == "nin":
        xb = x.reshape(H * W, Cin).astype(jnp.bfloat16)
        acc = acc + jnp.dot(xb, ws_ref[...], preferred_element_type=jnp.float32) + bs_ref[...]
    else:  # 3x3 conv shortcut on the raw input
        acc = acc + _conv3x3_taps(x.astype(jnp.bfloat16), ws_ref, H, W) + bs_ref[...]

    o_ref[0] = acc.reshape(H, W, -1).astype(o_ref.dtype)


# ------------------------------- pallas wrappers ------------------------------
def gn_silu_conv3x3(x_nhwc, gamma, beta, num_groups, w_folded, bias):
    N, H, W, Cin = x_nhwc.shape
    Cout = w_folded.shape[-1]
    block_bytes = (H * W * Cin * 4 + 2 * Cin * 4 + w_folded.size * 2 + Cout * 4
                   + H * W * Cout * 2)
    return pl.pallas_call(
        functools.partial(_gn_silu_conv3x3_kernel, H=H, W=W, G=num_groups, eps=1e-6),
        out_shape=jax.ShapeDtypeStruct((N, H, W, Cout), jnp.bfloat16),  # bf16 intermediate h1
        grid=(N,),
        in_specs=[
            pl.BlockSpec((1, H, W, Cin), lambda n: (n, 0, 0, 0)),
            pl.BlockSpec((1, Cin), lambda n: (0, 0)),
            pl.BlockSpec((1, Cin), lambda n: (0, 0)),
            pl.BlockSpec((3, 3 * Cin, Cout), lambda n: (0, 0, 0)),
            pl.BlockSpec((1, Cout), lambda n: (0, 0)),
        ],
        out_specs=pl.BlockSpec((1, H, W, Cout), lambda n: (n, 0, 0, 0)),
        compiler_params=pltpu.CompilerParams(
            dimension_semantics=("parallel",),
            vmem_limit_bytes=_vmem_limit(block_bytes)),
    )(x_nhwc, gamma.reshape(1, Cin), beta.reshape(1, Cin), w_folded, bias)


def gn_silu_conv3x3_residual(h_nhwc, gamma, beta, num_groups, w_folded, bias,
                             x_nhwc, shortcut, ws=None, bs=None):
    N, H, W, C = h_nhwc.shape
    Cout = w_folded.shape[-1]
    Cin = x_nhwc.shape[-1]
    in_specs = [
        pl.BlockSpec((1, H, W, C), lambda n: (n, 0, 0, 0)),
        pl.BlockSpec((1, C), lambda n: (0, 0)),
        pl.BlockSpec((1, C), lambda n: (0, 0)),
        pl.BlockSpec((3, 3 * C, Cout), lambda n: (0, 0, 0)),
        pl.BlockSpec((1, Cout), lambda n: (0, 0)),
        pl.BlockSpec((1, H, W, Cin), lambda n: (n, 0, 0, 0)),
    ]
    args = [h_nhwc, gamma.reshape(1, C), beta.reshape(1, C), w_folded, bias, x_nhwc]
    block_bytes = (H * W * C * 2 + 2 * C * 4 + w_folded.size * 2 + Cout * 4
                   + H * W * Cin * 4 + H * W * Cout * 4)
    if shortcut == "nin":
        in_specs += [pl.BlockSpec((Cin, Cout), lambda n: (0, 0)),
                     pl.BlockSpec((1, Cout), lambda n: (0, 0))]
        args += [ws, bs]
        block_bytes += ws.size * 2 + Cout * 4
    elif shortcut == "conv":
        in_specs += [pl.BlockSpec((3, 3 * Cin, Cout), lambda n: (0, 0, 0)),
                     pl.BlockSpec((1, Cout), lambda n: (0, 0))]
        args += [ws, bs]
        block_bytes += ws.size * 2 + Cout * 4
    return pl.pallas_call(
        functools.partial(_gn_silu_conv3x3_res_kernel, H=H, W=W, G=num_groups, eps=1e-6,
                          shortcut=shortcut),
        out_shape=jax.ShapeDtypeStruct((N, H, W, Cout), jnp.float32),
        grid=(N,),
        in_specs=in_specs,
        out_specs=pl.BlockSpec((1, H, W, Cout), lambda n: (n, 0, 0, 0)),
        compiler_params=pltpu.CompilerParams(
            dimension_semantics=("parallel",),
            vmem_limit_bytes=_vmem_limit(block_bytes)),
    )(*args)


# ----------------------------- glue (plain JAX) --------------------------------
def _w3x3_folded(w_oihw):
    # (Cout, Cin, 3, 3) -> (3, 3*Cin, Cout) bf16; leading dim = kh, K index = kw*Cin + ci
    cout, cin = w_oihw.shape[:2]
    return jnp.transpose(w_oihw, (2, 3, 1, 0)).reshape(3, 3 * cin, cout).astype(jnp.bfloat16)


def resnet_block_forward(x, params, use_conv_shortcut=False):
    # x: (N, Cin, H, W) float32 (NCHW), returns (N, Cout, H, W) float32
    N, Cin, H, W = x.shape
    Cout = params["conv1_w"].shape[0]
    x_nhwc = jnp.transpose(x, (0, 2, 3, 1))                 # single layout change in

    # kernel 1: GN1 (in-kernel stats) + SiLU + conv1, h1 emitted as bf16
    h1 = gn_silu_conv3x3(x_nhwc, params["norm1_g"], params["norm1_b"], _num_groups(Cin),
                         _w3x3_folded(params["conv1_w"]), params["conv1_b"].reshape(1, Cout))

    if Cin != Cout:
        if use_conv_shortcut:
            ws, mode = _w3x3_folded(params["short_w"]), "conv"
        else:
            ws, mode = params["short_w"].reshape(Cout, Cin).T.astype(jnp.bfloat16), "nin"
        bs = params["short_b"].reshape(1, Cout)
    else:
        ws = bs = None
        mode = "identity"

    # kernel 2: GN2 (in-kernel stats) + SiLU + conv2, shortcut + residual fused
    y = gn_silu_conv3x3_residual(h1, params["norm2_g"], params["norm2_b"], _num_groups(Cout),
                                 _w3x3_folded(params["conv2_w"]),
                                 params["conv2_b"].reshape(1, Cout),
                                 x_nhwc, mode, ws, bs)
    return jnp.transpose(y, (0, 3, 1, 2))                   # single layout change out


# --------------------------- deterministic params ------------------------------
def init_params(key, cin, cout, use_conv_shortcut=False):
    ks = jax.random.split(key, 8)

    def conv_init(kw_, kb_, co, ci, kh, kwid):
        fan_in = ci * kh * kwid
        bound = 1.0 / np.sqrt(fan_in)
        w = jax.random.uniform(kw_, (co, ci, kh, kwid), jnp.float32, -bound, bound)
        b = jax.random.uniform(kb_, (co,), jnp.float32, -bound, bound)
        return w, b

    p = {}
    p["norm1_g"] = jnp.ones((cin,), jnp.float32)
    p["norm1_b"] = jnp.zeros((cin,), jnp.float32)
    p["conv1_w"], p["conv1_b"] = conv_init(ks[0], ks[1], cout, cin, 3, 3)
    p["norm2_g"] = jnp.ones((cout,), jnp.float32)
    p["norm2_b"] = jnp.zeros((cout,), jnp.float32)
    p["conv2_w"], p["conv2_b"] = conv_init(ks[2], ks[3], cout, cout, 3, 3)
    if cin != cout:
        if use_conv_shortcut:
            p["short_w"], p["short_b"] = conv_init(ks[4], ks[5], cout, cin, 3, 3)
        else:
            p["short_w"], p["short_b"] = conv_init(ks[4], ks[5], cout, cin, 1, 1)
    return p


# ----------------------------- pure-JAX reference ------------------------------
def ref_forward(x, params, use_conv_shortcut=False):
    def gn(x, g, b, groups, eps=1e-6):
        N, C, H, W = x.shape
        xg = x.reshape(N, groups, -1)
        m = xg.mean(-1, keepdims=True)
        v = ((xg - m) ** 2).mean(-1, keepdims=True)
        xn = ((xg - m) / jnp.sqrt(v + eps)).reshape(N, C, H, W)
        return xn * g[None, :, None, None] + b[None, :, None, None]

    def swish(x):
        return x * jax.nn.sigmoid(x)

    def conv(x, w, b, pad):
        y = jax.lax.conv_general_dilated(x, w, (1, 1), [(pad, pad), (pad, pad)],
                                         dimension_numbers=("NCHW", "OIHW", "NCHW"))
        return y + b[None, :, None, None]

    cin = x.shape[1]
    cout = params["conv1_w"].shape[0]
    h = conv(swish(gn(x, params["norm1_g"], params["norm1_b"], _num_groups(cin))),
             params["conv1_w"], params["conv1_b"], 1)
    h = conv(swish(gn(h, params["norm2_g"], params["norm2_b"], _num_groups(cout))),
             params["conv2_w"], params["conv2_b"], 1)
    if cin != cout:
        pad = 1 if use_conv_shortcut else 0
        x = conv(x, params["short_w"], params["short_b"], pad)
    return x + h


if __name__ == "__main__":
    key = jax.random.PRNGKey(0)
    N, H, W = 2, 16, 16
    configs = [
        dict(cin=4, cout=8, conv_shortcut=False),   # nin (1x1) shortcut, fused into conv2
        dict(cin=8, cout=8, conv_shortcut=False),   # identity shortcut
        dict(cin=4, cout=8, conv_shortcut=True),    # 3x3 conv shortcut, fused into conv2
    ]
    fwd = jax.jit(resnet_block_forward, static_argnames=("use_conv_shortcut",))
    for i, cfg in enumerate(configs):
        kx, kp = jax.random.split(jax.random.fold_in(key, i))
        x = jax.random.normal(kx, (N, cfg["cin"], H, W), jnp.float32)
        params = init_params(kp, cfg["cin"], cfg["cout"], cfg["conv_shortcut"])
        out = jax.block_until_ready(fwd(x, params, use_conv_shortcut=cfg["conv_shortcut"]))
        assert out.shape == (N, cfg["cout"], H, W), out.shape
        ref = jax.block_until_ready(ref_forward(x, params, cfg["conv_shortcut"]))
        np.testing.assert_allclose(np.asarray(out), np.asarray(ref), rtol=2e-2, atol=2e-2)
    print("KERNEL_OK")
</pallas_src>

<mosaic_0001>
module attributes {stable_mosaic.version = 11 : i64} {
  func.func @_gn_silu_conv3x3_kernel(%arg0: i32, %arg1: memref<1x16x16x4xf32, #tpu.memory_space<vmem>>, %arg2: memref<1x4xf32, #tpu.memory_space<vmem>>, %arg3: memref<1x4xf32, #tpu.memory_space<vmem>>, %arg4: memref<3x12x8xbf16, #tpu.memory_space<vmem>>, %arg5: memref<1x8xf32, #tpu.memory_space<vmem>>, %arg6: memref<1x16x16x8xbf16, #tpu.memory_space<vmem>>) attributes {dimension_semantics = [#tpu.dimension_semantics<parallel>], iteration_bounds = array<i64: 2>, scalar_prefetch = 0 : i64, scratch_operands = 0 : i64, tpu.core_type = #tpu.core_type<tc>, window_params = [{transform_indices = @transform_0, window_bounds = array<i64: 1, 16, 16, 4>}, {pipeline_mode = #tpu.pipeline_mode<synchronous>, transform_indices = @transform_1, window_bounds = array<i64: 1, 4>}, {pipeline_mode = #tpu.pipeline_mode<synchronous>, transform_indices = @transform_2, window_bounds = array<i64: 1, 4>}, {pipeline_mode = #tpu.pipeline_mode<synchronous>, transform_indices = @transform_3, window_bounds = array<i64: 3, 12, 8>}, {pipeline_mode = #tpu.pipeline_mode<synchronous>, transform_indices = @transform_4, window_bounds = array<i64: 1, 8>}, {transform_indices = @transform_5, window_bounds = array<i64: 1, 16, 16, 8>}]} {
    %c0 = arith.constant 0 : index
    %c0_0 = arith.constant 0 : index
    %c0_1 = arith.constant 0 : index
    %c0_2 = arith.constant 0 : index
    %0 = vector.load %arg1[%c0, %c0_0, %c0_1, %c0_2] : memref<1x16x16x4xf32, #tpu.memory_space<vmem>>, vector<1x16x16x4xf32>
    %1 = vector.shape_cast %0 : vector<1x16x16x4xf32> to vector<16x16x4xf32>
    %2 = vector.shape_cast %1 : vector<16x16x4xf32> to vector<256x4xf32>
    %c0_3 = arith.constant 0 : index
    %c0_4 = arith.constant 0 : index
    %3 = vector.load %arg2[%c0_3, %c0_4] : memref<1x4xf32, #tpu.memory_space<vmem>>, vector<1x4xf32>
    %c0_5 = arith.constant 0 : index
    %c0_6 = arith.constant 0 : index
    %4 = vector.load %arg3[%c0_5, %c0_6] : memref<1x4xf32, #tpu.memory_space<vmem>>, vector<1x4xf32>
    %cst = arith.constant dense<0.000000e+00> : vector<4xf32>
    %5 = vector.multi_reduction <add>, %2, %cst [0] : vector<256x4xf32> to vector<4xf32>
    %6 = vector.shape_cast %5 : vector<4xf32> to vector<1x4xf32>
    %cst_7 = arith.constant 3.906250e-03 : f32
    %7 = vector.broadcast %cst_7 : f32 to vector<1x4xf32>
    %8 = arith.mulf %6, %7 : vector<1x4xf32>
    %9 = vector.broadcast %8 : vector<1x4xf32> to vector<256x4xf32>
    %10 = arith.subf %2, %9 : vector<256x4xf32>
    %11 = arith.mulf %10, %10 : vector<256x4xf32>
    %cst_8 = arith.constant dense<0.000000e+00> : vector<4xf32>
    %12 = vector.multi_reduction <add>, %11, %cst_8 [0] : vector<256x4xf32> to vector<4xf32>
    %13 = vector.shape_cast %12 : vector<4xf32> to vector<1x4xf32>
    %cst_9 = arith.constant 3.906250e-03 : f32
    %14 = vector.broadcast %cst_9 : f32 to vector<1x4xf32>
    %15 = arith.mulf %13, %14 : vector<1x4xf32>
    %cst_10 = arith.constant 9.99999997E-7 : f32
    %16 = vector.broadcast %cst_10 : f32 to vector<1x4xf32>
    %17 = arith.addf %15, %16 : vector<1x4xf32>
    %18 = math.rsqrt %17 : vector<1x4xf32>
    %19 = arith.mulf %18, %3 : vector<1x4xf32>
    %20 = arith.mulf %8, %19 : vector<1x4xf32>
    %21 = arith.subf %4, %20 : vector<1x4xf32>
    %22 = vector.broadcast %19 : vector<1x4xf32> to vector<256x4xf32>
    %23 = arith.mulf %2, %22 : vector<256x4xf32>
    %24 = vector.broadcast %21 : vector<1x4xf32> to vector<256x4xf32>
    %25 = arith.addf %23, %24 : vector<256x4xf32>
    %26 = arith.negf %25 : vector<256x4xf32>
    %27 = math.exp %26 : vector<256x4xf32>
    %cst_11 = arith.constant 1.000000e+00 : f32
    %28 = vector.broadcast %cst_11 : f32 to vector<256x4xf32>
    %29 = arith.addf %28, %27 : vector<256x4xf32>
    %30 = arith.divf %28, %29 : vector<256x4xf32>
    %31 = arith.mulf %25, %30 : vector<256x4xf32>
    %32 = vector.shape_cast %31 : vector<256x4xf32> to vector<16x16x4xf32>
    %33 = arith.truncf %32 : vector<16x16x4xf32> to vector<16x16x4xbf16>
    %cst_12 = arith.constant 0.000000e+00 : bf16
    %34 = vector.broadcast %cst_12 : bf16 to vector<1x16x4xbf16>
    %cst_13 = arith.constant 0.000000e+00 : bf16
    %35 = vector.broadcast %cst_13 : bf16 to vector<16x1x4xbf16>
    %36 = tpu.concatenate %34, %33, %34 in 0 : vector<1x16x4xbf16>, vector<16x16x4xbf16>, vector<1x16x4xbf16> -> vector<18x16x4xbf16>
    %cst_14 = arith.constant 0.000000e+00 : f32
    %37 = vector.broadcast %cst_14 : f32 to vector<256x8xf32>
    %38 = vector.extract_strided_slice %36 {offsets = [0, 0, 0], sizes = [16, 16, 4], strides = [1, 1, 1]} : vector<18x16x4xbf16> to vector<16x16x4xbf16>
    %39 = vector.extract_strided_slice %38 {offsets = [0, 0, 0], sizes = [16, 15, 4], strides = [1, 1, 1]} : vector<16x16x4xbf16> to vector<16x15x4xbf16>
    %40 = tpu.concatenate %35, %39 in 1 : vector<16x1x4xbf16>, vector<16x15x4xbf16> -> vector<16x16x4xbf16>
    %41 = vector.extract_strided_slice %38 {offsets = [0, 1, 0], sizes = [16, 15, 4], strides = [1, 1, 1]} : vector<16x16x4xbf16> to vector<16x15x4xbf16>
    %42 = tpu.concatenate %41, %35 in 1 : vector<16x15x4xbf16>, vector<16x1x4xbf16> -> vector<16x16x4xbf16>
    %43 = tpu.concatenate %40, %38, %42 in 2 : vector<16x16x4xbf16>, vector<16x16x4xbf16>, vector<16x16x4xbf16> -> vector<16x16x12xbf16>
    %44 = vector.shape_cast %43 : vector<16x16x12xbf16> to vector<256x12xbf16>
    %c0_15 = arith.constant 0 : index
    %c0_16 = arith.constant 0 : index
    %c0_17 = arith.constant 0 : index
    %45 = vector.load %arg4[%c0_15, %c0_16, %c0_17] : memref<3x12x8xbf16, #tpu.memory_space<vmem>>, vector<1x12x8xbf16>
    %46 = vector.shape_cast %45 : vector<1x12x8xbf16> to vector<12x8xbf16>
    %cst_18 = arith.constant dense<0.000000e+00> : vector<256x8xf32>
    %47 = tpu.matmul %44, %46, %cst_18 {dimension_numbers = #tpu.dot_dimension_numbers<[1], [0], [0], [1], [0, 0, 1, 1], [], []>} : vector<256x12xbf16>, vector<12x8xbf16>, vector<256x8xf32> -> vector<256x8xf32>
    %48 = arith.addf %37, %47 : vector<256x8xf32>
    %49 = vector.extract_strided_slice %36 {offsets = [1, 0, 0], sizes = [16, 16, 4], strides = [1, 1, 1]} : vector<18x16x4xbf16> to vector<16x16x4xbf16>
    %50 = vector.extract_strided_slice %49 {offsets = [0, 0, 0], sizes = [16, 15, 4], strides = [1, 1, 1]} : vector<16x16x4xbf16> to vector<16x15x4xbf16>
    %51 = tpu.concatenate %35, %50 in 1 : vector<16x1x4xbf16>, vector<16x15x4xbf16> -> vector<16x16x4xbf16>
    %52 = vector.extract_strided_slice %49 {offsets = [0, 1, 0], sizes = [16, 15, 4], strides = [1, 1, 1]} : vector<16x16x4xbf16> to vector<16x15x4xbf16>
    %53 = tpu.concatenate %52, %35 in 1 : vector<16x15x4xbf16>, vector<16x1x4xbf16> -> vector<16x16x4xbf16>
    %54 = tpu.concatenate %51, %49, %53 in 2 : vector<16x16x4xbf16>, vector<16x16x4xbf16>, vector<16x16x4xbf16> -> vector<16x16x12xbf16>
    %55 = vector.shape_cast %54 : vector<16x16x12xbf16> to vector<256x12xbf16>
    %c1 = arith.constant 1 : index
    %c0_19 = arith.constant 0 : index
    %c0_20 = arith.constant 0 : index
    %56 = vector.load %arg4[%c1, %c0_19, %c0_20] : memref<3x12x8xbf16, #tpu.memory_space<vmem>>, vector<1x12x8xbf16>
    %57 = vector.shape_cast %56 : vector<1x12x8xbf16> to vector<12x8xbf16>
    %cst_21 = arith.constant dense<0.000000e+00> : vector<256x8xf32>
    %58 = tpu.matmul %55, %57, %cst_21 {dimension_numbers = #tpu.dot_dimension_numbers<[1], [0], [0], [1], [0, 0, 1, 1], [], []>} : vector<256x12xbf16>, vector<12x8xbf16>, vector<256x8xf32> -> vector<256x8xf32>
    %59 = arith.addf %48, %58 : vector<256x8xf32>
    %60 = vector.extract_strided_slice %36 {offsets = [2, 0, 0], sizes = [16, 16, 4], strides = [1, 1, 1]} : vector<18x16x4xbf16> to vector<16x16x4xbf16>
    %61 = vector.extract_strided_slice %60 {offsets = [0, 0, 0], sizes = [16, 15, 4], strides = [1, 1, 1]} : vector<16x16x4xbf16> to vector<16x15x4xbf16>
    %62 = tpu.concatenate %35, %61 in 1 : vector<16x1x4xbf16>, vector<16x15x4xbf16> -> vector<16x16x4xbf16>
    %63 = vector.extract_strided_slice %60 {offsets = [0, 1, 0], sizes = [16, 15, 4], strides = [1, 1, 1]} : vector<16x16x4xbf16> to vector<16x15x4xbf16>
    %64 = tpu.concatenate %63, %35 in 1 : vector<16x15x4xbf16>, vector<16x1x4xbf16> -> vector<16x16x4xbf16>
    %65 = tpu.concatenate %62, %60, %64 in 2 : vector<16x16x4xbf16>, vector<16x16x4xbf16>, vector<16x16x4xbf16> -> vector<16x16x12xbf16>
    %66 = vector.shape_cast %65 : vector<16x16x12xbf16> to vector<256x12xbf16>
    %c2 = arith.constant 2 : index
    %c0_22 = arith.constant 0 : index
    %c0_23 = arith.constant 0 : index
    %67 = vector.load %arg4[%c2, %c0_22, %c0_23] : memref<3x12x8xbf16, #tpu.memory_space<vmem>>, vector<1x12x8xbf16>
    %68 = vector.shape_cast %67 : vector<1x12x8xbf16> to vector<12x8xbf16>
    %cst_24 = arith.constant dense<0.000000e+00> : vector<256x8xf32>
    %69 = tpu.matmul %66, %68, %cst_24 {dimension_numbers = #tpu.dot_dimension_numbers<[1], [0], [0], [1], [0, 0, 1, 1], [], []>} : vector<256x12xbf16>, vector<12x8xbf16>, vector<256x8xf32> -> vector<256x8xf32>
    %70 = arith.addf %59, %69 : vector<256x8xf32>
    %c0_25 = arith.constant 0 : index
    %c0_26 = arith.constant 0 : index
    %71 = vector.load %arg5[%c0_25, %c0_26] : memref<1x8xf32, #tpu.memory_space<vmem>>, vector<1x8xf32>
    %72 = vector.broadcast %71 : vector<1x8xf32> to vector<256x8xf32>
    %73 = arith.addf %70, %72 : vector<256x8xf32>
    %74 = vector.shape_cast %73 : vector<256x8xf32> to vector<16x16x8xf32>
    %75 = arith.truncf %74 : vector<16x16x8xf32> to vector<16x16x8xbf16>
    %c0_27 = arith.constant 0 : index
    %c0_28 = arith.constant 0 : index
    %c0_29 = arith.constant 0 : index
    %c0_30 = arith.constant 0 : index
    %76 = vector.load %arg6[%c0_27, %c0_28, %c0_29, %c0_30] : memref<1x16x16x8xbf16, #tpu.memory_space<vmem>>, vector<1x16x16x8xbf16>
    %77 = vector.shape_cast %76 : vector<1x16x16x8xbf16> to vector<16x16x8xbf16>
    %78 = vector.shape_cast %75 : vector<16x16x8xbf16> to vector<1x16x16x8xbf16>
    tpu.vector_store %arg6[%c0_27, %c0_28, %c0_29, %c0_30], %78 {strides = array<i32>} : memref<1x16x16x8xbf16, #tpu.memory_space<vmem>>, vector<1x16x16x8xbf16>,
    return
  }
  func.func @transform_0(%arg0: i32) -> (i32, i32, i32, i32) {
    %c0_i32 = arith.constant 0 : i32
    %c0_i32_0 = arith.constant 0 : i32
    %c0_i32_1 = arith.constant 0 : i32
    %c0_i32_2 = arith.constant 0 : i32
    return %arg0, %c0_i32, %c0_i32_0, %c0_i32_1 : i32, i32, i32, i32
  }
  func.func @transform_1(%arg0: i32) -> (i32, i32) {
    %c0_i32 = arith.constant 0 : i32
    %c0_i32_0 = arith.constant 0 : i32
    %c0_i32_1 = arith.constant 0 : i32
    return %c0_i32, %c0_i32_0 : i32, i32
  }
  func.func @transform_2(%arg0: i32) -> (i32, i32) {
    %c0_i32 = arith.constant 0 : i32
    %c0_i32_0 = arith.constant 0 : i32
    %c0_i32_1 = arith.constant 0 : i32
    return %c0_i32, %c0_i32_0 : i32, i32
  }
  func.func @transform_3(%arg0: i32) -> (i32, i32, i32) {
    %c0_i32 = arith.constant 0 : i32
    %c0_i32_0 = arith.constant 0 : i32
    %c0_i32_1 = arith.constant 0 : i32
    %c0_i32_2 = arith.constant 0 : i32
    return %c0_i32, %c0_i32_0, %c0_i32_1 : i32, i32, i32
  }
  func.func @transform_4(%arg0: i32) -> (i32, i32) {
    %c0_i32 = arith.constant 0 : i32
    %c0_i32_0 = arith.constant 0 : i32
    %c0_i32_1 = arith.constant 0 : i32
    return %c0_i32, %c0_i32_0 : i32, i32
  }
  func.func @transform_5(%arg0: i32) -> (i32, i32, i32, i32) {
    %c0_i32 = arith.constant 0 : i32
    %c0_i32_0 = arith.constant 0 : i32
    %c0_i32_1 = arith.constant 0 : i32
    %c0_i32_2 = arith.constant 0 : i32
    return %arg0, %c0_i32, %c0_i32_0, %c0_i32_1 : i32, i32, i32, i32
  }
}

module attributes {stable_mosaic.version = 11 : i64} {
  func.func @_gn_silu_conv3x3_res_kernel(%arg0: i32, %arg1: memref<1x16x16x8xbf16, #tpu.memory_space<vmem>>, %arg2: memref<1x8xf32, #tpu.memory_space<vmem>>, %arg3: memref<1x8xf32, #tpu.memory_space<vmem>>, %arg4: memref<3x24x8xbf16, #tpu.memory_space<vmem>>, %arg5: memref<1x8xf32, #tpu.memory_space<vmem>>, %arg6: memref<1x16x16x4xf32, #tpu.memory_space<vmem>>, %arg7: memref<4x8xbf16, #tpu.memory_space<vmem>>, %arg8: memref<1x8xf32, #tpu.memory_space<vmem>>, %arg9: memref<1x16x16x8xf32, #tpu.memory_space<vmem>>) attributes {dimension_semantics = [#tpu.dimension_semantics<parallel>], iteration_bounds = array<i64: 2>, scalar_prefetch = 0 : i64, scratch_operands = 0 : i64, tpu.core_type = #tpu.core_type<tc>, window_params = [{transform_indices = @transform_0, window_bounds = array<i64: 1, 16, 16, 8>}, {pipeline_mode = #tpu.pipeline_mode<synchronous>, transform_indices = @transform_1, window_bounds = array<i64: 1, 8>}, {pipeline_mode = #tpu.pipeline_mode<synchronous>, transform_indices = @transform_2, window_bounds = array<i64: 1, 8>}, {pipeline_mode = #tpu.pipeline_mode<synchronous>, transform_indices = @transform_3, window_bounds = array<i64: 3, 24, 8>}, {pipeline_mode = #tpu.pipeline_mode<synchronous>, transform_indices = @transform_4, window_bounds = array<i64: 1, 8>}, {transform_indices = @transform_5, window_bounds = array<i64: 1, 16, 16, 4>}, {pipeline_mode = #tpu.pipeline_mode<synchronous>, transform_indices = @transform_6, window_bounds = array<i64: 4, 8>}, {pipeline_mode = #tpu.pipeline_mode<synchronous>, transform_indices = @transform_7, window_bounds = array<i64: 1, 8>}, {transform_indices = @transform_8, window_bounds = array<i64: 1, 16, 16, 8>}]} {
    %c0 = arith.constant 0 : index
    %c0_0 = arith.constant 0 : index
    %c0_1 = arith.constant 0 : index
    %c0_2 = arith.constant 0 : index
    %0 = vector.load %arg1[%c0, %c0_0, %c0_1, %c0_2] : memref<1x16x16x8xbf16, #tpu.memory_space<vmem>>, vector<1x16x16x8xbf16>
    %1 = vector.shape_cast %0 : vector<1x16x16x8xbf16> to vector<16x16x8xbf16>
    %2 = arith.extf %1 : vector<16x16x8xbf16> to vector<16x16x8xf32>
    %3 = vector.shape_cast %2 : vector<16x16x8xf32> to vector<256x8xf32>
    %c0_3 = arith.constant 0 : index
    %c0_4 = arith.constant 0 : index
    %4 = vector.load %arg2[%c0_3, %c0_4] : memref<1x8xf32, #tpu.memory_space<vmem>>, vector<1x8xf32>
    %c0_5 = arith.constant 0 : index
    %c0_6 = arith.constant 0 : index
    %5 = vector.load %arg3[%c0_5, %c0_6] : memref<1x8xf32, #tpu.memory_space<vmem>>, vector<1x8xf32>
    %cst = arith.constant dense<0.000000e+00> : vector<8xf32>
    %6 = vector.multi_reduction <add>, %3, %cst [0] : vector<256x8xf32> to vector<8xf32>
    %7 = vector.shape_cast %6 : vector<8xf32> to vector<1x8xf32>
    %cst_7 = arith.constant 3.906250e-03 : f32
    %8 = vector.broadcast %cst_7 : f32 to vector<1x8xf32>
    %9 = arith.mulf %7, %8 : vector<1x8xf32>
    %10 = vector.broadcast %9 : vector<1x8xf32> to vector<256x8xf32>
    %11 = arith.subf %3, %10 : vector<256x8xf32>
    %12 = arith.mulf %11, %11 : vector<256x8xf32>
    %cst_8 = arith.constant dense<0.000000e+00> : vector<8xf32>
    %13 = vector.multi_reduction <add>, %12, %cst_8 [0] : vector<256x8xf32> to vector<8xf32>
    %14 = vector.shape_cast %13 : vector<8xf32> to vector<1x8xf32>
    %cst_9 = arith.constant 3.906250e-03 : f32
    %15 = vector.broadcast %cst_9 : f32 to vector<1x8xf32>
    %16 = arith.mulf %14, %15 : vector<1x8xf32>
    %cst_10 = arith.constant 9.99999997E-7 : f32
    %17 = vector.broadcast %cst_10 : f32 to vector<1x8xf32>
    %18 = arith.addf %16, %17 : vector<1x8xf32>
    %19 = math.rsqrt %18 : vector<1x8xf32>
    %20 = arith.mulf %19, %4 : vector<1x8xf32>
    %21 = arith.mulf %9, %20 : vector<1x8xf32>
    %22 = arith.subf %5, %21 : vector<1x8xf32>
    %23 = vector.broadcast %20 : vector<1x8xf32> to vector<256x8xf32>
    %24 = arith.mulf %3, %23 : vector<256x8xf32>
    %25 = vector.broadcast %22 : vector<1x8xf32> to vector<256x8xf32>
    %26 = arith.addf %24, %25 : vector<256x8xf32>
    %27 = arith.negf %26 : vector<256x8xf32>
    %28 = math.exp %27 : vector<256x8xf32>
    %cst_11 = arith.constant 1.000000e+00 : f32
    %29 = vector.broadcast %cst_11 : f32 to vector<256x8xf32>
    %30 = arith.addf %29, %28 : vector<256x8xf32>
    %31 = arith.divf %29, %30 : vector<256x8xf32>
    %32 = arith.mulf %26, %31 : vector<256x8xf32>
    %33 = vector.shape_cast %32 : vector<256x8xf32> to vector<16x16x8xf32>
    %34 = arith.truncf %33 : vector<16x16x8xf32> to vector<16x16x8xbf16>
    %cst_12 = arith.constant 0.000000e+00 : bf16
    %35 = vector.broadcast %cst_12 : bf16 to vector<1x16x8xbf16>
    %cst_13 = arith.constant 0.000000e+00 : bf16
    %36 = vector.broadcast %cst_13 : bf16 to vector<16x1x8xbf16>
    %37 = tpu.concatenate %35, %34, %35 in 0 : vector<1x16x8xbf16>, vector<16x16x8xbf16>, vector<1x16x8xbf16> -> vector<18x16x8xbf16>
    %cst_14 = arith.constant 0.000000e+00 : f32
    %38 = vector.broadcast %cst_14 : f32 to vector<256x8xf32>
    %39 = vector.extract_strided_slice %37 {offsets = [0, 0, 0], sizes = [16, 16, 8], strides = [1, 1, 1]} : vector<18x16x8xbf16> to vector<16x16x8xbf16>
    %40 = vector.extract_strided_slice %39 {offsets = [0, 0, 0], sizes = [16, 15, 8], strides = [1, 1, 1]} : vector<16x16x8xbf16> to vector<16x15x8xbf16>
    %41 = tpu.concatenate %36, %40 in 1 : vector<16x1x8xbf16>, vector<16x15x8xbf16> -> vector<16x16x8xbf16>
    %42 = vector.extract_strided_slice %39 {offsets = [0, 1, 0], sizes = [16, 15, 8], strides = [1, 1, 1]} : vector<16x16x8xbf16> to vector<16x15x8xbf16>
    %43 = tpu.concatenate %42, %36 in 1 : vector<16x15x8xbf16>, vector<16x1x8xbf16> -> vector<16x16x8xbf16>
    %44 = tpu.concatenate %41, %39, %43 in 2 : vector<16x16x8xbf16>, vector<16x16x8xbf16>, vector<16x16x8xbf16> -> vector<16x16x24xbf16>
    %45 = vector.shape_cast %44 : vector<16x16x24xbf16> to vector<256x24xbf16>
    %c0_15 = arith.constant 0 : index
    %c0_16 = arith.constant 0 : index
    %c0_17 = arith.constant 0 : index
    %46 = vector.load %arg4[%c0_15, %c0_16, %c0_17] : memref<3x24x8xbf16, #tpu.memory_space<vmem>>, vector<1x24x8xbf16>
    %47 = vector.shape_cast %46 : vector<1x24x8xbf16> to vector<24x8xbf16>
    %cst_18 = arith.constant dense<0.000000e+00> : vector<256x8xf32>
    %48 = tpu.matmul %45, %47, %cst_18 {dimension_numbers = #tpu.dot_dimension_numbers<[1], [0], [0], [1], [0, 0, 1, 1], [], []>} : vector<256x24xbf16>, vector<24x8xbf16>, vector<256x8xf32> -> vector<256x8xf32>
    %49 = arith.addf %38, %48 : vector<256x8xf32>
    %50 = vector.extract_strided_slice %37 {offsets = [1, 0, 0], sizes = [16, 16, 8], strides = [1, 1, 1]} : vector<18x16x8xbf16> to vector<16x16x8xbf16>
    %51 = vector.extract_strided_slice %50 {offsets = [0, 0, 0], sizes = [16, 15, 8], strides = [1, 1, 1]} : vector<16x16x8xbf16> to vector<16x15x8xbf16>
    %52 = tpu.concatenate %36, %51 in 1 : vector<16x1x8xbf16>, vector<16x15x8xbf16> -> vector<16x16x8xbf16>
    %53 = vector.extract_strided_slice %50 {offsets = [0, 1, 0], sizes = [16, 15, 8], strides = [1, 1, 1]} : vector<16x16x8xbf16> to vector<16x15x8xbf16>
    %54 = tpu.concatenate %53, %36 in 1 : vector<16x15x8xbf16>, vector<16x1x8xbf16> -> vector<16x16x8xbf16>
    %55 = tpu.concatenate %52, %50, %54 in 2 : vector<16x16x8xbf16>, vector<16x16x8xbf16>, vector<16x16x8xbf16> -> vector<16x16x24xbf16>
    %56 = vector.shape_cast %55 : vector<16x16x24xbf16> to vector<256x24xbf16>
    %c1 = arith.constant 1 : index
    %c0_19 = arith.constant 0 : index
    %c0_20 = arith.constant 0 : index
    %57 = vector.load %arg4[%c1, %c0_19, %c0_20] : memref<3x24x8xbf16, #tpu.memory_space<vmem>>, vector<1x24x8xbf16>
    %58 = vector.shape_cast %57 : vector<1x24x8xbf16> to vector<24x8xbf16>
    %cst_21 = arith.constant dense<0.000000e+00> : vector<256x8xf32>
    %59 = tpu.matmul %56, %58, %cst_21 {dimension_numbers = #tpu.dot_dimension_numbers<[1], [0], [0], [1], [0, 0, 1, 1], [], []>} : vector<256x24xbf16>, vector<24x8xbf16>, vector<256x8xf32> -> vector<256x8xf32>
    %60 = arith.addf %49, %59 : vector<256x8xf32>
    %61 = vector.extract_strided_slice %37 {offsets = [2, 0, 0], sizes = [16, 16, 8], strides = [1, 1, 1]} : vector<18x16x8xbf16> to vector<16x16x8xbf16>
    %62 = vector.extract_strided_slice %61 {offsets = [0, 0, 0], sizes = [16, 15, 8], strides = [1, 1, 1]} : vector<16x16x8xbf16> to vector<16x15x8xbf16>
    %63 = tpu.concatenate %36, %62 in 1 : vector<16x1x8xbf16>, vector<16x15x8xbf16> -> vector<16x16x8xbf16>
    %64 = vector.extract_strided_slice %61 {offsets = [0, 1, 0], sizes = [16, 15, 8], strides = [1, 1, 1]} : vector<16x16x8xbf16> to vector<16x15x8xbf16>
    %65 = tpu.concatenate %64, %36 in 1 : vector<16x15x8xbf16>, vector<16x1x8xbf16> -> vector<16x16x8xbf16>
    %66 = tpu.concatenate %63, %61, %65 in 2 : vector<16x16x8xbf16>, vector<16x16x8xbf16>, vector<16x16x8xbf16> -> vector<16x16x24xbf16>
    %67 = vector.shape_cast %66 : vector<16x16x24xbf16> to vector<256x24xbf16>
    %c2 = arith.constant 2 : index
    %c0_22 = arith.constant 0 : index
    %c0_23 = arith.constant 0 : index
    %68 = vector.load %arg4[%c2, %c0_22, %c0_23] : memref<3x24x8xbf16, #tpu.memory_space<vmem>>, vector<1x24x8xbf16>
    %69 = vector.shape_cast %68 : vector<1x24x8xbf16> to vector<24x8xbf16>
    %cst_24 = arith.constant dense<0.000000e+00> : vector<256x8xf32>
    %70 = tpu.matmul %67, %69, %cst_24 {dimension_numbers = #tpu.dot_dimension_numbers<[1], [0], [0], [1], [0, 0, 1, 1], [], []>} : vector<256x24xbf16>, vector<24x8xbf16>, vector<256x8xf32> -> vector<256x8xf32>
    %71 = arith.addf %60, %70 : vector<256x8xf32>
    %c0_25 = arith.constant 0 : index
    %c0_26 = arith.constant 0 : index
    %72 = vector.load %arg5[%c0_25, %c0_26] : memref<1x8xf32, #tpu.memory_space<vmem>>, vector<1x8xf32>
    %73 = vector.broadcast %72 : vector<1x8xf32> to vector<256x8xf32>
    %74 = arith.addf %71, %73 : vector<256x8xf32>
    %c0_27 = arith.constant 0 : index
    %c0_28 = arith.constant 0 : index
    %c0_29 = arith.constant 0 : index
    %c0_30 = arith.constant 0 : index
    %75 = vector.load %arg6[%c0_27, %c0_28, %c0_29, %c0_30] : memref<1x16x16x4xf32, #tpu.memory_space<vmem>>, vector<1x16x16x4xf32>
    %76 = vector.shape_cast %75 : vector<1x16x16x4xf32> to vector<16x16x4xf32>
    %77 = vector.shape_cast %76 : vector<16x16x4xf32> to vector<256x4xf32>
    %78 = arith.truncf %77 : vector<256x4xf32> to vector<256x4xbf16>
    %c0_31 = arith.constant 0 : index
    %c0_32 = arith.constant 0 : index
    %79 = vector.load %arg7[%c0_31, %c0_32] : memref<4x8xbf16, #tpu.memory_space<vmem>>, vector<4x8xbf16>
    %cst_33 = arith.constant dense<0.000000e+00> : vector<256x8xf32>
    %80 = tpu.matmul %78, %79, %cst_33 {dimension_numbers = #tpu.dot_dimension_numbers<[1], [0], [0], [1], [0, 0, 1, 1], [], []>} : vector<256x4xbf16>, vector<4x8xbf16>, vector<256x8xf32> -> vector<256x8xf32>
    %81 = arith.addf %74, %80 : vector<256x8xf32>
    %c0_34 = arith.constant 0 : index
    %c0_35 = arith.constant 0 : index
    %82 = vector.load %arg8[%c0_34, %c0_35] : memref<1x8xf32, #tpu.memory_space<vmem>>, vector<1x8xf32>
    %83 = vector.broadcast %82 : vector<1x8xf32> to vector<256x8xf32>
    %84 = arith.addf %81, %83 : vector<256x8xf32>
    %85 = vector.shape_cast %84 : vector<256x8xf32> to vector<16x16x8xf32>
    %c0_36 = arith.constant 0 : index
    %c0_37 = arith.constant 0 : index
    %c0_38 = arith.constant 0 : index
    %c0_39 = arith.constant 0 : index
    %86 = vector.load %arg9[%c0_36, %c0_37, %c0_38, %c0_39] : memref<1x16x16x8xf32, #tpu.memory_space<vmem>>, vector<1x16x16x8xf32>
    %87 = vector.shape_cast %86 : vector<1x16x16x8xf32> to vector<16x16x8xf32>
    %88 = vector.shape_cast %85 : vector<16x16x8xf32> to vector<1x16x16x8xf32>
    tpu.vector_store %arg9[%c0_36, %c0_37, %c0_38, %c0_39], %88 {strides = array<i32>} : memref<1x16x16x8xf32, #tpu.memory_space<vmem>>, vector<1x16x16x8xf32>,
    return
  }
  func.func @transform_0(%arg0: i32) -> (i32, i32, i32, i32) {
    %c0_i32 = arith.constant 0 : i32
    %c0_i32_0 = arith.constant 0 : i32
    %c0_i32_1 = arith.constant 0 : i32
    %c0_i32_2 = arith.constant 0 : i32
    return %arg0, %c0_i32, %c0_i32_0, %c0_i32_1 : i32, i32, i32, i32
  }
  func.func @transform_1(%arg0: i32) -> (i32, i32) {
    %c0_i32 = arith.constant 0 : i32
    %c0_i32_0 = arith.constant 0 : i32
    %c0_i32_1 = arith.constant 0 : i32
    return %c0_i32, %c0_i32_0 : i32, i32
  }
  func.func @transform_2(%arg0: i32) -> (i32, i32) {
    %c0_i32 = arith.constant 0 : i32
    %c0_i32_0 = arith.constant 0 : i32
    %c0_i32_1 = arith.constant 0 : i32
    return %c0_i32, %c0_i32_0 : i32, i32
  }
  func.func @transform_3(%arg0: i32) -> (i32, i32, i32) {
    %c0_i32 = arith.constant 0 : i32
    %c0_i32_0 = arith.constant 0 : i32
    %c0_i32_1 = arith.constant 0 : i32
    %c0_i32_2 = arith.constant 0 : i32
    return %c0_i32, %c0_i32_0, %c0_i32_1 : i32, i32, i32
  }
  func.func @transform_4(%arg0: i32) -> (i32, i32) {
    %c0_i32 = arith.constant 0 : i32
    %c0_i32_0 = arith.constant 0 : i32
    %c0_i32_1 = arith.constant 0 : i32
    return %c0_i32, %c0_i32_0 : i32, i32
  }
  func.func @transform_5(%arg0: i32) -> (i32, i32, i32, i32) {
    %c0_i32 = arith.constant 0 : i32
    %c0_i32_0 = arith.constant 0 : i32
    %c0_i32_1 = arith.constant 0 : i32
    %c0_i32_2 = arith.constant 0 : i32
    return %arg0, %c0_i32, %c0_i32_0, %c0_i32_1 : i32, i32, i32, i32
  }
  func.func @transform_6(%arg0: i32) -> (i32, i32) {
    %c0_i32 = arith.constant 0 : i32
    %c0_i32_0 = arith.constant 0 : i32
    %c0_i32_1 = arith.constant 0 : i32
    return %c0_i32, %c0_i32_0 : i32, i32
  }
  func.func @transform_7(%arg0: i32) -> (i32, i32) {
    %c0_i32 = arith.constant 0 : i32
    %c0_i32_0 = arith.constant 0 : i32
    %c0_i32_1 = arith.constant 0 : i32
    return %c0_i32, %c0_i32_0 : i32, i32
  }
  func.func @transform_8(%arg0: i32) -> (i32, i32, i32, i32) {
    %c0_i32 = arith.constant 0 : i32
    %c0_i32_0 = arith.constant 0 : i32
    %c0_i32_1 = arith.constant 0 : i32
    %c0_i32_2 = arith.constant 0 : i32
    return %arg0, %c0_i32, %c0_i32_0, %c0_i32_1 : i32, i32, i32, i32
  }
}

</mosaic_0001>

<bundles_post_ra>
// kernel: resnet_block_forward.3
= control target key start
LH: loop header
LB: loop body
LE: loop exit
PB: predicated region body
PF: predicated region fallthrough
CT: control target
= control target key end

     0   :  { %s3027_s27 = smov 0   ;;  %s4349_s0 = inlined_call_operand.vmem [shape: bf16[2,16,16,8], index: 0, kind: input, shape index: {}]   ;;  %s4350_s1 = inlined_call_operand.vmem [shape: f32[1,8], index: 1, kind: input, shape index: {}]   ;;  %s4351_s2 = inlined_call_operand.vmem [shape: f32[1,8], index: 2, kind: input, shape index: {}]   ;;  %s4352_s3 = inlined_call_operand.vmem [shape: bf16[3,24,8], index: 3, kind: input, shape index: {}]   ;;  %s4353_s4 = inlined_call_operand.vmem [shape: f32[1,8], index: 4, kind: input, shape index: {}]   ;;  %s4354_s5 = inlined_call_operand.vmem [shape: f32[2,16,16,4], index: 5, kind: input, shape index: {}]   ;;  %s4355_s6 = inlined_call_operand.vmem [shape: bf16[4,8], index: 6, kind: input, shape index: {}]   ;;  %s4356_s7 = inlined_call_operand.vmem [shape: f32[1,8], index: 7, kind: input, shape index: {}]   ;;  %s4357_s8 = inlined_call_operand.vmem [shape: f32[2,16,16,8], index: 8, kind: output, shape index: {}]  }
   0x1 LB: > { %s2402_s28 = sadd.s32 4294967295, %s2977_s27   ;;  %p2406_p0 = scmp.ge.s32.totalorder %s2977_s27, 1  ;;  %s2977_s27 = sphi %s3027_s27, %s18_s27  }
   0x2   : > { %p272_p1 = scmp.lt.s32.totalorder %s2977_s27, 3 }
   0x4   : > { %p273_p2 = pnand %p2406_p0, %p272_p1 }
   0x6   : > { %276 = sbr.rel (%p273_p2) target bundleno = 707 (0x2c3), region = 52 }
   0xb   : > { %vm1112_vm0 = vcmask 1047552   ;;  %vm1113_vm1 = vsmask.f32 7424  ;;  %v2979_v0 = vmov 0   ;;  %s2980_s29 = smov 8   ;;  %p311_p3 = scmp.lt.s32.totalorder %s2402_s28, 1 }
   0xc   : > { %1147 = vrot.lane.b32.xlu0 %v2979_v0, %s2980_s29  ;;  %v1064_v1 = vrot.slane %v2979_v0, 1  ;;  %vm3038_vm2 = vmand %vm1112_vm0, %vm1113_vm1  ;;  %s2981_s30 = smov 16   ;;  %vm393_vm3 = vcmask 64512   ;;  %vm1381_vm4 = vcmask 1043456   ;;  %vm1045_vm5 = vcmask 1040384  }
   0xd   : > { %s4397_s28 = smov (!%p311_p3, %s2402_s28), 1  ;;  %vm1046_vm6 = vsmask.f32 256  ;;  %vm1275_vm8 = vcmask 130048   ;;  %vm1348_vm9 = vcmask 195584   ;;  %vm2067_vm10 = vcmask 1041408  }
   0xe   : > { %v1115_v3 = vsel %vm3038_vm2, %v1064_v1, 0  ;;  %s2525_s9 = sshll.u32 %s4397_s28, 7  ;;  %vm3405_vm7 = vmand %vm1045_vm5, %vm1046_vm6  ;;  %s2526_s11 = sshll.u32 %s4397_s28, 8  ;;  %vm2018_vm11 = vcmask 31744  }
   0xf   : > { %1195 = vrot.lane.b32.xlu1 %v1115_v3, %s2981_s30  ;;  %s3051_s12 = scalar_lea.vmem %s4349_s0, %s2525_s9  ;;  %s3889_s14 = scalar_lea.vmem %s4354_s5, %s2526_s11 }
  0x10   : > { %v2529_v4 = vld [vmem:[%s3051_s12] sm:$0xff]   ;;  %v2592_v5 = vld [vmem:[%s3051_s12 + $0x8] sm:$0xff]   ;;  %v2593_v9 = vld [vmem:[%s3051_s12 + $0x10] sm:$0xff]   ;;  %s4162_s21 = scalar_lea.vmem %s4357_s8, %s2526_s11 }
  0x11   : > { %v3055_v6 = vunpack.c.l.bf16 %v2529_v4  ;;  %v3057_v7 = vunpack.c.h.bf16 %v2529_v4  ;;  %v3059_v8 = vunpack.c.l.bf16 %v2592_v5  ;;  %v3062_v10 = vunpack.c.h.bf16 %v2592_v5  ;;  %v2594_v15 = vld [vmem:[%s3051_s12 + $0x18] sm:$0xff]   ;;  %v2595_v22 = vld [vmem:[%s3051_s12 + $0x20] sm:$0xff]   ;;  %v2596_v29 = vld [vmem:[%s3051_s12 + $0x28] sm:$0xff]  }
  0x12   : > { %v3064_v11 = vunpack.c.l.bf16 %v2593_v9  ;;  %v3073_v17 = vunpack.c.h.bf16 %v2593_v9  ;;  %v3077_v20 = vunpack.c.l.bf16 %v2594_v15  ;;  %v3082_v24 = vunpack.c.h.bf16 %v2594_v15  ;;  %v2597_v36 = vld [vmem:[%s3051_s12 + $0x30] sm:$0xff]   ;;  %v2598_v43 = vld [vmem:[%s3051_s12 + $0x38] sm:$0xff]   ;;  %v2599_v50 = vld [vmem:[%s3051_s12 + $0x40] sm:$0xff]  }
  0x13   : > { %v394_v12 = vsel %vm393_vm3, %v3055_v6, 0.0  ;;  %v395_v13 = vsel %vm393_vm3, %v3057_v7, 0.0  ;;  %v397_v14 = vsel %vm393_vm3, %v3059_v8, 0.0  ;;  %v399_v18 = vsel %vm393_vm3, %v3062_v10, 0.0  ;;  %v2600_v57 = vld [vmem:[%s3051_s12 + $0x48] sm:$0xff]   ;;  %v2601_v1 = vld [vmem:[%s3051_s12 + $0x50] sm:$0xff]  }
  0x14   : > { %v396_v16 = vadd.f32 %v395_v13, %v394_v12  ;;  %v401_v21 = vsel %vm393_vm3, %v3064_v11, 0.0  ;;  %v403_v25 = vsel %vm393_vm3, %v3073_v17, 0.0  ;;  %v3086_v27 = vunpack.c.l.bf16 %v2595_v22 }
  0x15   : > { %v405_v28 = vsel %vm393_vm3, %v3077_v20, 0.0  ;;  %v3091_v31 = vunpack.c.h.bf16 %v2595_v22  ;;  %v407_v32 = vsel %vm393_vm3, %v3082_v24, 0.0  ;;  %v3095_v34 = vunpack.c.l.bf16 %v2596_v29 }
  0x16   : > { %v398_v19 = vadd.f32 %v397_v14, %v396_v16  ;;  %v409_v35 = vsel %vm393_vm3, %v3086_v27, 0.0  ;;  %v3100_v38 = vunpack.c.h.bf16 %v2596_v29  ;;  %v3104_v41 = vunpack.c.l.bf16 %v2597_v36  ;;  %v2602_v14 = vld [vmem:[%s3051_s12 + $0x58] sm:$0xff]  }
  0x17   : > { %v411_v39 = vsel %vm393_vm3, %v3091_v31, 0.0  ;;  %v413_v42 = vsel %vm393_vm3, %v3095_v34, 0.0  ;;  %v3109_v45 = vunpack.c.h.bf16 %v2597_v36  ;;  %v3113_v48 = vunpack.c.l.bf16 %v2598_v43 }
  0x18   : > { %v400_v23 = vadd.f32 %v399_v18, %v398_v19  ;;  %v415_v46 = vsel %vm393_vm3, %v3100_v38, 0.0  ;;  %v417_v49 = vsel %vm393_vm3, %v3104_v41, 0.0  ;;  %v3118_v52 = vunpack.c.h.bf16 %v2598_v43  ;;  %v2605_v43 = vld [vmem:[%s3051_s12 + $0x70] sm:$0xff]  }
  0x19   : > { %v419_v53 = vsel %vm393_vm3, %v3109_v45, 0.0  ;;  %v3122_v55 = vunpack.c.l.bf16 %v2599_v50  ;;  %v421_v56 = vsel %vm393_vm3, %v3113_v48, 0.0  ;;  %v3127_v59 = vunpack.c.h.bf16 %v2599_v50 }
  0x1a   : > { %v402_v26 = vadd.f32 %v401_v21, %v400_v23  ;;  %v423_v60 = vsel %vm393_vm3, %v3118_v52, 0.0  ;;  %v3131_v62 = vunpack.c.l.bf16 %v2600_v57  ;;  %v3136_v4 = vunpack.c.h.bf16 %v2600_v57  ;;  %v2603_v23 = vld [vmem:[%s3051_s12 + $0x60] sm:$0xff]  }
  0x1b   : > { %v425_v63 = vsel %vm393_vm3, %v3122_v55, 0.0  ;;  %v427_v5 = vsel %vm393_vm3, %v3127_v59, 0.0  ;;  %v3140_v12 = vunpack.c.l.bf16 %v2601_v1  ;;  %v3145_v16 = vunpack.c.h.bf16 %v2601_v1 }
  0x1c   : > { %v404_v30 = vadd.f32 %v403_v25, %v402_v26  ;;  %v429_v13 = vsel %vm393_vm3, %v3131_v62, 0.0  ;;  %v431_v18 = vsel %vm393_vm3, %v3136_v4, 0.0  ;;  %v3149_v21 = vunpack.c.l.bf16 %v2602_v14 }
  0x1d   : > { %v433_v22 = vsel %vm393_vm3, %v3140_v12, 0.0  ;;  %v3154_v26 = vunpack.c.h.bf16 %v2602_v14  ;;  %v3163_v36 = vunpack.c.h.bf16 %v2603_v23  ;;  %v3176_v50 = vunpack.c.l.bf16 %v2605_v43 }
  0x1e   : > { %v406_v33 = vadd.f32 %v405_v28, %v404_v30  ;;  %v435_v28 = vsel %vm393_vm3, %v3145_v16, 0.0  ;;  %v3158_v30 = vunpack.c.l.bf16 %v2603_v23 }
  0x20   : > { %v408_v37 = vadd.f32 %v407_v32, %v406_v33  ;;  %v437_v32 = vsel %vm393_vm3, %v3149_v21, 0.0  ;;  %v2604_v33 = vld [vmem:[%s3051_s12 + $0x68] sm:$0xff]  }
  0x22   : > { %v410_v40 = vadd.f32 %v409_v35, %v408_v37  ;;  %v439_v37 = vsel %vm393_vm3, %v3154_v26, 0.0 }
  0x24   : > { %v412_v44 = vadd.f32 %v411_v39, %v410_v40  ;;  %v3167_v40 = vunpack.c.l.bf16 %v2604_v33 }
  0x26   : > { %v414_v47 = vadd.f32 %v413_v42, %v412_v44  ;;  %v441_v42 = vsel %vm393_vm3, %v3158_v30, 0.0 }
  0x28   : > { %v416_v51 = vadd.f32 %v415_v46, %v414_v47  ;;  %v3172_v46 = vunpack.c.h.bf16 %v2604_v33  ;;  %v443_v47 = vsel %vm393_vm3, %v3163_v36, 0.0 }
  0x2a   : > { %v418_v54 = vadd.f32 %v417_v49, %v416_v51  ;;  %v445_v51 = vsel %vm393_vm3, %v3167_v40, 0.0  ;;  %v447_v57 = vsel %vm393_vm3, %v3172_v46, 0.0 }
  0x2c   : > { %v420_v58 = vadd.f32 %v419_v53, %v418_v54  ;;  %v2606_v53 = vld [vmem:[%s3051_s12 + $0x78] sm:$0xff]  }
  0x2d   : > { %v3189_v1 = vunpack.c.h.bf16 %v2606_v53 }
  0x2e   : > { %v422_v61 = vadd.f32 %v421_v56, %v420_v58  ;;  %v3181_v56 = vunpack.c.h.bf16 %v2605_v43 }
  0x2f   : > { %v455_v14 = vsel %vm393_vm3, %v3189_v1, 0.0 }
  0x30   : > { %v424_v3 = vadd.f32 %v423_v60, %v422_v61  ;;  %v3185_v60 = vunpack.c.l.bf16 %v2606_v53  ;;  %v449_v61 = vsel %vm393_vm3, %v3176_v50, 0.0 }
  0x32   : > { %v426_v9 = vadd.f32 %v425_v63, %v424_v3  ;;  %v451_v3 = vsel %vm393_vm3, %v3181_v56, 0.0 }
  0x34   : > { %v428_v15 = vadd.f32 %v427_v5, %v426_v9  ;;  %v453_v9 = vsel %vm393_vm3, %v3185_v60, 0.0 }
  0x36   : > { %v430_v19 = vadd.f32 %v429_v13, %v428_v15 }
  0x38   : > { %v432_v25 = vadd.f32 %v431_v18, %v430_v19 }
  0x3a   : > { %v434_v29 = vadd.f32 %v433_v22, %v432_v25 }
  0x3c   : > { %v436_v35 = vadd.f32 %v435_v28, %v434_v29 }
  0x3e   : > { %v438_v39 = vadd.f32 %v437_v32, %v436_v35 }
  0x40   : > { %v440_v44 = vadd.f32 %v439_v37, %v438_v39 }
  0x42   : > { %v442_v49 = vadd.f32 %v441_v42, %v440_v44 }
  0x44   : > { %v444_v54 = vadd.f32 %v443_v47, %v442_v49 }
  0x46   : > { %v446_v58 = vadd.f32 %v445_v51, %v444_v54 }
  0x48   : > { %v448_v63 = vadd.f32 %v447_v57, %v446_v58 }
  0x4a   : > { %v450_v5 = vadd.f32 %v449_v61, %v448_v63 }
  0x4c   : > { %v452_v13 = vadd.f32 %v451_v3, %v450_v5 }
  0x4e   : > { %v454_v15 = vadd.f32 %v453_v9, %v452_v13 }
  0x50   : > { %v456_v18 = vadd.f32 %v455_v14, %v454_v15 }
  0x52   : > { %v457_v19 = vrot.slane %v456_v18, 4 }
  0x54   : > { %v458_v22 = vadd.f32 %v457_v19, %v456_v18 }
  0x56   : > { %v459_v23 = vrot.slane %v458_v22, 2 }
  0x58   : > { %v460_v25 = vadd.f32 %v459_v23, %v458_v22 }
  0x5a   : > { %v461_v28 = vrot.slane %v460_v25, 1 }
  0x5c   : > { %v462_v29 = vadd.f32 %v461_v28, %v460_v25 }
  0x5e   : > { %v3197_v32 = vmul.f32 0.00390625, %v462_v29 }
  0x60   : > { %v464_v33 = vsub.f32 %v3055_v6, %v3197_v32  ;;  %v465_v35 = vsub.f32 %v3057_v7, %v3197_v32  ;;  %v466_v37 = vsub.f32 %v3059_v8, %v3197_v32  ;;  %v467_v39 = vsub.f32 %v3062_v10, %v3197_v32 }
  0x61   : > { %v468_v42 = vsub.f32 %v3064_v11, %v3197_v32  ;;  %v469_v49 = vsub.f32 %v3073_v17, %v3197_v32  ;;  %v470_v53 = vsub.f32 %v3077_v20, %v3197_v32  ;;  %v471_v3 = vsub.f32 %v3082_v24, %v3197_v32 }
  0x62   : > { %v496_v43 = vmul.f32 %v464_v33, %v464_v33  ;;  %v497_v44 = vmul.f32 %v465_v35, %v465_v35  ;;  %v498_v47 = vmul.f32 %v466_v37, %v466_v37  ;;  %v499_v51 = vmul.f32 %v467_v39, %v467_v39 }
  0x63   : > { %v500_v54 = vmul.f32 %v468_v42, %v468_v42  ;;  %v501_v5 = vmul.f32 %v469_v49, %v469_v49  ;;  %v472_v14 = vsub.f32 %v3086_v27, %v3197_v32  ;;  %v502_v15 = vmul.f32 %v470_v53, %v470_v53 }
  0x64   : > { %v528_v57 = vsel %vm393_vm3, %v496_v43, 0.0  ;;  %v529_v58 = vsel %vm393_vm3, %v497_v44, 0.0  ;;  %v531_v61 = vsel %vm393_vm3, %v498_v47, 0.0  ;;  %v533_v9 = vsel %vm393_vm3, %v499_v51, 0.0 }
  0x65   : > { %v530_v63 = vadd.f32 %v529_v58, %v528_v57  ;;  %v535_v18 = vsel %vm393_vm3, %v500_v54, 0.0  ;;  %v473_v22 = vsub.f32 %v3091_v31, %v3197_v32  ;;  %v503_v23 = vmul.f32 %v471_v3, %v471_v3 }
  0x66   : > { %v537_v25 = vsel %vm393_vm3, %v501_v5, 0.0  ;;  %v474_v29 = vsub.f32 %v3095_v34, %v3197_v32  ;;  %v504_v33 = vmul.f32 %v472_v14, %v472_v14  ;;  %v539_v35 = vsel %vm393_vm3, %v502_v15, 0.0 }
  0x67   : > { %v532_v13 = vadd.f32 %v531_v61, %v530_v63  ;;  %v475_v39 = vsub.f32 %v3100_v38, %v3197_v32  ;;  %v505_v42 = vmul.f32 %v473_v22, %v473_v22  ;;  %v541_v43 = vsel %vm393_vm3, %v503_v23, 0.0 }
  0x68   : > { %v476_v47 = vsub.f32 %v3104_v41, %v3197_v32  ;;  %v506_v49 = vmul.f32 %v474_v29, %v474_v29  ;;  %v543_v51 = vsel %vm393_vm3, %v504_v33, 0.0  ;;  %v477_v54 = vsub.f32 %v3109_v45, %v3197_v32 }
  0x69   : > { %v534_v19 = vadd.f32 %v533_v9, %v532_v13  ;;  %v507_v57 = vmul.f32 %v475_v39, %v475_v39  ;;  %v545_v58 = vsel %vm393_vm3, %v505_v42, 0.0  ;;  %v478_v63 = vsub.f32 %v3113_v48, %v3197_v32 }
  0x6a   : > { %v508_v3 = vmul.f32 %v476_v47, %v476_v47  ;;  %v547_v5 = vsel %vm393_vm3, %v506_v49, 0.0  ;;  %v479_v13 = vsub.f32 %v3118_v52, %v3197_v32  ;;  %v509_v14 = vmul.f32 %v477_v54, %v477_v54 }
  0x6b   : > { %v536_v28 = vadd.f32 %v535_v18, %v534_v19  ;;  %v549_v15 = vsel %vm393_vm3, %v507_v57, 0.0  ;;  %v480_v19 = vsub.f32 %v3122_v55, %v3197_v32  ;;  %v510_v22 = vmul.f32 %v478_v63, %v478_v63 }
  0x6c   : > { %v551_v23 = vsel %vm393_vm3, %v508_v3, 0.0  ;;  %v511_v29 = vmul.f32 %v479_v13, %v479_v13  ;;  %v553_v33 = vsel %vm393_vm3, %v509_v14, 0.0 }
  0x6d   : > { %v538_v37 = vadd.f32 %v537_v25, %v536_v28  ;;  %v481_v28 = vsub.f32 %v3127_v59, %v3197_v32  ;;  %v512_v39 = vmul.f32 %v480_v19, %v480_v19  ;;  %v555_v42 = vsel %vm393_vm3, %v510_v22, 0.0 }
  0x6e   : > { %v557_v49 = vsel %vm393_vm3, %v511_v29, 0.0 }
  0x6f   : > { %v540_v44 = vadd.f32 %v539_v35, %v538_v37  ;;  %v482_v37 = vsub.f32 %v3131_v62, %v3197_v32  ;;  %v513_v47 = vmul.f32 %v481_v28, %v481_v28  ;;  %v559_v57 = vsel %vm393_vm3, %v512_v39, 0.0 }
  0x71   : > { %v542_v53 = vadd.f32 %v541_v43, %v540_v44  ;;  %v483_v44 = vsub.f32 %v3136_v4, %v3197_v32  ;;  %v514_v54 = vmul.f32 %v482_v37, %v482_v37  ;;  %v561_v3 = vsel %vm393_vm3, %v513_v47, 0.0 }
  0x73   : > { %v544_v61 = vadd.f32 %v543_v51, %v542_v53  ;;  %v484_v53 = vsub.f32 %v3140_v12, %v3197_v32  ;;  %v515_v63 = vmul.f32 %v483_v44, %v483_v44  ;;  %v563_v14 = vsel %vm393_vm3, %v514_v54, 0.0 }
  0x75   : > { %v546_v9 = vadd.f32 %v545_v58, %v544_v61  ;;  %v485_v61 = vsub.f32 %v3145_v16, %v3197_v32  ;;  %v516_v13 = vmul.f32 %v484_v53, %v484_v53  ;;  %v565_v22 = vsel %vm393_vm3, %v515_v63, 0.0 }
  0x77   : > { %v548_v18 = vadd.f32 %v547_v5, %v546_v9  ;;  %v486_v9 = vsub.f32 %v3149_v21, %v3197_v32  ;;  %v517_v19 = vmul.f32 %v485_v61, %v485_v61  ;;  %v567_v29 = vsel %vm393_vm3, %v516_v13, 0.0 }
  0x79   : > { %v550_v25 = vadd.f32 %v549_v15, %v548_v18  ;;  %v487_v18 = vsub.f32 %v3154_v26, %v3197_v32  ;;  %v518_v28 = vmul.f32 %v486_v9, %v486_v9  ;;  %v569_v39 = vsel %vm393_vm3, %v517_v19, 0.0 }
  0x7b   : > { %v552_v35 = vadd.f32 %v551_v23, %v550_v25  ;;  %v488_v25 = vsub.f32 %v3158_v30, %v3197_v32  ;;  %v519_v37 = vmul.f32 %v487_v18, %v487_v18  ;;  %v571_v47 = vsel %vm393_vm3, %v518_v28, 0.0 }
  0x7d   : > { %v554_v43 = vadd.f32 %v553_v33, %v552_v35  ;;  %v489_v35 = vsub.f32 %v3163_v36, %v3197_v32  ;;  %v520_v44 = vmul.f32 %v488_v25, %v488_v25  ;;  %v573_v54 = vsel %vm393_vm3, %v519_v37, 0.0 }
  0x7f   : > { %v556_v51 = vadd.f32 %v555_v42, %v554_v43  ;;  %v490_v43 = vsub.f32 %v3167_v40, %v3197_v32  ;;  %v521_v53 = vmul.f32 %v489_v35, %v489_v35  ;;  %v575_v63 = vsel %vm393_vm3, %v520_v44, 0.0 }
  0x81   : > { %v558_v58 = vadd.f32 %v557_v49, %v556_v51  ;;  %v491_v51 = vsub.f32 %v3172_v46, %v3197_v32  ;;  %v522_v61 = vmul.f32 %v490_v43, %v490_v43  ;;  %v577_v13 = vsel %vm393_vm3, %v521_v53, 0.0 }
  0x83   : > { %v560_v5 = vadd.f32 %v559_v57, %v558_v58  ;;  %v492_v58 = vsub.f32 %v3176_v50, %v3197_v32  ;;  %v523_v9 = vmul.f32 %v491_v51, %v491_v51  ;;  %v579_v19 = vsel %vm393_vm3, %v522_v61, 0.0 }
  0x85   : > { %v562_v15 = vadd.f32 %v561_v3, %v560_v5  ;;  %v493_v5 = vsub.f32 %v3181_v56, %v3197_v32  ;;  %v524_v18 = vmul.f32 %v492_v58, %v492_v58  ;;  %v581_v28 = vsel %vm393_vm3, %v523_v9, 0.0 }
  0x87   : > { %v564_v23 = vadd.f32 %v563_v14, %v562_v15  ;;  %v494_v15 = vsub.f32 %v3185_v60, %v3197_v32  ;;  %v525_v25 = vmul.f32 %v493_v5, %v493_v5  ;;  %v583_v35 = vsel %vm393_vm3, %v524_v18, 0.0 }
  0x89   : > { %v566_v33 = vadd.f32 %v565_v22, %v564_v23  ;;  %v495_v23 = vsub.f32 %v3189_v1, %v3197_v32 }
  0x8b   : > { %v568_v42 = vadd.f32 %v567_v29, %v566_v33  ;;  %v526_v33 = vmul.f32 %v494_v15, %v494_v15  ;;  %v391_v15 = vld [vmem:[%s4350_s1] sm:$0x1] }
  0x8d   : > { %v570_v49 = vadd.f32 %v569_v39, %v568_v42  ;;  %v527_v39 = vmul.f32 %v495_v23, %v495_v23  ;;  %v585_v42 = vsel %vm393_vm3, %v525_v25, 0.0  ;;  %v587_v44 = vsel %vm393_vm3, %v526_v33, 0.0  ;;  %v392_v25 = vld [vmem:[%s4351_s2] sm:$0x1] }
  0x8f   : > { %v572_v57 = vadd.f32 %v571_v47, %v570_v49  ;;  %v589_v49 = vsel %vm393_vm3, %v527_v39, 0.0 }
  0x91   : > { %v574_v3 = vadd.f32 %v573_v54, %v572_v57 }
  0x93   : > { %v576_v14 = vadd.f32 %v575_v63, %v574_v3 }
  0x95   : > { %v578_v22 = vadd.f32 %v577_v13, %v576_v14  ;;  %v603_v13 = vlaneseq }
  0x97   : > { %v580_v29 = vadd.f32 %v579_v19, %v578_v22  ;;  %v604_v14 = vshrl.u32 %v603_v13, 7  ;;  %v2835_v22 = vld [vmem:[%s4352_s3 + $0x8] ss:$0 sps:$4 sm:$0xff]  }
  0x98   : > { %2821 = vmatprep.subr.msk.bf16.mxu1 %vm1381_vm4, %v2835_v22 }
  0x99   : > { %v582_v37 = vadd.f32 %v581_v28, %v580_v29  ;;  %v605_v18 = vsub.s32 0, %v604_v14  ;;  %v1558_v28 = vsel %vm1381_vm4, %v2835_v22, 0 }
  0x9a   : > { %2715 = vmatpush3.bf16.msra.mxu1 %v1558_v28 }
  0x9b   : > { %v584_v43 = vadd.f32 %v583_v35, %v582_v37 }
  0x9d   : > { %v586_v47 = vadd.f32 %v585_v42, %v584_v43 }
  0x9f   : > { %v588_v51 = vadd.f32 %v587_v44, %v586_v47 }
  0xa1   : > { %v590_v53 = vadd.f32 %v589_v49, %v588_v51 }
  0xa3   : > { %v591_v54 = vrot.slane %v590_v53, 4 }
  0xa5   : > { %v592_v57 = vadd.f32 %v591_v54, %v590_v53 }
  0xa7   : > { %v593_v58 = vrot.slane %v592_v57, 2 }
  0xa9   : > { %v594_v61 = vadd.f32 %v593_v58, %v592_v57 }
  0xab   : > { %v595_v63 = vrot.slane %v594_v61, 1 }
  0xad   : > { %v596_v3 = vadd.f32 %v595_v63, %v594_v61 }
  0xaf   : > { %v597_v5 = vmul.f32 0.00390625, %v596_v3 }
  0xb1   : > { %v598_v9 = vadd.f32 1e-06, %v597_v5 }
  0xb3   : > { %2841 = vrsqrt.f32 %v598_v9 }
  0xc0   : > { %v2842_v19 = vpop.eup %2841 }
  0xc1   : > { %v600_v23 = vmul.f32 %v2842_v19, %v391_v15 }
  0xc3   : > { %v601_v29 = vmul.f32 %v600_v23, %v3197_v32  ;;  %v3307_v33 = vrot.slane %v600_v23, %v605_v18 }
  0xc5   : > { %v602_v35 = vsub.f32 %v392_v25, %v601_v29  ;;  %v607_v37 = vmul.f32 %v3055_v6, %v3307_v33  ;;  %v608_v39 = vmul.f32 %v3057_v7, %v3307_v33  ;;  %v609_v42 = vmul.f32 %v3059_v8, %v3307_v33 }
  0xc6   : > { %v610_v43 = vmul.f32 %v3062_v10, %v3307_v33  ;;  %v611_v44 = vmul.f32 %v3064_v11, %v3307_v33  ;;  %v612_v32 = vmul.f32 %v3073_v17, %v3307_v33  ;;  %v613_v6 = vmul.f32 %v3077_v20, %v3307_v33 }
  0xc7   : > { %v3321_v47 = vrot.slane %v602_v35, %v605_v18  ;;  %v614_v7 = vmul.f32 %v3082_v24, %v3307_v33  ;;  %v615_v8 = vmul.f32 %v3086_v27, %v3307_v33  ;;  %v616_v27 = vmul.f32 %v3091_v31, %v3307_v33 }
  0xc8   : > { %v617_v51 = vmul.f32 %v3095_v34, %v3307_v33  ;;  %v618_v31 = vmul.f32 %v3100_v38, %v3307_v33  ;;  %v619_v5 = vmul.f32 %v3104_v41, %v3307_v33  ;;  %v620_v14 = vmul.f32 %v3109_v45, %v3307_v33 }
  0xc9   : > { %v3330_v49 = vadd.f32 %v3321_v47, %v607_v37  ;;  %v3333_v10 = vadd.f32 %v3321_v47, %v608_v39  ;;  %v3336_v11 = vadd.f32 %v3321_v47, %v609_v42  ;;  %v3339_v17 = vadd.f32 %v3321_v47, %v610_v43  ;;  %v1971_v42 = vld [vmem:[%s3889_s14 + $0x10] sm:$0xff] }
  0xca   : > { %v3342_v20 = vadd.f32 %v3321_v47, %v611_v44  ;;  %v3345_v24 = vadd.f32 %v3321_v47, %v612_v32  ;;  %v3355_v58 = vadd.f32 %v3321_v47, %v613_v6  ;;  %v3359_v63 = vadd.f32 %v3321_v47, %v614_v7 }
  0xcb   : > { %v2413_v53 = vmul.f32 -1.442695, %v3330_v49  ;;  %v2414_v54 = vmul.f32 -1.442695, %v3333_v10  ;;  %v2415_v57 = vmul.f32 -1.442695, %v3336_v11  ;;  %v3365_v3 = vadd.f32 %v3321_v47, %v615_v8  ;;  %v1148_v8 = vpop.permute.xlu0 %1147 }
  0xcc   : > { %v2416_v61 = vmul.f32 -1.442695, %v3339_v17  ;;  %v2417_v34 = vmul.f32 -1.442695, %v3342_v20  ;;  %v2418_v9 = vmul.f32 -1.442695, %v3345_v24  ;;  %v3371_v13 = vadd.f32 %v3321_v47, %v616_v27 }
  0xcd   : > { %2843 = vpow2.f32 %v2413_v53  ;;  %v2419_v38 = vmul.f32 -1.442695, %v3355_v58  ;;  %v3377_v15 = vadd.f32 %v3321_v47, %v617_v51  ;;  %v621_v18 = vmul.f32 %v3113_v48, %v3307_v33 }
  0xce   : > { %2845 = vpow2.f32 %v2414_v54  ;;  %v2420_v41 = vmul.f32 -1.442695, %v3359_v63  ;;  %v3383_v19 = vadd.f32 %v3321_v47, %v618_v31  ;;  %v622_v22 = vmul.f32 %v3118_v52, %v3307_v33 }
  0xcf   : > { %2847 = vpow2.f32 %v2415_v57  ;;  %v2421_v45 = vmul.f32 -1.442695, %v3365_v3  ;;  %v3389_v23 = vadd.f32 %v3321_v47, %v619_v5  ;;  %v2422_v25 = vmul.f32 -1.442695, %v3371_v13 }
  0xd0   : > { %2849 = vpow2.f32 %v2416_v61  ;;  %v3393_v48 = vadd.f32 %v3321_v47, %v620_v14  ;;  %v2423_v28 = vmul.f32 -1.442695, %v3377_v15  ;;  %v3397_v29 = vadd.f32 %v3321_v47, %v621_v18 }
  0xd1   : > { %2851 = vpow2.f32 %v2417_v34  ;;  %v920_v52 = vrot.slane %v2979_v0, 7  ;;  %v2424_v35 = vmul.f32 -1.442695, %v3383_v19  ;;  %v3402_v37 = vadd.f32 %v3321_v47, %v622_v22 }
  0xd2   : > { %2853 = vpow2.f32 %v2418_v9  ;;  %v2425_v39 = vmul.f32 -1.442695, %v3389_v23  ;;  %v2426_v43 = vmul.f32 -1.442695, %v3393_v48  ;;  %v2427_v44 = vmul.f32 -1.442695, %v3397_v29 }
  0xd3   : > { %2855 = vpow2.f32 %v2419_v38  ;;  %v2428_v0 = vmul.f32 -1.442695, %v3402_v37  ;;  %v1048_v32 = vsel %vm3405_vm7, 0, %v920_v52  ;;  %v623_v6 = vmul.f32 %v3122_v55, %v3307_v33 }
  0xd4   : > { %2857 = vpow2.f32 %v2420_v41  ;;  %v3417_v53 = vsel %vm393_vm3, %v1048_v32, %v1148_v8  ;;  %v624_v61 = vmul.f32 %v3127_v59, %v3307_v33  ;;  %v625_v31 = vmul.f32 %v3131_v62, %v3307_v33  ;;  %v2837_v8 = vld [vmem:[%s4352_s3] sm:$0xff]  }
  0xd5   : > { %2859 = vpow2.f32 %v2421_v45  ;;  %v3424_v5 = vadd.f32 %v3321_v47, %v623_v6  ;;  %v626_v9 = vmul.f32 %v3136_v4, %v3307_v33  ;;  %v633_v18 = vmul.f32 %v3167_v40, %v3307_v33  ;;  %2716 = vmatprep.subr.bf16.mxu1 %v2837_v8 }
  0xd6   : > { %2861 = vpow2.f32 %v2422_v25  ;;  %v634_v59 = vmul.f32 %v3172_v46, %v3307_v33  ;;  %v635_v22 = vmul.f32 %v3176_v50, %v3307_v33  ;;  %v636_v45 = vmul.f32 %v3181_v56, %v3307_v33  ;;  %2717 = vmatpush3.bf16.msra.mxu1 %v2837_v8 }
  0xd7   : > { %2863 = vpow2.f32 %v2423_v28  ;;  %v3437_v28 = vadd.f32 %v3321_v47, %v633_v18  ;;  %v627_v6 = vmul.f32 %v3140_v12, %v3307_v33  ;;  %v2836_v12 = vld [vmem:[%s4352_s3 + $0x14] ss:$0 sps:$4 sm:$0xff]  }
  0xd8   : > { %2865 = vpow2.f32 %v2424_v35  ;;  %v3440_v40 = vadd.f32 %v3321_v47, %v634_v59  ;;  %v3443_v35 = vadd.f32 %v3321_v47, %v635_v22  ;;  %v3446_v50 = vadd.f32 %v3321_v47, %v636_v45  ;;  %2820 = vmatprep.subr.msk.bf16.mxu0 %vm1381_vm4, %v2836_v12 }
  0xd9   : > { %2867 = vpow2.f32 %v2425_v39  ;;  %v1383_v18 = vsel %vm1381_vm4, %v2836_v12, 0  ;;  %v3481_v22 = vadd.f32 %v3321_v47, %v626_v9 }
  0xda   : > { %v2844_v7 = vpop.eup %2843  ;;  %2869 = vpow2.f32 %v2426_v43  ;;  %v3449_v43 = vadd.f32 %v3321_v47, %v624_v61  ;;  %v1196_v61 = vpop.permute.xlu1 %1195  ;;  %2679 = vmatpush3.bf16.msra.mxu0 %v1383_v18 }
  0xdb   : > { %v2846_v27 = vpop.eup %2845  ;;  %v773_v51 = vadd.f32 1.0, %v2844_v7  ;;  %2871 = vpow2.f32 %v2427_v44  ;;  %v3452_v44 = vadd.f32 %v3321_v47, %v625_v31  ;;  %v628_v7 = vmul.f32 %v3145_v16, %v3307_v33 }
  0xdc   : > { %v2848_v54 = vpop.eup %2847  ;;  %v774_v57 = vadd.f32 1.0, %v2846_v27  ;;  %2873 = vpow2.f32 %v2428_v0  ;;  %v3478_v59 = vsel %vm1275_vm8, %v3417_v53, %v1196_v61  ;;  %v2838_v53 = vld [vmem:[%s4352_s3 + $0xc] sm:$0xff]  }
  0xdd   : > { %v2850_v34 = vpop.eup %2849  ;;  %2875 = vrcp.f32 %v773_v51  ;;  %v775_v55 = vadd.f32 1.0, %v2848_v54  ;;  %v637_v54 = vmul.f32 %v3185_v60, %v3307_v33  ;;  %2718 = vmatprep.mubr.msk.bf16.mxu1 %vm1348_vm9, %v3478_v59  ;;  %v3496_v8 = vadd.f32 %v3321_v47, %v628_v7  ;;  %2680 = vmatprep.subr.bf16.mxu0 %v2838_v53 }
  0xde   : > { %v2852_v14 = vpop.eup %2851  ;;  %2877 = vrcp.f32 %v774_v57  ;;  %v776_v38 = vadd.f32 1.0, %v2850_v34  ;;  %v638_v57 = vmul.f32 %v3189_v1, %v3307_v33  ;;  %2681 = vmatpush3.bf16.msra.mxu0 %v2838_v53 }
  0xdf   : > { %v2854_v41 = vpop.eup %2853  ;;  %2879 = vrcp.f32 %v775_v55  ;;  %v777_v62 = vadd.f32 1.0, %v2852_v14  ;;  %v3469_v14 = vadd.f32 %v3321_v47, %v637_v54  ;;  %v2432_v54 = vmul.f32 -1.442695, %v3481_v22 }
  0xe0   : > { %v2856_v25 = vpop.eup %2855  ;;  %2881 = vrcp.f32 %v776_v38  ;;  %v778_v4 = vadd.f32 1.0, %v2854_v41  ;;  %v3472_v60 = vadd.f32 %v3321_v47, %v638_v57  ;;  %v630_v57 = vmul.f32 %v3154_v26, %v3307_v33 }
  0xe1   : > { %v2858_v52 = vpop.eup %2857  ;;  %2883 = vrcp.f32 %v777_v62  ;;  %v779_v46 = vadd.f32 1.0, %v2856_v25  ;;  %v632_v26 = vmul.f32 %v3163_v36, %v3307_v33 }
  0xe2   : > { %v2860_v39 = vpop.eup %2859  ;;  %2885 = vrcp.f32 %v778_v4  ;;  %v780_v56 = vadd.f32 1.0, %v2858_v52  ;;  %v2429_v4 = vmul.f32 -1.442695, %v3424_v5  ;;  %v3487_v52 = vadd.f32 %v3321_v47, %v627_v6 }
  0xe3   : > { %v2862_v0 = vpop.eup %2861  ;;  %2887 = vrcp.f32 %v779_v46  ;;  %v781_v32 = vadd.f32 1.0, %v2860_v39  ;;  %v2430_v39 = vmul.f32 -1.442695, %v3449_v43  ;;  %v629_v6 = vmul.f32 %v3149_v21, %v3307_v33 }
  0xe4   : > { %v2864_v27 = vpop.eup %2863  ;;  %2889 = vrcp.f32 %v780_v56  ;;  %v782_v51 = vadd.f32 1.0, %v2862_v0  ;;  %v2431_v56 = vmul.f32 -1.442695, %v3452_v44  ;;  %v3506_v7 = vmul.f32 -1.442695, %v3487_v52 }
  0xe5   : > { %v2866_v31 = vpop.eup %2865  ;;  %2891 = vrcp.f32 %v781_v32  ;;  %v783_v16 = vadd.f32 1.0, %v2864_v27  ;;  %v631_v21 = vmul.f32 %v3158_v30, %v3307_v33  ;;  %v3523_v30 = vadd.f32 %v3321_v47, %v629_v6 }
  0xe6   : > { %v2868_v34 = vpop.eup %2867  ;;  %2893 = vrcp.f32 %v782_v51  ;;  %v784_v55 = vadd.f32 1.0, %v2866_v31  ;;  %v3548_v53 = vadd.f32 %v3321_v47, %v632_v26 }
  0xe7   : > { %v2870_v1 = vpop.eup %2869  ;;  %2895 = vrcp.f32 %v783_v16  ;;  %v785_v38 = vadd.f32 1.0, %v2868_v34 }
  0xe8   : > { %v2872_v41 = vpop.eup %2871  ;;  %2897 = vrcp.f32 %v784_v55  ;;  %v786_v62 = vadd.f32 1.0, %v2870_v1  ;;  %v3520_v55 = vmul.f32 -1.442695, %v3496_v8 }
  0xe9   : > { %v2874_v45 = vpop.eup %2873  ;;  %2899 = vrcp.f32 %v785_v38  ;;  %v787_v25 = vadd.f32 1.0, %v2872_v41  ;;  %v3535_v41 = vadd.f32 %v3321_v47, %v630_v57 }
  0xea   : > { %v2876_v46 = vpop.eup %2875  ;;  %2901 = vrcp.f32 %v786_v62  ;;  %v788_v9 = vadd.f32 1.0, %v2874_v45 }
  0xeb   : > { %v2878_v0 = vpop.eup %2877  ;;  %v869_v32 = vmul.f32 %v2876_v46, %v3330_v49  ;;  %2903 = vrcp.f32 %v787_v25 }
  0xec   : > { %v2880_v27 = vpop.eup %2879  ;;  %v870_v51 = vmul.f32 %v2878_v0, %v3333_v10  ;;  %2905 = vrcp.f32 %v788_v9 }
  0xed   : > { %v2882_v61 = vpop.eup %2881  ;;  %v871_v49 = vmul.f32 %v2880_v27, %v3336_v11  ;;  %2907 = vpow2.f32 %v2429_v4  ;;  %v2839_v11 = vld [vmem:[%s4352_s3 + $0x20] ss:$0 sps:$4 sm:$0xff]  }
  0xee   : > { %v2884_v12 = vpop.eup %2883  ;;  %v3510_v31 = vpack.c.bf16 %v870_v51, %v869_v32  ;;  %v872_v10 = vmul.f32 %v2882_v61, %v3339_v17  ;;  %2909 = vpow2.f32 %v2430_v39  ;;  %2822 = vmatprep.subr.msk.bf16.mxu0 %vm1381_vm4, %v2839_v11  ;;  %v3538_v62 = vsel %vm1381_vm4, %v2839_v11, 0 }
  0xef   : > { %v2886_v16 = vpop.eup %2885  ;;  %v873_v34 = vmul.f32 %v2884_v12, %v3342_v20  ;;  %2911 = vpow2.f32 %v2431_v56 }
  0xf0   : > { %v2888_v1 = vpop.eup %2887  ;;  %1149 = vrot.lane.b32.xlu0 %v3510_v31, %s2980_s29  ;;  %v3527_v17 = vpack.c.bf16 %v872_v10, %v871_v49  ;;  %v925_v36 = vshrl.u32 %v3510_v31, 16  ;;  %v928_v33 = vshll.u32 %v3510_v31, 16  ;;  %v874_v38 = vmul.f32 %v2886_v16, %v3345_v24 }
  0xf1   : > { %v2890_v20 = vpop.eup %2889  ;;  %v875_v18 = vmul.f32 %v2888_v1, %v3355_v58  ;;  %2913 = vpow2.f32 %v2432_v54  ;;  %v3545_v24 = vadd.f32 %v3321_v47, %v631_v21  ;;  %v3559_v47 = vmul.f32 -1.442695, %v3523_v30 }
  0xf2   : > { %v2892_v45 = vpop.eup %2891  ;;  %v1066_v25 = vrot.slane %v928_v33, 1  ;;  %v3542_v4 = vpack.c.bf16 %v874_v38, %v873_v34  ;;  %v932_v46 = vshrl.u32 %v3527_v17, 16  ;;  %v935_v9 = vshll.u32 %v3527_v17, 16 }
  0xf3   : > { %v2894_v58 = vpop.eup %2893  ;;  %v876_v39 = vmul.f32 %v2890_v20, %v3359_v63  ;;  %v877_v56 = vmul.f32 %v2892_v45, %v3365_v3  ;;  %v3573_v10 = vmul.f32 -1.442695, %v3535_v41  ;;  %2915 = vpow2.f32 %v3506_v7 }
  0xf4   : > { %v2896_v0 = vpop.eup %2895  ;;  %1151 = vrot.lane.b32.xlu0 %v3527_v17, %s2980_s29  ;;  %v1067_v32 = vor.u32 %v1066_v25, %v925_v36  ;;  %v939_v6 = vshrl.u32 %v3542_v4, 16  ;;  %v942_v27 = vshll.u32 %v3542_v4, 16  ;;  %v1068_v54 = vrot.slane %v935_v9, 1 }
  0xf5   : > { %v2898_v51 = vpop.eup %2897  ;;  %v3563_v57 = vpack.c.bf16 %v876_v39, %v875_v18  ;;  %v878_v63 = vmul.f32 %v2894_v58, %v3371_v13  ;;  %v879_v3 = vmul.f32 %v2896_v0, %v3377_v15  ;;  %v3591_v58 = vmul.f32 -1.442695, %v3545_v24 }
  0xf6   : > { %v2900_v61 = vpop.eup %2899  ;;  %v1116_v49 = vsel %vm3038_vm2, %v1067_v32, 0  ;;  %v1070_v21 = vrot.slane %v942_v27, 1  ;;  %v880_v12 = vmul.f32 %v2898_v51, %v3383_v19  ;;  %v1069_v11 = vor.u32 %v1068_v54, %v932_v46 }
  0xf7   : > { %v2902_v26 = vpop.eup %2901  ;;  %1197 = vrot.lane.b32.xlu1 %v1116_v49, %s2981_s30  ;;  %v3576_v16 = vpack.c.bf16 %v878_v63, %v877_v56  ;;  %v946_v13 = vshrl.u32 %v3563_v57, 16  ;;  %v4358_v15 = vshll.u32 %v3563_v57, 16  ;;  %v881_v19 = vmul.f32 %v2900_v61, %v3389_v23 }
  0xf8   : > { %v2904_v34 = vpop.eup %2903  ;;  %1153 = vrot.lane.b32.xlu0 %v3542_v4, %s2980_s29  ;;  %v1071_v1 = vor.u32 %v1070_v21, %v939_v6  ;;  %v3582_v38 = vpack.c.bf16 %v880_v12, %v879_v3  ;;  %v882_v20 = vmul.f32 %v2902_v26, %v3393_v48  ;;  %v1117_v45 = vsel %vm3038_vm2, %v1069_v11, 0 }
  0xf9   : > { %v2906_v18 = vpop.eup %2905  ;;  %v1072_v25 = vrot.slane %v4358_v15, 1  ;;  %v3594_v39 = vmul.f32 -1.442695, %v3548_v53  ;;  %v953_v23 = vshrl.u32 %v3576_v16, 16  ;;  %v4359_v48 = vshll.u32 %v3576_v16, 16 }
  0xfa   : > { %v2908_v56 = vpop.eup %2907  ;;  %v1118_v0 = vsel %vm3038_vm2, %v1071_v1, 0  ;;  %v3600_v32 = vpack.c.bf16 %v882_v20, %v881_v19  ;;  %v927_v54 = vrot.slane %v925_v36, 7  ;;  %v963_v63 = vshll.u32 %v3582_v38, 16 }
  0xfb   : > { %v2910_v51 = vpop.eup %2909  ;;  %1199 = vrot.lane.b32.xlu1 %v1117_v45, %s2981_s30  ;;  %v3606_v3 = vmul.f32 -1.442695, %v3437_v28  ;;  %v934_v49 = vrot.slane %v932_v46, 7  ;;  %v1073_v21 = vor.u32 %v1072_v25, %v946_v13  ;;  %v1074_v12 = vrot.slane %v4359_v48, 1 }
  0xfc   : > { %v2912_v61 = vpop.eup %2911  ;;  %1201 = vrot.lane.b32.xlu0 %v1118_v0, %s2981_s30  ;;  %v883_v26 = vmul.f32 %v2904_v34, %v3397_v29  ;;  %v941_v36 = vrot.slane %v939_v6, 7  ;;  %v970_v11 = vshll.u32 %v3600_v32, 16  ;;  %v884_v1 = vmul.f32 %v2906_v18, %v3402_v37 }
  0xfd   : > { %v789_v19 = vadd.f32 1.0, %v2908_v56  ;;  %v948_v20 = vrot.slane %v946_v13, 7  ;;  %v1075_v45 = vor.u32 %v1074_v12, %v953_v23  ;;  %v960_v15 = vshrl.u32 %v3582_v38, 16 }
  0xfe   : > { %v2914_v7 = vpop.eup %2913  ;;  %v790_v46 = vadd.f32 1.0, %v2910_v51  ;;  %v955_v25 = vrot.slane %v953_v23, 7  ;;  %v1076_v0 = vrot.slane %v963_v63, 1  ;;  %v791_v48 = vadd.f32 1.0, %v2912_v61 }
  0xff   : > { %1155 = vrot.lane.b32.xlu1 %v3563_v57, %s2980_s29  ;;  %2917 = vrcp.f32 %v789_v19  ;;  %v1119_v29 = vsel %vm3038_vm2, %v1073_v21, 0  ;;  %v908_v37 = vpack.c.bf16 %v884_v1, %v883_v26  ;;  %v792_v6 = vadd.f32 1.0, %v2914_v7 }
 0x100   : > { %1157 = vrot.lane.b32.xlu0 %v3576_v16, %s2980_s29  ;;  %2919 = vrcp.f32 %v790_v46  ;;  %v1120_v13 = vsel %vm3038_vm2, %v1075_v45, 0  ;;  %v967_v34 = vshrl.u32 %v3600_v32, 16  ;;  %v1078_v18 = vrot.slane %v970_v11, 1 }
 0x101   : > { %2921 = vrcp.f32 %v791_v48  ;;  %v962_v56 = vrot.slane %v960_v15, 7  ;;  %v974_v23 = vshrl.u32 %v908_v37, 16  ;;  %v3626_v51 = vor.u32 %v928_v33, %v927_v54  ;;  %v2017_v48 = vld [vmem:[%s4355_s6] sm:$0x3] }
 0x102   : > { %2923 = vrcp.f32 %v792_v6  ;;  %v1077_v61 = vor.u32 %v1076_v0, %v960_v15  ;;  %v969_v21 = vrot.slane %v967_v34, 7  ;;  %v3632_v12 = vor.u32 %v935_v9, %v934_v49  ;;  %2823 = vmatprep.subr.msk.bf16.mxu1 %vm2067_vm10, %v2017_v48 }
 0x103   : > { %1203 = vrot.lane.b32.xlu1 %v1119_v29, %s2981_s30  ;;  %2925 = vpow2.f32 %v3520_v55  ;;  %v976_v26 = vrot.slane %v974_v23, 7  ;;  %v977_v31 = vshll.u32 %v908_v37, 16  ;;  %v3640_v33 = vor.u32 %v942_v27, %v941_v36  ;;  %v2916_v36 = vpop.eup %2915 }
 0x104   : > { %1205 = vrot.lane.b32.xlu0 %v1120_v13, %s2981_s30  ;;  %v4364_v15 = vshll.u32 %v3563_v57, 16  ;;  %v1079_v55 = vor.u32 %v1078_v18, %v967_v34  ;;  %2927 = vpow2.f32 %v3559_v47  ;;  %v2440_v17 = vmul.f32 -1.442695, %v3440_v40 }
 0x105   : > { %2929 = vpow2.f32 %v3573_v10  ;;  %v2441_v9 = vmul.f32 -1.442695, %v3443_v35  ;;  %v2442_v49 = vmul.f32 -1.442695, %v3446_v50  ;;  %v3651_v4 = vsel %vm2067_vm10, %v2017_v48, 0 }
 0x106   : > { %v3644_v54 = vor.u32 %v4364_v15, %v948_v20  ;;  %v1121_v27 = vsel %vm3038_vm2, %v1077_v61, 0  ;;  %2931 = vpow2.f32 %v3591_v58  ;;  %v4365_v47 = vshll.u32 %v3576_v16, 16 }
 0x107   : > { %1159 = vrot.lane.b32.xlu1 %v3582_v38, %s2980_s29  ;;  %v3662_v10 = vor.u32 %v963_v63, %v962_v56  ;;  %v1080_v1 = vrot.slane %v977_v31, 1  ;;  %2933 = vpow2.f32 %v3594_v39  ;;  %v3667_v19 = vor.u32 %v970_v11, %v969_v21 }
 0x108   : > { %v3660_v57 = vor.u32 %v4365_v47, %v955_v25  ;;  %1161 = vrot.lane.b32.xlu0 %v3600_v32, %s2980_s29  ;;  %v3669_v38 = vor.u32 %v977_v31, %v976_v26  ;;  %v1122_v58 = vsel %vm3038_vm2, %v1079_v55, 0  ;;  %2935 = vpow2.f32 %v3606_v3 }
 0x109   : > { %v2443_v16 = vmul.f32 -1.442695, %v3469_v14  ;;  %2937 = vpow2.f32 %v2440_v17  ;;  %v2444_v63 = vmul.f32 -1.442695, %v3472_v60  ;;  %v793_v32 = vadd.f32 1.0, %v2916_v36 }
 0x10a   : > { %2939 = vpow2.f32 %v2441_v9  ;;  %v1081_v39 = vor.u32 %v1080_v1, %v974_v23  ;;  %v1051_v2 = vsel %vm3405_vm7, 0, %v3640_v33 }
 0x10b   : > { %1207 = vrot.lane.b32.xlu1 %v1121_v27, %s2981_s30  ;;  %2941 = vpow2.f32 %v2442_v49 }
 0x10c   : > { %v2918_v7 = vpop.eup %2917  ;;  %1209 = vrot.lane.b32.xlu0 %v1122_v58, %s2981_s30  ;;  %2943 = vpow2.f32 %v2443_v16  ;;  %v1123_v6 = vsel %vm3038_vm2, %v1081_v39, 0 }
 0x10d   : > { %v2920_v11 = vpop.eup %2919  ;;  %v885_v20 = vmul.f32 %v2918_v7, %v3424_v5  ;;  %2945 = vpow2.f32 %v2444_v63 }
 0x10e   : > { %v2922_v45 = vpop.eup %2921  ;;  %v886_v3 = vmul.f32 %v2920_v11, %v3449_v43  ;;  %2947 = vrcp.f32 %v793_v32 }
 0x10f   : > { %v2924_v46 = vpop.eup %2923  ;;  %1163 = vrot.lane.b32.xlu1 %v908_v37, %s2980_s29  ;;  %v887_v25 = vmul.f32 %v2922_v45, %v3452_v44 }
 0x110   : > { %v2926_v0 = vpop.eup %2925  ;;  %v909_v29 = vpack.c.bf16 %v886_v3, %v885_v20  ;;  %v888_v13 = vmul.f32 %v2924_v46, %v3481_v22 }
 0x111   : > { %v794_v34 = vadd.f32 1.0, %v2926_v0  ;;  %v2928_v5 = vpop.eup %2927 }
 0x112   : > { %1165 = vrot.lane.b32.xlu0 %v909_v29, %s2980_s29  ;;  %v981_v18 = vshrl.u32 %v909_v29, 16  ;;  %v984_v43 = vshll.u32 %v909_v29, 16  ;;  %v910_v56 = vpack.c.bf16 %v888_v13, %v887_v25  ;;  %v2930_v23 = vpop.eup %2929  ;;  %v795_v44 = vadd.f32 1.0, %v2928_v5 }
 0x113   : > { %1211 = vrot.lane.b32.xlu1 %v1123_v6, %s2981_s30  ;;  %2949 = vrcp.f32 %v794_v34  ;;  %v2932_v37 = vpop.eup %2931  ;;  %v796_v15 = vadd.f32 1.0, %v2930_v23 }
 0x114   : > { %v983_v61 = vrot.slane %v981_v18, 7  ;;  %v1082_v21 = vrot.slane %v984_v43, 1  ;;  %v988_v48 = vshrl.u32 %v910_v56, 16  ;;  %v991_v26 = vshll.u32 %v910_v56, 16  ;;  %v2934_v31 = vpop.eup %2933 }
 0x115   : > { %2951 = vrcp.f32 %v795_v44  ;;  %v797_v22 = vadd.f32 1.0, %v2932_v37  ;;  %v2936_v55 = vpop.eup %2935  ;;  %v798_v27 = vadd.f32 1.0, %v2934_v31 }
 0x116   : > { %v1083_v17 = vor.u32 %v1082_v21, %v981_v18  ;;  %v990_v9 = vrot.slane %v988_v48, 7  ;;  %v1084_v49 = vrot.slane %v991_v26, 1  ;;  %v2938_v47 = vpop.eup %2937  ;;  %2953 = vrcp.f32 %v796_v15 }
 0x117   : > { %1167 = vrot.lane.b32.xlu1 %v910_v56, %s2980_s29  ;;  %v799_v36 = vadd.f32 1.0, %v2936_v55  ;;  %v3688_v1 = vor.u32 %v984_v43, %v983_v61  ;;  %v2940_v58 = vpop.eup %2939  ;;  %2955 = vrcp.f32 %v797_v22  ;;  %v800_v32 = vadd.f32 1.0, %v2938_v47 }
 0x118   : > { %v1124_v16 = vsel %vm3038_vm2, %v1083_v17, 0  ;;  %v1085_v63 = vor.u32 %v1084_v49, %v988_v48  ;;  %v2942_v7 = vpop.eup %2941  ;;  %2957 = vrcp.f32 %v798_v27  ;;  %v801_v39 = vadd.f32 1.0, %v2940_v58 }
 0x119   : > { %1213 = vrot.lane.b32.xlu0 %v1124_v16, %s2981_s30  ;;  %v3693_v11 = vor.u32 %v991_v26, %v990_v9  ;;  %v2944_v20 = vpop.eup %2943  ;;  %2959 = vrcp.f32 %v799_v36  ;;  %v802_v3 = vadd.f32 1.0, %v2942_v7 }
 0x11a   : > { %v1125_v45 = vsel %vm3038_vm2, %v1085_v63, 0  ;;  %v2946_v46 = vpop.eup %2945  ;;  %2961 = vrcp.f32 %v800_v32  ;;  %v803_v25 = vadd.f32 1.0, %v2944_v20 }
 0x11b   : > { %1215 = vrot.lane.b32.xlu1 %v1125_v45, %s2981_s30  ;;  %v2948_v0 = vpop.eup %2947  ;;  %2963 = vrcp.f32 %v801_v39  ;;  %v804_v29 = vadd.f32 1.0, %v2946_v46 }
 0x11c   : > { %2965 = vrcp.f32 %v802_v3  ;;  %v889_v6 = vmul.f32 %v2948_v0, %v3487_v52 }
 0x11d   : > { %2967 = vrcp.f32 %v803_v25 }
 0x11e   : > { %2969 = vrcp.f32 %v804_v29 }
 0x120   : > { %v2950_v13 = vpop.eup %2949 }
 0x121   : > { %v890_v34 = vmul.f32 %v2950_v13, %v3496_v8 }
 0x122   : > { %v2952_v5 = vpop.eup %2951 }
 0x123   : > { %v911_v18 = vpack.c.bf16 %v890_v34, %v889_v6  ;;  %v891_v43 = vmul.f32 %v2952_v5, %v3523_v30  ;;  %v2954_v56 = vpop.eup %2953 }
 0x124   : > { %v2956_v23 = vpop.eup %2955  ;;  %v892_v61 = vmul.f32 %v2954_v56, %v3535_v41 }
 0x125   : > { %1169 = vrot.lane.b32.xlu0 %v911_v18, %s2980_s29  ;;  %v995_v44 = vshrl.u32 %v911_v18, 16  ;;  %v998_v37 = vshll.u32 %v911_v18, 16  ;;  %v2958_v21 = vpop.eup %2957  ;;  %v893_v48 = vmul.f32 %v2956_v23, %v3545_v24 }
 0x126   : > { %v2960_v52 = vpop.eup %2959  ;;  %v912_v15 = vpack.c.bf16 %v892_v61, %v891_v43  ;;  %v894_v8 = vmul.f32 %v2958_v21, %v3548_v53 }
 0x127   : > { %v997_v26 = vrot.slane %v995_v44, 7  ;;  %v1086_v31 = vrot.slane %v998_v37, 1  ;;  %v2962_v22 = vpop.eup %2961  ;;  %v895_v30 = vmul.f32 %v2960_v52, %v3437_v28 }
 0x128   : > { %v2964_v55 = vpop.eup %2963  ;;  %1171 = vrot.lane.b32.xlu1 %v912_v15, %s2980_s29  ;;  %v913_v9 = vpack.c.bf16 %v894_v8, %v893_v48  ;;  %v1002_v49 = vshrl.u32 %v912_v15, 16  ;;  %v1005_v27 = vshll.u32 %v912_v15, 16  ;;  %v896_v47 = vmul.f32 %v2962_v22, %v3440_v40 }
 0x129   : > { %v1087_v17 = vor.u32 %v1086_v31, %v995_v44  ;;  %v2966_v41 = vpop.eup %2965  ;;  %v897_v24 = vmul.f32 %v2964_v55, %v3443_v35  ;;  %v3709_v36 = vor.u32 %v998_v37, %v997_v26 }
 0x12a   : > { %v2968_v58 = vpop.eup %2967  ;;  %v1004_v16 = vrot.slane %v1002_v49, 7  ;;  %v1088_v28 = vrot.slane %v1005_v27, 1  ;;  %v1009_v63 = vshrl.u32 %v913_v9, 16  ;;  %v1012_v7 = vshll.u32 %v913_v9, 16 }
 0x12b   : > { %v1126_v53 = vsel %vm3038_vm2, %v1087_v17, 0  ;;  %v2970_v32 = vpop.eup %2969  ;;  %v914_v39 = vpack.c.bf16 %v896_v47, %v895_v30  ;;  %v898_v20 = vmul.f32 %v2966_v41, %v3446_v50  ;;  %v899_v40 = vmul.f32 %v2968_v58, %v3469_v14 }
 0x12c   : > { %1217 = vrot.lane.b32.xlu0 %v1126_v53, %s2981_s30  ;;  %v1089_v45 = vor.u32 %v1088_v28, %v1002_v49  ;;  %v1011_v35 = vrot.slane %v1009_v63, 7  ;;  %v900_v3 = vmul.f32 %v2970_v32, %v3472_v60  ;;  %v1090_v46 = vrot.slane %v1012_v7, 1 }
 0x12d   : > { %v1016_v25 = vshrl.u32 %v914_v39, 16  ;;  %v1019_v0 = vshll.u32 %v914_v39, 16  ;;  %v915_v29 = vpack.c.bf16 %v898_v20, %v897_v24  ;;  %v3719_v34 = vor.u32 %v1005_v27, %v1004_v16 }
 0x12e   : > { %v1127_v6 = vsel %vm3038_vm2, %v1089_v45, 0  ;;  %v916_v13 = vpack.c.bf16 %v900_v3, %v899_v40  ;;  %v3721_v5 = vor.u32 %v1012_v7, %v1011_v35  ;;  %v1091_v50 = vor.u32 %v1090_v46, %v1009_v63 }
 0x12f   : > { %1219 = vrot.lane.b32.xlu1 %v1127_v6, %s2981_s30  ;;  %v1018_v14 = vrot.slane %v1016_v25, 7  ;;  %v1092_v18 = vrot.slane %v1019_v0, 1  ;;  %v1023_v60 = vshrl.u32 %v915_v29, 16  ;;  %v1026_v43 = vshll.u32 %v915_v29, 16 }
 0x130   : > { %1173 = vrot.lane.b32.xlu0 %v913_v9, %s2980_s29  ;;  %v1312_v56 = vshrl.u32 %v916_v13, 16  ;;  %v1315_v23 = vshll.u32 %v916_v13, 16  ;;  %v1128_v44 = vsel %vm3038_vm2, %v1091_v50, 0  ;;  %v1049_v49 = vsel %vm3405_vm7, 0, %v3626_v51 }
 0x131   : > { %v1093_v37 = vor.u32 %v1092_v18, %v1016_v25  ;;  %v1025_v61 = vrot.slane %v1023_v60, 7  ;;  %v1094_v21 = vrot.slane %v1026_v43, 1  ;;  %v3727_v52 = vor.u32 %v1019_v0, %v1018_v14 }
 0x132   : > { %v1314_v48 = vrot.slane %v1312_v56, 7  ;;  %v1320_v8 = vrot.slane %v1315_v23, 1  ;;  %v1050_v47 = vsel %vm3405_vm7, 0, %v3632_v12  ;;  %v2840_v12 = vld [vmem:[%s4352_s3 + $0x18] sm:$0xff]   ;;  %v1053_v7 = vsel %vm3405_vm7, 0, %v3660_v57 }
 0x133   : > { %1175 = vrot.lane.b32.xlu1 %v914_v39, %s2980_s29  ;;  %v3731_v26 = vor.u32 %v1026_v43, %v1025_v61  ;;  %v1129_v31 = vsel %vm3038_vm2, %v1093_v37, 0  ;;  %v1095_v15 = vor.u32 %v1094_v21, %v1023_v60  ;;  %v1052_v39 = vsel %vm3405_vm7, 0, %v3644_v54 }
 0x134   : > { %1221 = vrot.lane.b32.xlu0 %v1128_v44, %s2981_s30  ;;  %v3735_v22 = vor.u32 %v1315_v23, %v1314_v48  ;;  %v1321_v55 = vor.u32 %v1320_v8, %v1312_v56  ;;  %v1055_v46 = vsel %vm3405_vm7, 0, %v3667_v19  ;;  %v1054_v25 = vsel %vm3405_vm7, 0, %v3662_v10 }
 0x135   : > { %v1130_v30 = vsel %vm3038_vm2, %v1095_v15, 0  ;;  %v1056_v18 = vsel %vm3405_vm7, 0, %v3669_v38  ;;  %v1057_v23 = vsel %vm3405_vm7, 0, %v3688_v1  ;;  %v1058_v61 = vsel %vm3405_vm7, 0, %v3693_v11 }
 0x136   : > { %v1323_v17 = vsel %vm3038_vm2, %v1321_v55, 0  ;;  %v1059_v8 = vsel %vm3405_vm7, 0, %v3709_v36  ;;  %v1061_v36 = vsel %vm3405_vm7, 0, %v3721_v5 }
 0x137   : > { %1223 = vrot.lane.b32.xlu1 %v1129_v31, %s2981_s30 }
 0x138   : > { %1177 = vrot.lane.b32.xlu0 %v915_v29, %s2980_s29 }
 0x13b   : > { %1225 = vrot.lane.b32.xlu1 %v1130_v30, %s2981_s30 }
 0x13c   : > { %1325 = vrot.lane.b32.xlu0 %v916_v13, %s2980_s29 }
 0x13f   : > { %1328 = vrot.lane.b32.xlu1 %v1323_v17, %s2981_s30 }
 0x162   : > { %v1150_v9 = vpop.permute.xlu0 %1149 }
 0x163   : > { %v1232_v41 = vsel %vm393_vm3, %v1049_v49, %v1150_v9  ;;  %v1060_v49 = vsel %vm3405_vm7, 0, %v3719_v34 }
 0x166   : > { %v1152_v27 = vpop.permute.xlu0 %1151 }
 0x167   : > { %v1235_v16 = vsel %vm393_vm3, %v1050_v47, %v1152_v27 }
 0x169   : > { %v1198_v24 = vpop.permute.xlu1 %1197 }
 0x16a   : > { %v1279_v58 = vsel %vm1275_vm8, %v1232_v41, %v1198_v24  ;;  %v1154_v53 = vpop.permute.xlu0 %1153 }
 0x16b   : > { %2682 = vmatprep.mubr.msk.bf16.mxu0 %vm1348_vm9, %v1279_v58  ;;  %2719 = vmatmul.mubr.msk.bf16.vlgmr.msra.gmra.mxu1 %vm1348_vm9, %v1279_v58  ;;  %v1238_v51 = vsel %vm393_vm3, %v1051_v2, %v1154_v53  ;;  %v1062_v53 = vsel %vm3405_vm7, 0, %v3727_v52 }
 0x16c   : > { %2787 = vmatpush3.bf16.msra.mxu1 %v3651_v4 }
 0x16d   : > { %v1200_v28 = vpop.permute.xlu1 %1199 }
 0x16e   : > { %v3766_v33 = vsel %vm1275_vm8, %v1235_v16, %v1200_v28  ;;  %v1202_v63 = vpop.permute.xlu0 %1201  ;;  %v1063_v16 = vsel %vm3405_vm7, 0, %v3731_v26 }
 0x16f   : > { %2683 = vmatmul.mubr.msk.bf16.vlgmr.msra.gmra.mxu0 %vm1348_vm9, %v3766_v33  ;;  %2722 = vmatprep.mubr.msk.bf16.mxu1 %vm1348_vm9, %v3766_v33  ;;  %v3773_v32 = vsel %vm1275_vm8, %v1238_v51, %v1202_v63  ;;  %v1969_v63 = vld [vmem:[%s3889_s14] sm:$0xff] }
 0x170   : > { %2751 = vmatpush3.bf16.msra.mxu0 %v3538_v62  ;;  %2686 = vmatprep.mubr.msk.bf16.mxu0 %vm1348_vm9, %v3773_v32 }
 0x171   : > { %v1156_v4 = vpop.permute.xlu1 %1155  ;;  %2752 = vmatprep.subr.bf16.mxu0 %v2840_v12 }
 0x172   : > { %v1158_v20 = vpop.permute.xlu0 %1157  ;;  %v1241_v62 = vsel %vm393_vm3, %v1052_v39, %v1156_v4  ;;  %v1970_v4 = vld [vmem:[%s3889_s14 + $0x8] sm:$0xff] }
 0x173   : > { %2723 = vmatmul.mubr.msk.bf16.gmra.mxu1 %vm1348_vm9, %v3773_v32  ;;  %v1244_v40 = vsel %vm393_vm3, %v1053_v7, %v1158_v20  ;;  %v1319_v7 = vsel %vm3405_vm7, 0, %v3735_v22  ;;  %v2001_v39 = vpack.c.bf16 %v1970_v4, %v1969_v63  ;;  %v1972_v22 = vld [vmem:[%s3889_s14 + $0x18] sm:$0xff] }
 0x174   : > { %2753 = vmatpush3.bf16.msra.mxu0 %v2840_v12 }
 0x175   : > { %v1204_v45 = vpop.permute.xlu1 %1203 }
 0x176   : > { %v3789_v35 = vsel %vm1275_vm8, %v1241_v62, %v1204_v45  ;;  %v1206_v3 = vpop.permute.xlu0 %1205 }
 0x177   : > { %2687 = vmatmul.mubr.msk.bf16.gmra.mxu0 %vm1348_vm9, %v3789_v35  ;;  %2726 = vmatprep.mubr.msk.bf16.mxu1 %vm1348_vm9, %v3789_v35  ;;  %v3796_v54 = vsel %vm1275_vm8, %v1244_v40, %v1206_v3 }
 0x178   : > { %2690 = vmatprep.mubr.msk.bf16.mxu0 %vm1348_vm9, %v3796_v54 }
 0x179   : > { %v1160_v57 = vpop.permute.xlu1 %1159 }
 0x17a   : > { %v1162_v0 = vpop.permute.xlu0 %1161  ;;  %v1247_v6 = vsel %vm393_vm3, %v1054_v25, %v1160_v57  ;;  %v1973_v57 = vld [vmem:[%s3889_s14 + $0x20] sm:$0xff] }
 0x17b   : > { %2727 = vmatmul.mubr.msk.bf16.gmra.mxu1 %vm1348_vm9, %v3796_v54  ;;  %v1250_v29 = vsel %vm393_vm3, %v1055_v46, %v1162_v0  ;;  %v1974_v46 = vld [vmem:[%s3889_s14 + $0x28] sm:$0xff]  ;;  %v2002_v0 = vpack.c.bf16 %v1972_v22, %v1971_v42 }
 0x17d   : > { %v1208_v13 = vpop.permute.xlu1 %1207 }
 0x17e   : > { %v3811_v50 = vsel %vm1275_vm8, %v1247_v6, %v1208_v13  ;;  %v1210_v14 = vpop.permute.xlu0 %1209  ;;  %v1975_v6 = vld [vmem:[%s3889_s14 + $0x30] sm:$0xff]  ;;  %v1976_v13 = vld [vmem:[%s3889_s14 + $0x38] sm:$0xff] }
 0x17f   : > { %2691 = vmatmul.mubr.msk.bf16.gmra.mxu0 %vm1348_vm9, %v3811_v50  ;;  %2730 = vmatprep.mubr.msk.bf16.mxu1 %vm1348_vm9, %v3811_v50  ;;  %v3818_v10 = vsel %vm1275_vm8, %v1250_v29, %v1210_v14  ;;  %v2003_v29 = vpack.c.bf16 %v1974_v46, %v1973_v57  ;;  %v1977_v14 = vld [vmem:[%s3889_s14 + $0x40] sm:$0xff] }
 0x180   : > { %2694 = vmatprep.mubr.msk.bf16.mxu0 %vm1348_vm9, %v3818_v10 }
 0x181   : > { %v1164_v19 = vpop.permute.xlu1 %1163 }
 0x182   : > { %v1253_v60 = vsel %vm393_vm3, %v1056_v18, %v1164_v19  ;;  %v1978_v19 = vld [vmem:[%s3889_s14 + $0x48] sm:$0xff]  ;;  %v2004_v18 = vpack.c.bf16 %v1976_v13, %v1975_v6 }
 0x183   : > { %2731 = vmatmul.mubr.msk.bf16.gmra.mxu1 %vm1348_vm9, %v3818_v10 }
 0x184   : > { %v1166_v43 = vpop.permute.xlu0 %1165 }
 0x185   : > { %v1212_v56 = vpop.permute.xlu1 %1211  ;;  %v1256_v38 = vsel %vm393_vm3, %v1057_v23, %v1166_v43  ;;  %v1980_v43 = vld [vmem:[%s3889_s14 + $0x58] sm:$0xff]  ;;  %v1982_v23 = vld [vmem:[%s3889_s14 + $0x68] sm:$0xff] }
 0x186   : > { %v3832_v44 = vsel %vm1275_vm8, %v1253_v60, %v1212_v56  ;;  %v1979_v60 = vld [vmem:[%s3889_s14 + $0x50] sm:$0xff]  ;;  %v1981_v56 = vld [vmem:[%s3889_s14 + $0x60] sm:$0xff] }
 0x187   : > { %2695 = vmatmul.mubr.msk.bf16.gmra.mxu0 %vm1348_vm9, %v3832_v44  ;;  %2734 = vmatprep.mubr.msk.bf16.mxu1 %vm1348_vm9, %v3832_v44 }
 0x189   : > { %v1168_v37 = vpop.permute.xlu1 %1167 }
 0x18a   : > { %v1259_v1 = vsel %vm393_vm3, %v1058_v61, %v1168_v37  ;;  %v1984_v37 = vld [vmem:[%s3889_s14 + $0x78] sm:$0xff]  ;;  %v1985_v61 = vld [vmem:[%s3889_s14 + $0x80] sm:$0xff] }
 0x18b   : > { %v1214_v21 = vpop.permute.xlu0 %1213 }
 0x18c   : > { %v3843_v48 = vsel %vm1275_vm8, %v1256_v38, %v1214_v21  ;;  %v1983_v38 = vld [vmem:[%s3889_s14 + $0x70] sm:$0xff]  ;;  %v1986_v21 = vld [vmem:[%s3889_s14 + $0x88] sm:$0xff] }
 0x18d   : > { %2698 = vmatprep.mubr.msk.bf16.mxu0 %vm1348_vm9, %v3843_v48  ;;  %2735 = vmatmul.mubr.msk.bf16.gmra.mxu1 %vm1348_vm9, %v3843_v48  ;;  %v1216_v31 = vpop.permute.xlu1 %1215 }
 0x18e   : > { %v3851_v15 = vsel %vm1275_vm8, %v1259_v1, %v1216_v31  ;;  %v1987_v1 = vld [vmem:[%s3889_s14 + $0x90] sm:$0xff]  ;;  %v1988_v31 = vld [vmem:[%s3889_s14 + $0x98] sm:$0xff] }
 0x18f   : > { %2699 = vmatmul.mubr.msk.bf16.gmra.mxu0 %vm1348_vm9, %v3851_v15  ;;  %2738 = vmatprep.mubr.msk.bf16.mxu1 %vm1348_vm9, %v3851_v15 }
 0x197   : > { %v1170_v11 = vpop.permute.xlu0 %1169 }
 0x198   : > { %v1262_v30 = vsel %vm393_vm3, %v1059_v8, %v1170_v11  ;;  %v1989_v11 = vld [vmem:[%s3889_s14 + $0xa0] sm:$0xff]  ;;  %v1990_v8 = vld [vmem:[%s3889_s14 + $0xa8] sm:$0xff] }
 0x19a   : > { %v1172_v55 = vpop.permute.xlu1 %1171 }
 0x19b   : > { %v1265_v27 = vsel %vm393_vm3, %v1060_v49, %v1172_v55  ;;  %v1992_v55 = vld [vmem:[%s3889_s14 + $0xb8] sm:$0xff]  ;;  %v1994_v49 = vld [vmem:[%s3889_s14 + $0xc8] sm:$0xff] }
 0x19e   : > { %v1218_v17 = vpop.permute.xlu0 %1217 }
 0x19f   : > { %v3862_v9 = vsel %vm1275_vm8, %v1262_v30, %v1218_v17  ;;  %v1991_v30 = vld [vmem:[%s3889_s14 + $0xb0] sm:$0xff]  ;;  %v1993_v17 = vld [vmem:[%s3889_s14 + $0xc0] sm:$0xff] }
 0x1a0   : > { %2702 = vmatprep.mubr.msk.bf16.mxu0 %vm1348_vm9, %v3862_v9  ;;  %2739 = vmatmul.mubr.msk.bf16.gmra.mxu1 %vm1348_vm9, %v3862_v9 }
 0x1a1   : > { %v1220_v47 = vpop.permute.xlu1 %1219 }
 0x1a2   : > { %v1174_v41 = vpop.permute.xlu0 %1173  ;;  %v3876_v24 = vsel %vm1275_vm8, %v1265_v27, %v1220_v47  ;;  %v1996_v27 = vld [vmem:[%s3889_s14 + $0xd8] sm:$0xff]  ;;  %v1998_v47 = vld [vmem:[%s3889_s14 + $0xe8] sm:$0xff] }
 0x1a3   : > { %v1268_v34 = vsel %vm393_vm3, %v1061_v36, %v1174_v41  ;;  %2703 = vmatmul.mubr.msk.bf16.gmra.mxu0 %vm1348_vm9, %v3876_v24  ;;  %2742 = vmatprep.mubr.msk.bf16.mxu1 %vm1348_vm9, %v3876_v24  ;;  %v1995_v36 = vld [vmem:[%s3889_s14 + $0xd0] sm:$0xff]  ;;  %v1997_v41 = vld [vmem:[%s3889_s14 + $0xe0] sm:$0xff] }
 0x1a5   : > { %v1176_v58 = vpop.permute.xlu1 %1175 }
 0x1a6   : > { %v1222_v2 = vpop.permute.xlu0 %1221  ;;  %v1271_v51 = vsel %vm393_vm3, %v1062_v53, %v1176_v58 }
 0x1a7   : > { %v3892_v5 = vsel %vm1275_vm8, %v1268_v34, %v1222_v2  ;;  %v2014_v34 = vpack.c.bf16 %v1996_v27, %v1995_v36  ;;  %v2000_v2 = vld [vmem:[%s3889_s14 + $0xf8] sm:$0xff] }
 0x1a8   : > { %2706 = vmatprep.mubr.msk.bf16.mxu0 %vm1348_vm9, %v3892_v5  ;;  %2743 = vmatmul.mubr.msk.bf16.gmra.mxu1 %vm1348_vm9, %v3892_v5 }
 0x1a9   : > { %v1224_v28 = vpop.permute.xlu1 %1223 }
 0x1aa   : > { %v1178_v12 = vpop.permute.xlu0 %1177  ;;  %v3908_v52 = vsel %vm1275_vm8, %v1271_v51, %v1224_v28 }
 0x1ab   : > { %2707 = vmatmul.mubr.msk.bf16.gmra.mxu0 %vm1348_vm9, %v3908_v52  ;;  %2746 = vmatprep.mubr.msk.bf16.mxu1 %vm1348_vm9, %v3908_v52  ;;  %v1274_v26 = vsel %vm393_vm3, %v1063_v16, %v1178_v12 }
 0x1ad   : > { %v1226_v20 = vpop.permute.xlu1 %1225 }
 0x1ae   : > { %v1326_v40 = vpop.permute.xlu0 %1325  ;;  %v3919_v62 = vsel %vm1275_vm8, %v1274_v26, %v1226_v20 }
 0x1af   : > { %2710 = vmatprep.mubr.msk.bf16.mxu0 %vm1348_vm9, %v3919_v62  ;;  %v1332_v45 = vsel %vm393_vm3, %v1319_v7, %v1326_v40 }
 0x1b0   : > { %2747 = vmatmul.mubr.msk.bf16.gmra.mxu1 %vm1348_vm9, %v3919_v62 }
 0x1b1   : > { %2788 = vmatprep.mubr.msk.bf16.mxu1 %vm2018_vm11, %v2001_v39  ;;  %v1329_v3 = vpop.permute.xlu1 %1328 }
 0x1b2   : > { %v3932_v25 = vsel %vm1275_vm8, %v1332_v45, %v1329_v3 }
 0x1b3   : > { %2711 = vmatmul.mubr.msk.bf16.gmra.mxu0 %vm1348_vm9, %v3932_v25 }
 0x1b4   : > { %2754 = vmatprep.mubr.msk.bf16.mxu0 %vm1348_vm9, %v3766_v33  ;;  %v2005_v33 = vpack.c.bf16 %v1978_v19, %v1977_v14 }
 0x1b8   : > { %2789 = vmatmul.mubr.msk.bf16.vlgmr.msra.gmra.mxu1 %vm2018_vm11, %v2002_v0 }
 0x1b9   : > { %2792 = vmatprep.mubr.msk.bf16.mxu1 %vm2018_vm11, %v2003_v29 }
 0x1bb   : > { %2755 = vmatmul.mubr.msk.bf16.vlgmr.msra.gmra.mxu0 %vm1348_vm9, %v3773_v32  ;;  %v2006_v32 = vpack.c.bf16 %v1980_v43, %v1979_v60 }
 0x1bc   : > { %2758 = vmatprep.mubr.msk.bf16.mxu0 %vm1348_vm9, %v3789_v35  ;;  %v2007_v35 = vpack.c.bf16 %v1982_v23, %v1981_v56 }
 0x1c0   : > { %2793 = vmatmul.mubr.msk.bf16.gmra.mxu1 %vm2018_vm11, %v2004_v18 }
 0x1c1   : > { %2796 = vmatprep.mubr.msk.bf16.mxu1 %vm2018_vm11, %v2005_v33 }
 0x1c3   : > { %2759 = vmatmul.mubr.msk.bf16.gmra.mxu0 %vm1348_vm9, %v3796_v54  ;;  %v2008_v54 = vpack.c.bf16 %v1984_v37, %v1983_v38 }
 0x1c4   : > { %2762 = vmatprep.mubr.msk.bf16.mxu0 %vm1348_vm9, %v3811_v50  ;;  %v2009_v50 = vpack.c.bf16 %v1986_v21, %v1985_v61 }
 0x1c8   : > { %2797 = vmatmul.mubr.msk.bf16.gmra.mxu1 %vm2018_vm11, %v2006_v32 }
 0x1c9   : > { %2800 = vmatprep.mubr.msk.bf16.mxu1 %vm2018_vm11, %v2007_v35 }
 0x1cb   : > { %2763 = vmatmul.mubr.msk.bf16.gmra.mxu0 %vm1348_vm9, %v3818_v10  ;;  %v2010_v10 = vpack.c.bf16 %v1988_v31, %v1987_v1 }
 0x1cc   : > { %2766 = vmatprep.mubr.msk.bf16.mxu0 %vm1348_vm9, %v3832_v44  ;;  %v2011_v44 = vpack.c.bf16 %v1990_v8, %v1989_v11 }
 0x1d0   : > { %2801 = vmatmul.mubr.msk.bf16.gmra.mxu1 %vm2018_vm11, %v2008_v54 }
 0x1d1   : > { %2804 = vmatprep.mubr.msk.bf16.mxu1 %vm2018_vm11, %v2009_v50 }
 0x1d3   : > { %2767 = vmatmul.mubr.msk.bf16.gmra.mxu0 %vm1348_vm9, %v3843_v48  ;;  %v2012_v48 = vpack.c.bf16 %v1992_v55, %v1991_v30 }
 0x1d4   : > { %2770 = vmatprep.mubr.msk.bf16.mxu0 %vm1348_vm9, %v3851_v15  ;;  %v2013_v15 = vpack.c.bf16 %v1994_v49, %v1993_v17 }
 0x1d8   : > { %2805 = vmatmul.mubr.msk.bf16.gmra.mxu1 %vm2018_vm11, %v2010_v10 }
 0x1d9   : > { %2808 = vmatprep.mubr.msk.bf16.mxu1 %vm2018_vm11, %v2011_v44 }
 0x1db   : > { %2771 = vmatmul.mubr.msk.bf16.gmra.mxu0 %vm1348_vm9, %v3862_v9  ;;  %v2015_v9 = vpack.c.bf16 %v1998_v47, %v1997_v41 }
 0x1dc   : > { %2774 = vmatprep.mubr.msk.bf16.mxu0 %vm1348_vm9, %v3876_v24  ;;  %v1999_v24 = vld [vmem:[%s3889_s14 + $0xf0] sm:$0xff] }
 0x1dd   : > { %v2016_v58 = vpack.c.bf16 %v2000_v2, %v1999_v24 }
 0x1e0   : > { %2809 = vmatmul.mubr.msk.bf16.gmra.mxu1 %vm2018_vm11, %v2012_v48 }
 0x1e1   : > { %2812 = vmatprep.mubr.msk.bf16.mxu1 %vm2018_vm11, %v2013_v15 }
 0x1e3   : > { %2775 = vmatmul.mubr.msk.bf16.gmra.mxu0 %vm1348_vm9, %v3892_v5 }
 0x1e4   : > { %2778 = vmatprep.mubr.msk.bf16.mxu0 %vm1348_vm9, %v3908_v52 }
 0x1e8   : > { %2813 = vmatmul.mubr.msk.bf16.gmra.mxu1 %vm2018_vm11, %v2014_v34 }
 0x1e9   : > { %2816 = vmatprep.mubr.msk.bf16.mxu1 %vm2018_vm11, %v2015_v9 }
 0x1eb   : > { %2779 = vmatmul.mubr.msk.bf16.gmra.mxu0 %vm1348_vm9, %v3919_v62 }
 0x1ec   : > { %2782 = vmatprep.mubr.msk.bf16.mxu0 %vm1348_vm9, %v3932_v25 }
 0x1f0   : > { %2817 = vmatmul.mubr.msk.bf16.gmra.mxu1 %vm2018_vm11, %v2016_v58 }
 0x1f3   : > { %2783 = vmatmul.mubr.msk.bf16.gmra.mxu0 %vm1348_vm9, %v3478_v59 }
 0x22b   : > { %v4009_v5 = vpop.f32.mrf.mxu1 }
 0x22d   : > { %v4011_v53 = vpop.f32.mrf.mxu1 }
 0x22f   : > { %v4013_v16 = vpop.f32.mrf.mxu0  ;;  %v4015_v51 = vpop.f32.mrf.mxu1 }
 0x231   : > { %v4017_v28 = vpop.f32.mrf.mxu0  ;;  %v4019_v12 = vpop.f32.mrf.mxu1 }
 0x233   : > { %v4021_v63 = vpop.f32.mrf.mxu0  ;;  %v4023_v4 = vpop.f32.mrf.mxu1 }
 0x235   : > { %v4025_v52 = vpop.f32.mrf.mxu0  ;;  %v4027_v26 = vpop.f32.mrf.mxu1 }
 0x237   : > { %v4029_v59 = vpop.f32.mrf.mxu0  ;;  %v4031_v7 = vpop.f32.mrf.mxu1 }
 0x239   : > { %v4033_v39 = vpop.f32.mrf.mxu0  ;;  %v4035_v20 = vpop.f32.mrf.mxu1 }
 0x23b   : > { %v4037_v40 = vpop.f32.mrf.mxu0  ;;  %v4039_v62 = vpop.f32.mrf.mxu1 }
 0x23d   : > { %v4041_v45 = vpop.f32.mrf.mxu0  ;;  %v4043_v42 = vpop.f32.mrf.mxu1 }
 0x23f   : > { %v4045_v22 = vpop.f32.mrf.mxu0  ;;  %v4047_v3 = vpop.f32.mrf.mxu1 }
 0x241   : > { %v4049_v57 = vpop.f32.mrf.mxu0  ;;  %v4051_v46 = vpop.f32.mrf.mxu1 }
 0x243   : > { %v4053_v25 = vpop.f32.mrf.mxu0  ;;  %v4055_v0 = vpop.f32.mrf.mxu1 }
 0x245   : > { %v4057_v29 = vpop.f32.mrf.mxu0  ;;  %v4059_v6 = vpop.f32.mrf.mxu1 }
 0x247   : > { %v4061_v13 = vpop.f32.mrf.mxu0  ;;  %v4063_v14 = vpop.f32.mrf.mxu1 }
 0x249   : > { %v4065_v19 = vpop.f32.mrf.mxu0  ;;  %v4067_v18 = vpop.f32.mrf.mxu1 }
 0x24b   : > { %v4069_v33 = vpop.f32.mrf.mxu0 }
 0x24d   : > { %v4071_v60 = vpop.f32.mrf.mxu1  ;;  %v4073_v43 = vpop.f32.mrf.mxu0 }
 0x24f   : > { %v4075_v56 = vpop.f32.mrf.mxu1  ;;  %v4077_v23 = vpop.f32.mrf.mxu0 }
 0x251   : > { %v4079_v32 = vpop.f32.mrf.mxu1  ;;  %v4081_v35 = vpop.f32.mrf.mxu0 }
 0x253   : > { %v4083_v38 = vpop.f32.mrf.mxu1  ;;  %v4085_v37 = vpop.f32.mrf.mxu0 }
 0x255   : > { %v4089_v21 = vpop.f32.mrf.mxu0 }
 0x260   : > { %v4087_v61 = vpop.f32.mrf.mxu1 }
 0x262   : > { %v4091_v54 = vpop.f32.mrf.mxu1 }
 0x263   : > { %v4093_v50 = vpop.f32.mrf.mxu0 }
 0x264   : > { %v4095_v1 = vpop.f32.mrf.mxu1 }
 0x265   : > { %v4097_v31 = vpop.f32.mrf.mxu0 }
 0x266   : > { %v4099_v11 = vpop.f32.mrf.mxu1 }
 0x267   : > { %v4101_v8 = vpop.f32.mrf.mxu0 }
 0x268   : > { %v4103_v10 = vpop.f32.mrf.mxu1 }
 0x269   : > { %4366 = vst [vmem:[#allocation2_spill] sm:$0xff] %v4103_v10  ;;  %v4105_v44 = vpop.f32.mrf.mxu0  ;;  %v1598_v10 = vadd.f32 %v4019_v12, %v4025_v52 }
 0x26a   : > { %v4107_v30 = vpop.f32.mrf.mxu1 }
 0x26b   : > { %4367 = vst [vmem:[#allocation3_spill] sm:$0xff] %v4107_v30  ;;  %v4109_v55 = vpop.f32.mrf.mxu0 }
 0x26c   : > { %v4111_v17 = vpop.f32.mrf.mxu1 }
 0x26d   : > { %4368 = vst [vmem:[#allocation4_spill] sm:$0xff] %v4111_v17  ;;  %v4113_v49 = vpop.f32.mrf.mxu0 }
 0x26e   : > { %4369 = vst [vmem:[#allocation5_spill] sm:$0xff] %v4113_v49  ;;  %v4115_v48 = vpop.f32.mrf.mxu1 }
 0x26f   : > { %4370 = vst [vmem:[#allocation6_spill] sm:$0xff] %v4115_v48  ;;  %v4117_v15 = vpop.f32.mrf.mxu0 }
 0x270   : > { %4371 = vst [vmem:[#allocation7_spill] sm:$0xff] %v4117_v15  ;;  %v4119_v36 = vpop.f32.mrf.mxu1 }
 0x271   : > { %4372 = vst [vmem:[#allocation8_spill] sm:$0xff] %v4119_v36  ;;  %v4121_v27 = vpop.f32.mrf.mxu0  ;;  %v1603_v36 = vadd.f32 %v4009_v5, %v4013_v16  ;;  %v4152_v16 = vld [vmem:[%s4356_s7] ss:$0 sm:$0xff] }
 0x272   : > { %4373 = vst [vmem:[#allocation9_spill] sm:$0xff] %v4121_v27  ;;  %v4123_v41 = vpop.f32.mrf.mxu1 }
 0x273   : > { %4374 = vst [vmem:[#allocation10_spill] sm:$0xff] %v4123_v41  ;;  %v4125_v47 = vpop.f32.mrf.mxu0  ;;  %v4142_v41 = vld [vmem:[%s4353_s4] ss:$0 sm:$0xff] }
 0x274   : > { %4375 = vst [vmem:[#allocation11_spill] sm:$0xff] %v4125_v47  ;;  %v4127_v34 = vpop.f32.mrf.mxu1 }
 0x275   : > { %4376 = vst [vmem:[#allocation12_spill] sm:$0xff] %v4127_v34  ;;  %v4129_v9 = vpop.f32.mrf.mxu0 }
 0x276   : > { %4377 = vst [vmem:[#allocation13_spill] sm:$0xff] %v4129_v9  ;;  %v4131_v24 = vpop.f32.mrf.mxu1 }
 0x277   : > { %4378 = vst [vmem:[#allocation14_spill] sm:$0xff] %v4131_v24  ;;  %v4133_v2 = vpop.f32.mrf.mxu0  ;;  %v1595_v24 = vadd.f32 %v4011_v53, %v4017_v28 }
 0x278   : > { %4379 = vst [vmem:[#allocation15_spill] sm:$0xff] %v4133_v2  ;;  %v2790_v58 = vpop.f32.mrf.mxu1 }
 0x279   : > { %v4135_v48 = vpop.f32.mrf.mxu0 }
 0x27a   : > { %4380 = vst [vmem:[#allocation16_spill] sm:$0xff] %v4135_v48  ;;  %v2105_v17 = vpop.f32.mrf.mxu1  ;;  %v1606_v48 = vadd.f32 %v4015_v51, %v4021_v63  ;;  %v1619_v51 = vadd.f32 %v4023_v4, %v4029_v59 }
 0x27b   : > { %v2756_v27 = vpop.f32.mrf.mxu0 }
 0x27c   : > { %v2791_v34 = vpop.f32.mrf.mxu1  ;;  %v1900_v9 = vadd.f32 %v2756_v27, %v1603_v36 }
 0x27d   : > { %v1771_v2 = vpop.f32.mrf.mxu0 }
 0x27e   : > { %v2108_v47 = vpop.f32.mrf.mxu1  ;;  %v1939_v15 = vadd.f32 %v4142_v41, %v1900_v9  ;;  %v1898_v5 = vadd.f32 %v1771_v2, %v1595_v24 }
 0x27f   : > { %v2757_v30 = vpop.f32.mrf.mxu0 }
 0x280   : > { %v2794_v49 = vpop.f32.mrf.mxu1  ;;  %v2234_v53 = vadd.f32 %v2790_v58, %v1939_v15  ;;  %v1937_v28 = vadd.f32 %v4142_v41, %v1898_v5  ;;  %v1901_v36 = vadd.f32 %v2757_v30, %v1606_v48  ;;  %v1611_v30 = vadd.f32 %v4027_v26, %v4033_v39 }
 0x281   : > { %v1774_v63 = vpop.f32.mrf.mxu0 }
 0x282   : > { %v2121_v27 = vpop.f32.mrf.mxu1  ;;  %v2273_v9 = vadd.f32 %v4152_v16, %v2234_v53  ;;  %v2232_v12 = vadd.f32 %v2105_v17, %v1937_v28  ;;  %v1940_v52 = vadd.f32 %v4142_v41, %v1901_v36  ;;  %v1899_v15 = vadd.f32 %v1774_v63, %v1598_v10 }
 0x283   : > { %v2760_v48 = vpop.f32.mrf.mxu0  ;;  %v1622_v17 = vadd.f32 %v4031_v7, %v4037_v40 }
 0x284   : > { %v2795_v24 = vpop.f32.mrf.mxu1  ;;  %2305 = vst.msk [vmem:[%s4162_s21 + $0x10] sm:$0xff] %vm393_vm3, %v2273_v9  ;;  %v2271_v2 = vadd.f32 %v4152_v16, %v2232_v12  ;;  %v2235_v4 = vadd.f32 %v2791_v34, %v1940_v52  ;;  %v1938_v59 = vadd.f32 %v4142_v41, %v1899_v15  ;;  %v1904_v58 = vadd.f32 %v2760_v48, %v1619_v51 }
 0x285   : > { %v1787_v5 = vpop.f32.mrf.mxu0  ;;  %v1614_v34 = vadd.f32 %v4035_v20, %v4041_v45 }
 0x286   : > { %v2124_v53 = vpop.f32.mrf.mxu1  ;;  %2303 = vst.msk [vmem:[%s4162_s21] sm:$0xff] %vm393_vm3, %v2271_v2  ;;  %v2274_v26 = vadd.f32 %v4152_v16, %v2235_v4  ;;  %v2233_v39 = vadd.f32 %v2108_v47, %v1938_v59  ;;  %v1943_v10 = vadd.f32 %v4142_v41, %v1904_v58  ;;  %v1902_v28 = vadd.f32 %v1787_v5, %v1611_v30 }
 0x287   : > { %v2761_v36 = vpop.f32.mrf.mxu0  ;;  %v1635_v47 = vadd.f32 %v4039_v62, %v4045_v22 }
 0x288   : > { %v2798_v63 = vpop.f32.mrf.mxu1  ;;  %2306 = vst.msk [vmem:[%s4162_s21 + $0x18] sm:$0xff] %vm393_vm3, %v2274_v26  ;;  %v2272_v7 = vadd.f32 %v4152_v16, %v2233_v39  ;;  %v2238_v40 = vadd.f32 %v2794_v49, %v1943_v10  ;;  %v1941_v51 = vadd.f32 %v4142_v41, %v1902_v28  ;;  %v1905_v9 = vadd.f32 %v2761_v36, %v1622_v17 }
 0x289   : > { %v1790_v12 = vpop.f32.mrf.mxu0  ;;  %v1627_v49 = vadd.f32 %v4043_v42, %v4049_v57 }
 0x28a   : > { %v2137_v52 = vpop.f32.mrf.mxu1  ;;  %2304 = vst.msk [vmem:[%s4162_s21 + $0x8] sm:$0xff] %vm393_vm3, %v2272_v7  ;;  %v2277_v20 = vadd.f32 %v4152_v16, %v2238_v40  ;;  %v2236_v45 = vadd.f32 %v2121_v27, %v1941_v51  ;;  %v1944_v15 = vadd.f32 %v4142_v41, %v1905_v9  ;;  %v1903_v30 = vadd.f32 %v1790_v12, %v1614_v34 }
 0x28b   : > { %v2764_v48 = vpop.f32.mrf.mxu0  ;;  %v1638_v27 = vadd.f32 %v4047_v3, %v4053_v25 }
 0x28c   : > { %v2799_v2 = vpop.f32.mrf.mxu1  ;;  %2309 = vst.msk [vmem:[%s4162_s21 + $0x30] sm:$0xff] %vm393_vm3, %v2277_v20  ;;  %v2275_v62 = vadd.f32 %v4152_v16, %v2236_v45  ;;  %v2239_v22 = vadd.f32 %v2795_v24, %v1944_v15  ;;  %v1942_v4 = vadd.f32 %v4142_v41, %v1903_v30  ;;  %v1908_v59 = vadd.f32 %v2764_v48, %v1635_v47 }
 0x28d   : > { %v1803_v58 = vpop.f32.mrf.mxu0  ;;  %v1630_v24 = vadd.f32 %v4051_v46, %v4057_v29  ;;  %v1646_v48 = vadd.f32 %v4067_v18, %v4073_v43 }
 0x28e   : > { %v2140_v17 = vpop.f32.mrf.mxu1  ;;  %2307 = vst.msk [vmem:[%s4162_s21 + $0x20] sm:$0xff] %vm393_vm3, %v2275_v62  ;;  %v2278_v42 = vadd.f32 %v4152_v16, %v2239_v22  ;;  %v2237_v57 = vadd.f32 %v2124_v53, %v1942_v4  ;;  %v1947_v5 = vadd.f32 %v4142_v41, %v1908_v59  ;;  %v1906_v26 = vadd.f32 %v1803_v58, %v1627_v49 }
 0x28f   : > { %v2765_v39 = vpop.f32.mrf.mxu0  ;;  %v1651_v53 = vadd.f32 %v4055_v0, %v4061_v13  ;;  %v1667_v59 = vadd.f32 %v4071_v60, %v4077_v23 }
 0x290   : > { %v2802_v10 = vpop.f32.mrf.mxu1  ;;  %2310 = vst.msk [vmem:[%s4162_s21 + $0x38] sm:$0xff] %vm393_vm3, %v2278_v42  ;;  %v2276_v3 = vadd.f32 %v4152_v16, %v2237_v57  ;;  %v2242_v25 = vadd.f32 %v2798_v63, %v1947_v5  ;;  %v1945_v28 = vadd.f32 %v4142_v41, %v1906_v26  ;;  %v1909_v34 = vadd.f32 %v2765_v39, %v1638_v27 }
 0x291   : > { %v1806_v36 = vpop.f32.mrf.mxu0  ;;  %v1643_v63 = vadd.f32 %v4059_v6, %v4065_v19  ;;  %v1659_v57 = vadd.f32 %v4075_v56, %v4081_v35 }
 0x292   : > { %v2153_v7 = vpop.f32.mrf.mxu1  ;;  %2308 = vst.msk [vmem:[%s4162_s21 + $0x28] sm:$0xff] %vm393_vm3, %v2276_v3  ;;  %v2281_v46 = vadd.f32 %v4152_v16, %v2242_v25  ;;  %v2240_v29 = vadd.f32 %v2137_v52, %v1945_v28  ;;  %v1948_v40 = vadd.f32 %v4142_v41, %v1909_v34  ;;  %v1907_v51 = vadd.f32 %v1806_v36, %v1630_v24 }
 0x293   : > { %v2768_v9 = vpop.f32.mrf.mxu0  ;;  %v1654_v52 = vadd.f32 %v4063_v14, %v4069_v33 }
 0x294   : > { %v2803_v47 = vpop.f32.mrf.mxu1  ;;  %2313 = vst.msk [vmem:[%s4162_s21 + $0x50] sm:$0xff] %vm393_vm3, %v2281_v46  ;;  %v2279_v0 = vadd.f32 %v4152_v16, %v2240_v29  ;;  %v2243_v13 = vadd.f32 %v2799_v2, %v1948_v40  ;;  %v1946_v12 = vadd.f32 %v4142_v41, %v1907_v51  ;;  %v1912_v20 = vadd.f32 %v2768_v9, %v1651_v53 }
 0x295   : > { %v1819_v45 = vpop.f32.mrf.mxu0  ;;  %v1662_v53 = vadd.f32 %v4083_v38, %v4089_v21  ;;  %v1683_v40 = vadd.f32 %v4087_v61, %v4093_v50 }
 0x296   : > { %v2156_v15 = vpop.f32.mrf.mxu1  ;;  %2311 = vst.msk [vmem:[%s4162_s21 + $0x40] sm:$0xff] %vm393_vm3, %v2279_v0  ;;  %v2282_v6 = vadd.f32 %v4152_v16, %v2243_v13  ;;  %v2241_v19 = vadd.f32 %v2140_v17, %v1946_v12  ;;  %v1951_v30 = vadd.f32 %v4142_v41, %v1912_v20  ;;  %v1910_v49 = vadd.f32 %v1819_v45, %v1643_v63 }
 0x297   : > { %v2769_v2 = vpop.f32.mrf.mxu0  ;;  %v1675_v0 = vadd.f32 %v4091_v54, %v4097_v31  ;;  %v1686_v45 = vadd.f32 %v4095_v1, %v4101_v8 }
 0x298   : > { %v2806_v62 = vpop.f32.mrf.mxu1  ;;  %2314 = vst.msk [vmem:[%s4162_s21 + $0x58] sm:$0xff] %vm393_vm3, %v2282_v6  ;;  %v2280_v14 = vadd.f32 %v4152_v16, %v2241_v19  ;;  %v2246_v33 = vadd.f32 %v2802_v10, %v1951_v30  ;;  %v1949_v22 = vadd.f32 %v4142_v41, %v1910_v49  ;;  %v1913_v4 = vadd.f32 %v2769_v2, %v1654_v52 }
 0x299   : > { %v1822_v27 = vpop.f32.mrf.mxu0  ;;  %v1670_v10 = vadd.f32 %v4079_v32, %v4085_v37  ;;  %v1678_v49 = vadd.f32 %v4099_v11, %v4105_v44 }
 0x29a   : > { %v2169_v58 = vpop.f32.mrf.mxu1  ;;  %2312 = vst.msk [vmem:[%s4162_s21 + $0x48] sm:$0xff] %vm393_vm3, %v2280_v14  ;;  %v2285_v18 = vadd.f32 %v4152_v16, %v2246_v33  ;;  %v2244_v43 = vadd.f32 %v2153_v7, %v1949_v22  ;;  %v1952_v17 = vadd.f32 %v4142_v41, %v1913_v4  ;;  %v1911_v42 = vadd.f32 %v1822_v27, %v1646_v48  ;;  %v4381_v33 = vld [vmem:[#allocation2_spill] sm:$0xff] }
 0x29b   : > { %v2772_v5 = vpop.f32.mrf.mxu0  ;;  %v1699_v22 = vadd.f32 %v4381_v33, %v4109_v55 }
 0x29c   : > { %v2807_v26 = vpop.f32.mrf.mxu1  ;;  %2317 = vst.msk [vmem:[%s4162_s21 + $0x70] sm:$0xff] %vm393_vm3, %v2285_v18  ;;  %v2283_v60 = vadd.f32 %v4152_v16, %v2244_v43  ;;  %v2247_v23 = vadd.f32 %v2803_v47, %v1952_v17  ;;  %v1950_v24 = vadd.f32 %v4142_v41, %v1911_v42  ;;  %v1916_v39 = vadd.f32 %v2772_v5, %v1667_v59  ;;  %v4382_v18 = vld [vmem:[#allocation5_spill] sm:$0xff]  ;;  %v4383_v43 = vld [vmem:[#allocation3_spill] sm:$0xff] }
 0x29d   : > { %v1835_v3 = vpop.f32.mrf.mxu0  ;;  %v1691_v17 = vadd.f32 %v4383_v43, %v4382_v18 }
 0x29e   : > { %v2172_v25 = vpop.f32.mrf.mxu1  ;;  %2315 = vst.msk [vmem:[%s4162_s21 + $0x60] sm:$0xff] %vm393_vm3, %v2283_v60  ;;  %v2286_v56 = vadd.f32 %v4152_v16, %v2247_v23  ;;  %v2245_v35 = vadd.f32 %v2156_v15, %v1950_v24  ;;  %v1955_v28 = vadd.f32 %v4142_v41, %v1916_v39  ;;  %v1914_v34 = vadd.f32 %v1835_v3, %v1659_v57  ;;  %v4384_v23 = vld [vmem:[#allocation7_spill] sm:$0xff]  ;;  %v4385_v24 = vld [vmem:[#allocation4_spill] sm:$0xff] }
 0x29f   : > { %v2773_v36 = vpop.f32.mrf.mxu0  ;;  %v1702_v39 = vadd.f32 %v4385_v24, %v4384_v23 }
 0x2a0   : > { %v2810_v7 = vpop.f32.mrf.mxu1  ;;  %2318 = vst.msk [vmem:[%s4162_s21 + $0x78] sm:$0xff] %vm393_vm3, %v2286_v56  ;;  %v2284_v32 = vadd.f32 %v4152_v16, %v2245_v35  ;;  %v2250_v37 = vadd.f32 %v2806_v62, %v1955_v28  ;;  %v1953_v46 = vadd.f32 %v4142_v41, %v1914_v34  ;;  %v1917_v29 = vadd.f32 %v2773_v36, %v1670_v10  ;;  %v4386_v34 = vld [vmem:[#allocation9_spill] sm:$0xff] }
 0x2a1   : > { %v1838_v51 = vpop.f32.mrf.mxu0 }
 0x2a2   : > { %v2185_v63 = vpop.f32.mrf.mxu1  ;;  %2316 = vst.msk [vmem:[%s4162_s21 + $0x68] sm:$0xff] %vm393_vm3, %v2284_v32  ;;  %v2289_v38 = vadd.f32 %v4152_v16, %v2250_v37  ;;  %v2248_v21 = vadd.f32 %v2169_v58, %v1953_v46  ;;  %v1956_v9 = vadd.f32 %v4142_v41, %v1917_v29  ;;  %v1915_v47 = vadd.f32 %v1838_v51, %v1662_v53  ;;  %v4387_v53 = vld [vmem:[#allocation6_spill] sm:$0xff]  ;;  %v4389_v51 = vld [vmem:[#allocation8_spill] sm:$0xff] }
 0x2a3   : > { %v2776_v13 = vpop.f32.mrf.mxu0  ;;  %v1694_v36 = vadd.f32 %v4387_v53, %v4386_v34 }
 0x2a4   : > { %v2811_v12 = vpop.f32.mrf.mxu1  ;;  %2321 = vst.msk [vmem:[%s4162_s21 + $0x90] sm:$0xff] %vm393_vm3, %v2289_v38  ;;  %v2287_v61 = vadd.f32 %v4152_v16, %v2248_v21  ;;  %v2251_v50 = vadd.f32 %v2807_v26, %v1956_v9  ;;  %v1954_v20 = vadd.f32 %v4142_v41, %v1915_v47  ;;  %v1920_v52 = vadd.f32 %v2776_v13, %v1683_v40  ;;  %v4388_v40 = vld [vmem:[#allocation11_spill] sm:$0xff] }
 0x2a5   : > { %v1851_v15 = vpop.f32.mrf.mxu0 }
 0x2a6   : > { %v2188_v6 = vpop.f32.mrf.mxu1  ;;  %2319 = vst.msk [vmem:[%s4162_s21 + $0x80] sm:$0xff] %vm393_vm3, %v2287_v61  ;;  %v2290_v54 = vadd.f32 %v4152_v16, %v2251_v50  ;;  %v2249_v31 = vadd.f32 %v2172_v25, %v1954_v20  ;;  %v1959_v19 = vadd.f32 %v4142_v41, %v1920_v52  ;;  %v1918_v30 = vadd.f32 %v1851_v15, %v1675_v0  ;;  %v4391_v61 = vld [vmem:[#allocation10_spill] sm:$0xff] }
 0x2a7   : > { %v2777_v48 = vpop.f32.mrf.mxu0 }
 0x2a8   : > { %v2814_v2 = vpop.f32.mrf.mxu1  ;;  %2322 = vst.msk [vmem:[%s4162_s21 + $0x98] sm:$0xff] %vm393_vm3, %v2290_v54  ;;  %v2288_v1 = vadd.f32 %v4152_v16, %v2249_v31  ;;  %v2254_v8 = vadd.f32 %v2810_v7, %v1959_v19  ;;  %v1957_v62 = vadd.f32 %v4142_v41, %v1918_v30  ;;  %v1921_v14 = vadd.f32 %v2777_v48, %v1686_v45  ;;  %v4392_v54 = vld [vmem:[#allocation15_spill] sm:$0xff]  ;;  %v4393_v31 = vld [vmem:[#allocation12_spill] sm:$0xff] }
 0x2a9   : > { %v1854_v4 = vpop.f32.mrf.mxu0  ;;  %v1718_v19 = vadd.f32 %v4393_v31, %v4392_v54 }
 0x2aa   : > { %v2201_v59 = vpop.f32.mrf.mxu1  ;;  %2320 = vst.msk [vmem:[%s4162_s21 + $0x88] sm:$0xff] %vm393_vm3, %v2288_v1  ;;  %v2293_v11 = vadd.f32 %v4152_v16, %v2254_v8  ;;  %v2252_v44 = vadd.f32 %v2185_v63, %v1957_v62  ;;  %v1960_v27 = vadd.f32 %v4142_v41, %v1921_v14  ;;  %v1919_v58 = vadd.f32 %v1854_v4, %v1678_v49  ;;  %v4394_v62 = vld [vmem:[#allocation16_spill] sm:$0xff]  ;;  %v4395_v14 = vld [vmem:[#allocation14_spill] sm:$0xff] }
 0x2ab   : > { %v2780_v42 = vpop.f32.mrf.mxu0  ;;  %v1715_v63 = vadd.f32 %v4389_v51, %v4388_v40  ;;  %v1710_v33 = vadd.f32 %v4395_v14, %v4394_v62 }
 0x2ac   : > { %v2815_v57 = vpop.f32.mrf.mxu1  ;;  %2325 = vst.msk [vmem:[%s4162_s21 + $0xb0] sm:$0xff] %vm393_vm3, %v2293_v11  ;;  %v2291_v55 = vadd.f32 %v4152_v16, %v2252_v44  ;;  %v2255_v5 = vadd.f32 %v2811_v12, %v1960_v27  ;;  %v1958_v26 = vadd.f32 %v4142_v41, %v1919_v58  ;;  %v1924_v60 = vadd.f32 %v2780_v42, %v1699_v22  ;;  %v4390_v12 = vld [vmem:[#allocation13_spill] sm:$0xff] }
 0x2ad   : > { %v1867_v10 = vpop.f32.mrf.mxu0  ;;  %v1707_v50 = vadd.f32 %v4391_v61, %v4390_v12 }
 0x2ae   : > { %v2204_v3 = vpop.f32.mrf.mxu1  ;;  %2323 = vst.msk [vmem:[%s4162_s21 + $0xa0] sm:$0xff] %vm393_vm3, %v2291_v55  ;;  %v2294_v25 = vadd.f32 %v4152_v16, %v2255_v5  ;;  %v2253_v56 = vadd.f32 %v2188_v6, %v1958_v26  ;;  %v1963_v35 = vadd.f32 %v4142_v41, %v1924_v60  ;;  %v1922_v28 = vadd.f32 %v1867_v10, %v1691_v17 }
 0x2af   : > { %v2781_v7 = vpop.f32.mrf.mxu0 }
 0x2b0   : > { %2326 = vst.msk [vmem:[%s4162_s21 + $0xb8] sm:$0xff] %vm393_vm3, %v2294_v25  ;;  %v2292_v32 = vadd.f32 %v4152_v16, %v2253_v56  ;;  %v2258_v37 = vadd.f32 %v2814_v2, %v1963_v35  ;;  %v1961_v46 = vadd.f32 %v4142_v41, %v1922_v28  ;;  %v1925_v29 = vadd.f32 %v2781_v7, %v1702_v39  ;;  %v2818_v21 = vpop.f32.mrf.mxu1 }
 0x2b1   : > { %v1870_v38 = vpop.f32.mrf.mxu0 }
 0x2b2   : > { %2324 = vst.msk [vmem:[%s4162_s21 + $0xa8] sm:$0xff] %vm393_vm3, %v2292_v32  ;;  %v2297_v9 = vadd.f32 %v4152_v16, %v2258_v37  ;;  %v2256_v47 = vadd.f32 %v2201_v59, %v1961_v46  ;;  %v1964_v0 = vadd.f32 %v4142_v41, %v1925_v29  ;;  %v1923_v13 = vadd.f32 %v1870_v38, %v1694_v36  ;;  %v2217_v30 = vpop.f32.mrf.mxu1 }
 0x2b3   : > { %v2784_v20 = vpop.f32.mrf.mxu0 }
 0x2b4   : > { %2329 = vst.msk [vmem:[%s4162_s21 + $0xd0] sm:$0xff] %vm393_vm3, %v2297_v9  ;;  %v2295_v52 = vadd.f32 %v4152_v16, %v2256_v47  ;;  %v2259_v45 = vadd.f32 %v2815_v57, %v1964_v0  ;;  %v1962_v15 = vadd.f32 %v4142_v41, %v1923_v13  ;;  %v1928_v6 = vadd.f32 %v2784_v20, %v1715_v63  ;;  %v2819_v27 = vpop.f32.mrf.mxu1 }
 0x2b5   : > { %v1883_v49 = vpop.f32.mrf.mxu0 }
 0x2b6   : > { %2327 = vst.msk [vmem:[%s4162_s21 + $0xc0] sm:$0xff] %vm393_vm3, %v2295_v52  ;;  %v2298_v48 = vadd.f32 %v4152_v16, %v2259_v45  ;;  %v2257_v2 = vadd.f32 %v2204_v3, %v1962_v15  ;;  %v1967_v1 = vadd.f32 %v4142_v41, %v1928_v6  ;;  %v1926_v8 = vadd.f32 %v1883_v49, %v1707_v50  ;;  %v2220_v26 = vpop.f32.mrf.mxu1 }
 0x2b7   : > { %v2785_v22 = vpop.f32.mrf.mxu0 }
 0x2b8   : > { %2330 = vst.msk [vmem:[%s4162_s21 + $0xd8] sm:$0xff] %vm393_vm3, %v2298_v48  ;;  %v2296_v4 = vadd.f32 %v4152_v16, %v2257_v2  ;;  %v2262_v59 = vadd.f32 %v2818_v21, %v1967_v1  ;;  %v1965_v11 = vadd.f32 %v4142_v41, %v1926_v8  ;;  %v1929_v44 = vadd.f32 %v2785_v22, %v1718_v19 }
 0x2b9   : > { %v1886_v58 = vpop.f32.mrf.mxu0 }
 0x2ba   : > { %2328 = vst.msk [vmem:[%s4162_s21 + $0xc8] sm:$0xff] %vm393_vm3, %v2296_v4  ;;  %v2301_v18 = vadd.f32 %v4152_v16, %v2262_v59  ;;  %v2260_v43 = vadd.f32 %v2217_v30, %v1965_v11  ;;  %v1968_v17 = vadd.f32 %v4142_v41, %v1929_v44  ;;  %v1927_v42 = vadd.f32 %v1886_v58, %v1710_v33 }
 0x2bc   : > { %2333 = vst.msk [vmem:[%s4162_s21 + $0xf0] sm:$0xff] %vm393_vm3, %v2301_v18  ;;  %v2299_v57 = vadd.f32 %v4152_v16, %v2260_v43  ;;  %v2263_v55 = vadd.f32 %v2819_v27, %v1968_v17  ;;  %v1966_v5 = vadd.f32 %v4142_v41, %v1927_v42 }
 0x2be   : > { %2331 = vst.msk [vmem:[%s4162_s21 + $0xe0] sm:$0xff] %vm393_vm3, %v2299_v57  ;;  %v2302_v60 = vadd.f32 %v4152_v16, %v2263_v55  ;;  %v2261_v23 = vadd.f32 %v2220_v26, %v1966_v5 }
 0x2c0   : > { %2334 = vst.msk [vmem:[%s4162_s21 + $0xf8] sm:$0xff] %vm393_vm3, %v2302_v60  ;;  %v2300_v24 = vadd.f32 %v4152_v16, %v2261_v23 }
 0x2c2   : > { %2332 = vst.msk [vmem:[%s4162_s21 + $0xe8] sm:$0xff] %vm393_vm3, %v2300_v24 }
 0x2c3 PF: > { %s18_s27 = sadd.s32 1, %s2977_s27  }
 0x2c4   : > { %p15_p4 = scmp.ge.s32.totalorder %s18_s27, 4  }
 0x2c6   :  { %17 = sbr.rel (!%p15_p4) target bundleno = 1 (0x1), region = 87 }

// kernel: resnet_block_forward.2
= control target key start
LH: loop header
LB: loop body
LE: loop exit
PB: predicated region body
PF: predicated region fallthrough
CT: control target
= control target key end

     0   :  { %s2546_s18 = smov 0   ;;  %s3704_s0 = inlined_call_operand.vmem [shape: f32[2,16,16,4], index: 0, kind: input, shape index: {}]   ;;  %s3705_s1 = inlined_call_operand.vmem [shape: f32[1,4], index: 1, kind: input, shape index: {}]   ;;  %s3706_s2 = inlined_call_operand.vmem [shape: f32[1,4], index: 2, kind: input, shape index: {}]   ;;  %s3707_s3 = inlined_call_operand.vmem [shape: bf16[3,12,8], index: 3, kind: input, shape index: {}]   ;;  %s3708_s4 = inlined_call_operand.vmem [shape: f32[1,8], index: 4, kind: input, shape index: {}]   ;;  %s3709_s5 = inlined_call_operand.vmem [shape: bf16[2,16,16,8], index: 5, kind: output, shape index: {}]  }
   0x1 LB: > { %s2037_s19 = sadd.s32 4294967295, %s2511_s18   ;;  %p2041_p0 = scmp.ge.s32.totalorder %s2511_s18, 1  ;;  %s2511_s18 = sphi %s2546_s18, %s15_s18  }
   0x2   : > { %p187_p1 = scmp.lt.s32.totalorder %s2511_s18, 3 }
   0x4   : > { %p188_p2 = pnand %p2041_p0, %p187_p1 }
   0x5   : > { %p215_p3 = scmp.lt.s32.totalorder (!%p188_p2), %s2037_s19, 1  ;;  %s2513_s28 = smov (!%p188_p2), 4  }
   0x6   : > { %191 = sbr.rel (%p188_p2) target bundleno = 702 (0x2be), region = 40  ;;  %s2514_s8 = smov (!%p188_p2), 8  }
   0xb   : > { %s3715_s19 = smov (!%p215_p3, %s2037_s19), 1  ;;  %vm260_vm0 = vcmask 31744   ;;  %vm979_vm1 = vcmask 1047552   ;;  %vm980_vm2 = vsmask.f32 7424  ;;  %vm1242_vm4 = vcmask 1045504  }
   0xc   : > { %s2168_s20 = sshll.u32 %s3715_s19, 8  ;;  %vm3150_vm3 = vmand %vm979_vm1, %vm980_vm2  ;;  %vm912_vm5 = vcmask 1040384   ;;  %vm913_vm6 = vsmask.f32 256  ;;  %vm1209_vm8 = vcmask 97280   ;;  %vm1142_vm9 = vcmask 64512  }
   0xd   : > { %s2560_s23 = scalar_lea.vmem %s3704_s0, %s2168_s20  ;;  %vm3337_vm7 = vmand %vm912_vm5, %vm913_vm6  ;;  %s2169_s13 = sshll.u32 %s3715_s19, 7  ;;  %vm1949_vm10 = vcmask 60416  }
   0xe   : > { %v2563_v0 = vld [vmem:[%s2560_s23] sm:$0xff]  ;;  %v2566_v1 = vld [vmem:[%s2560_s23 + $0x8] sm:$0xff]  ;;  %v2569_v2 = vld [vmem:[%s2560_s23 + $0x10] sm:$0xff]  ;;  %s3580_s16 = scalar_lea.vmem %s3709_s5, %s2169_s13 }
   0xf   : > { %v2572_v3 = vld [vmem:[%s2560_s23 + $0x18] sm:$0xff]  ;;  %v261_v4 = vsel %vm260_vm0, %v2563_v0, 0.0  ;;  %v262_v5 = vsel %vm260_vm0, %v2566_v1, 0.0  ;;  %v264_v6 = vsel %vm260_vm0, %v2569_v2, 0.0  ;;  %v2581_v7 = vld [vmem:[%s2560_s23 + $0x20] sm:$0xff]  ;;  %v2586_v10 = vld [vmem:[%s2560_s23 + $0x28] sm:$0xff] }
  0x10   : > { %v263_v8 = vadd.f32 %v262_v5, %v261_v4  ;;  %v266_v9 = vsel %vm260_vm0, %v2572_v3, 0.0  ;;  %v268_v12 = vsel %vm260_vm0, %v2581_v7, 0.0  ;;  %v2591_v13 = vld [vmem:[%s2560_s23 + $0x30] sm:$0xff]  ;;  %v270_v15 = vsel %vm260_vm0, %v2586_v10, 0.0  ;;  %v2596_v16 = vld [vmem:[%s2560_s23 + $0x38] sm:$0xff]  ;;  %v2601_v19 = vld [vmem:[%s2560_s23 + $0x40] sm:$0xff] }
  0x11   : > { %v272_v18 = vsel %vm260_vm0, %v2591_v13, 0.0  ;;  %v274_v21 = vsel %vm260_vm0, %v2596_v16, 0.0  ;;  %v2606_v22 = vld [vmem:[%s2560_s23 + $0x48] sm:$0xff]  ;;  %v276_v24 = vsel %vm260_vm0, %v2601_v19, 0.0  ;;  %v2611_v25 = vld [vmem:[%s2560_s23 + $0x50] sm:$0xff]  ;;  %v2616_v28 = vld [vmem:[%s2560_s23 + $0x58] sm:$0xff] }
  0x12   : > { %v265_v11 = vadd.f32 %v264_v6, %v263_v8  ;;  %v278_v27 = vsel %vm260_vm0, %v2606_v22, 0.0  ;;  %v280_v30 = vsel %vm260_vm0, %v2611_v25, 0.0  ;;  %v2621_v31 = vld [vmem:[%s2560_s23 + $0x60] sm:$0xff]  ;;  %v282_v33 = vsel %vm260_vm0, %v2616_v28, 0.0  ;;  %v2626_v34 = vld [vmem:[%s2560_s23 + $0x68] sm:$0xff]  ;;  %v2631_v37 = vld [vmem:[%s2560_s23 + $0x70] sm:$0xff] }
  0x13   : > { %v284_v36 = vsel %vm260_vm0, %v2621_v31, 0.0  ;;  %v286_v39 = vsel %vm260_vm0, %v2626_v34, 0.0  ;;  %v2636_v40 = vld [vmem:[%s2560_s23 + $0x78] sm:$0xff]  ;;  %v288_v42 = vsel %vm260_vm0, %v2631_v37, 0.0  ;;  %v2641_v43 = vld [vmem:[%s2560_s23 + $0x80] sm:$0xff]  ;;  %v2646_v46 = vld [vmem:[%s2560_s23 + $0x88] sm:$0xff] }
  0x14   : > { %v267_v14 = vadd.f32 %v266_v9, %v265_v11  ;;  %v290_v45 = vsel %vm260_vm0, %v2636_v40, 0.0  ;;  %v292_v48 = vsel %vm260_vm0, %v2641_v43, 0.0  ;;  %v2651_v49 = vld [vmem:[%s2560_s23 + $0x90] sm:$0xff]  ;;  %v294_v51 = vsel %vm260_vm0, %v2646_v46, 0.0  ;;  %v2656_v52 = vld [vmem:[%s2560_s23 + $0x98] sm:$0xff]  ;;  %v2661_v55 = vld [vmem:[%s2560_s23 + $0xa0] sm:$0xff] }
  0x15   : > { %v296_v54 = vsel %vm260_vm0, %v2651_v49, 0.0  ;;  %v298_v57 = vsel %vm260_vm0, %v2656_v52, 0.0  ;;  %v2666_v58 = vld [vmem:[%s2560_s23 + $0xa8] sm:$0xff]  ;;  %v300_v60 = vsel %vm260_vm0, %v2661_v55, 0.0  ;;  %v2671_v61 = vld [vmem:[%s2560_s23 + $0xb0] sm:$0xff]  ;;  %v2676_v4 = vld [vmem:[%s2560_s23 + $0xb8] sm:$0xff] }
  0x16   : > { %v269_v17 = vadd.f32 %v268_v12, %v267_v14  ;;  %v302_v63 = vsel %vm260_vm0, %v2666_v58, 0.0  ;;  %v304_v6 = vsel %vm260_vm0, %v2671_v61, 0.0  ;;  %v2681_v8 = vld [vmem:[%s2560_s23 + $0xc0] sm:$0xff]  ;;  %v306_v11 = vsel %vm260_vm0, %v2676_v4, 0.0  ;;  %v2686_v12 = vld [vmem:[%s2560_s23 + $0xc8] sm:$0xff] }
  0x18   : > { %v271_v20 = vadd.f32 %v270_v15, %v269_v17  ;;  %v308_v15 = vsel %vm260_vm0, %v2681_v8, 0.0  ;;  %v2691_v17 = vld [vmem:[%s2560_s23 + $0xd0] sm:$0xff] }
  0x1a   : > { %v273_v23 = vadd.f32 %v272_v18, %v271_v20  ;;  %v310_v20 = vsel %vm260_vm0, %v2686_v12, 0.0 }
  0x1c   : > { %v275_v26 = vadd.f32 %v274_v21, %v273_v23  ;;  %v2696_v21 = vld [vmem:[%s2560_s23 + $0xd8] sm:$0xff] }
  0x1e   : > { %v277_v29 = vadd.f32 %v276_v24, %v275_v26  ;;  %v312_v24 = vsel %vm260_vm0, %v2691_v17, 0.0  ;;  %v2701_v26 = vld [vmem:[%s2560_s23 + $0xe0] sm:$0xff] }
  0x20   : > { %v279_v32 = vadd.f32 %v278_v27, %v277_v29  ;;  %v314_v29 = vsel %vm260_vm0, %v2696_v21, 0.0 }
  0x22   : > { %v281_v35 = vadd.f32 %v280_v30, %v279_v32  ;;  %v2706_v30 = vld [vmem:[%s2560_s23 + $0xe8] sm:$0xff] }
  0x24   : > { %v283_v38 = vadd.f32 %v282_v33, %v281_v35  ;;  %v316_v33 = vsel %vm260_vm0, %v2701_v26, 0.0  ;;  %v2711_v35 = vld [vmem:[%s2560_s23 + $0xf0] sm:$0xff] }
  0x26   : > { %v285_v41 = vadd.f32 %v284_v36, %v283_v38  ;;  %v318_v38 = vsel %vm260_vm0, %v2706_v30, 0.0 }
  0x28   : > { %v287_v44 = vadd.f32 %v286_v39, %v285_v41  ;;  %v2716_v39 = vld [vmem:[%s2560_s23 + $0xf8] sm:$0xff] }
  0x2a   : > { %v289_v47 = vadd.f32 %v288_v42, %v287_v44  ;;  %v320_v42 = vsel %vm260_vm0, %v2711_v35, 0.0 }
  0x2c   : > { %v291_v50 = vadd.f32 %v290_v45, %v289_v47  ;;  %v322_v45 = vsel %vm260_vm0, %v2716_v39, 0.0 }
  0x2e   : > { %v293_v53 = vadd.f32 %v292_v48, %v291_v50 }
  0x30   : > { %v295_v56 = vadd.f32 %v294_v51, %v293_v53 }
  0x32   : > { %v297_v59 = vadd.f32 %v296_v54, %v295_v56 }
  0x34   : > { %v299_v62 = vadd.f32 %v298_v57, %v297_v59 }
  0x36   : > { %v301_v5 = vadd.f32 %v300_v60, %v299_v62 }
  0x38   : > { %v303_v9 = vadd.f32 %v302_v63, %v301_v5 }
  0x3a   : > { %v305_v14 = vadd.f32 %v304_v6, %v303_v9 }
  0x3c   : > { %v307_v18 = vadd.f32 %v306_v11, %v305_v14 }
  0x3e   : > { %v309_v23 = vadd.f32 %v308_v15, %v307_v18 }
  0x40   : > { %v311_v27 = vadd.f32 %v310_v20, %v309_v23 }
  0x42   : > { %v313_v32 = vadd.f32 %v312_v24, %v311_v27 }
  0x44   : > { %v315_v36 = vadd.f32 %v314_v29, %v313_v32 }
  0x46   : > { %v317_v41 = vadd.f32 %v316_v33, %v315_v36 }
  0x48   : > { %v319_v44 = vadd.f32 %v318_v38, %v317_v41 }
  0x4a   : > { %v321_v47 = vadd.f32 %v320_v42, %v319_v44 }
  0x4c   : > { %v323_v48 = vadd.f32 %v322_v45, %v321_v47 }
  0x4e   : > { %v324_v50 = vrot.slane %v323_v48, 4 }
  0x50   : > { %v325_v51 = vadd.f32 %v324_v50, %v323_v48 }
  0x52   : > { %v326_v53 = vrot.slane %v325_v51, 2 }
  0x54   : > { %v327_v54 = vadd.f32 %v326_v53, %v325_v51 }
  0x56   : > { %v328_v56 = vrot.slane %v327_v54, 1 }
  0x58   : > { %v329_v57 = vadd.f32 %v328_v56, %v327_v54 }
  0x5a   : > { %v2722_v59 = vmul.f32 0.00390625, %v329_v57 }
  0x5c   : > { %v331_v60 = vsub.f32 %v2563_v0, %v2722_v59  ;;  %v332_v62 = vsub.f32 %v2566_v1, %v2722_v59  ;;  %v333_v63 = vsub.f32 %v2569_v2, %v2722_v59  ;;  %v334_v5 = vsub.f32 %v2572_v3, %v2722_v59 }
  0x5d   : > { %v335_v6 = vsub.f32 %v2581_v7, %v2722_v59  ;;  %v336_v15 = vsub.f32 %v2586_v10, %v2722_v59  ;;  %v337_v20 = vsub.f32 %v2591_v13, %v2722_v59  ;;  %v338_v33 = vsub.f32 %v2596_v16, %v2722_v59 }
  0x5e   : > { %v363_v9 = vmul.f32 %v331_v60, %v331_v60  ;;  %v364_v11 = vmul.f32 %v332_v62, %v332_v62  ;;  %v365_v14 = vmul.f32 %v333_v63, %v333_v63  ;;  %v366_v18 = vmul.f32 %v334_v5, %v334_v5 }
  0x5f   : > { %v367_v23 = vmul.f32 %v335_v6, %v335_v6  ;;  %v368_v36 = vmul.f32 %v336_v15, %v336_v15  ;;  %v339_v42 = vsub.f32 %v2601_v19, %v2722_v59  ;;  %v369_v44 = vmul.f32 %v337_v20, %v337_v20 }
  0x60   : > { %v395_v24 = vsel %vm260_vm0, %v363_v9, 0.0  ;;  %v396_v27 = vsel %vm260_vm0, %v364_v11, 0.0  ;;  %v398_v29 = vsel %vm260_vm0, %v365_v14, 0.0  ;;  %v400_v38 = vsel %vm260_vm0, %v366_v18, 0.0 }
  0x61   : > { %v397_v32 = vadd.f32 %v396_v27, %v395_v24  ;;  %v402_v45 = vsel %vm260_vm0, %v367_v23, 0.0  ;;  %v340_v48 = vsub.f32 %v2606_v22, %v2722_v59  ;;  %v370_v50 = vmul.f32 %v338_v33, %v338_v33 }
  0x62   : > { %v404_v51 = vsel %vm260_vm0, %v368_v36, 0.0  ;;  %v341_v54 = vsub.f32 %v2611_v25, %v2722_v59  ;;  %v371_v56 = vmul.f32 %v339_v42, %v339_v42  ;;  %v406_v57 = vsel %vm260_vm0, %v369_v44, 0.0 }
  0x63   : > { %v399_v41 = vadd.f32 %v398_v29, %v397_v32  ;;  %v342_v62 = vsub.f32 %v2616_v28, %v2722_v59  ;;  %v372_v63 = vmul.f32 %v340_v48, %v340_v48  ;;  %v408_v5 = vsel %vm260_vm0, %v370_v50, 0.0 }
  0x64   : > { %v343_v9 = vsub.f32 %v2621_v31, %v2722_v59  ;;  %v373_v11 = vmul.f32 %v341_v54, %v341_v54  ;;  %v410_v14 = vsel %vm260_vm0, %v371_v56, 0.0  ;;  %v344_v18 = vsub.f32 %v2626_v34, %v2722_v59 }
  0x65   : > { %v401_v47 = vadd.f32 %v400_v38, %v399_v41  ;;  %v374_v20 = vmul.f32 %v342_v62, %v342_v62  ;;  %v412_v23 = vsel %vm260_vm0, %v372_v63, 0.0  ;;  %v345_v27 = vsub.f32 %v2631_v37, %v2722_v59 }
  0x66   : > { %v375_v29 = vmul.f32 %v343_v9, %v343_v9  ;;  %v414_v32 = vsel %vm260_vm0, %v373_v11, 0.0  ;;  %v346_v36 = vsub.f32 %v2636_v40, %v2722_v59  ;;  %v376_v38 = vmul.f32 %v344_v18, %v344_v18 }
  0x67   : > { %v403_v53 = vadd.f32 %v402_v45, %v401_v47  ;;  %v416_v41 = vsel %vm260_vm0, %v374_v20, 0.0  ;;  %v347_v44 = vsub.f32 %v2641_v43, %v2722_v59  ;;  %v377_v45 = vmul.f32 %v345_v27, %v345_v27 }
  0x68   : > { %v418_v47 = vsel %vm260_vm0, %v375_v29, 0.0  ;;  %v348_v50 = vsub.f32 %v2646_v46, %v2722_v59  ;;  %v349_v56 = vsub.f32 %v2651_v49, %v2722_v59  ;;  %v350_v63 = vsub.f32 %v2656_v52, %v2722_v59 }
  0x69   : > { %v405_v60 = vadd.f32 %v404_v51, %v403_v53  ;;  %v378_v51 = vmul.f32 %v346_v36, %v346_v36  ;;  %v420_v53 = vsel %vm260_vm0, %v376_v38, 0.0  ;;  %v351_v11 = vsub.f32 %v2661_v55, %v2722_v59 }
  0x6a   : > { %v352_v20 = vsub.f32 %v2666_v58, %v2722_v59  ;;  %v353_v29 = vsub.f32 %v2671_v61, %v2722_v59  ;;  %v354_v38 = vsub.f32 %v2676_v4, %v2722_v59 }
  0x6b   : > { %v407_v6 = vadd.f32 %v406_v57, %v405_v60  ;;  %v379_v57 = vmul.f32 %v347_v44, %v347_v44  ;;  %v422_v60 = vsel %vm260_vm0, %v377_v45, 0.0  ;;  %v355_v45 = vsub.f32 %v2681_v8, %v2722_v59 }
  0x6d   : > { %v409_v15 = vadd.f32 %v408_v5, %v407_v6  ;;  %v380_v5 = vmul.f32 %v348_v50, %v348_v50  ;;  %v424_v6 = vsel %vm260_vm0, %v378_v51, 0.0  ;;  %v356_v51 = vsub.f32 %v2686_v12, %v2722_v59 }
  0x6f   : > { %v411_v24 = vadd.f32 %v410_v14, %v409_v15  ;;  %v381_v14 = vmul.f32 %v349_v56, %v349_v56  ;;  %v426_v15 = vsel %vm260_vm0, %v379_v57, 0.0  ;;  %v357_v57 = vsub.f32 %v2691_v17, %v2722_v59 }
  0x71   : > { %v413_v33 = vadd.f32 %v412_v23, %v411_v24  ;;  %v382_v23 = vmul.f32 %v350_v63, %v350_v63  ;;  %v428_v24 = vsel %vm260_vm0, %v380_v5, 0.0  ;;  %v358_v5 = vsub.f32 %v2696_v21, %v2722_v59 }
  0x73   : > { %v415_v42 = vadd.f32 %v414_v32, %v413_v33  ;;  %v383_v32 = vmul.f32 %v351_v11, %v351_v11  ;;  %v430_v33 = vsel %vm260_vm0, %v381_v14, 0.0  ;;  %v359_v14 = vsub.f32 %v2701_v26, %v2722_v59 }
  0x75   : > { %v417_v48 = vadd.f32 %v416_v41, %v415_v42  ;;  %v384_v41 = vmul.f32 %v352_v20, %v352_v20  ;;  %v432_v42 = vsel %vm260_vm0, %v382_v23, 0.0  ;;  %v360_v23 = vsub.f32 %v2706_v30, %v2722_v59 }
  0x77   : > { %v419_v54 = vadd.f32 %v418_v47, %v417_v48  ;;  %v385_v47 = vmul.f32 %v353_v29, %v353_v29  ;;  %v434_v48 = vsel %vm260_vm0, %v383_v32, 0.0  ;;  %v361_v32 = vsub.f32 %v2711_v35, %v2722_v59 }
  0x79   : > { %v421_v62 = vadd.f32 %v420_v53, %v419_v54  ;;  %v386_v53 = vmul.f32 %v354_v38, %v354_v38  ;;  %v436_v54 = vsel %vm260_vm0, %v384_v41, 0.0  ;;  %v362_v41 = vsub.f32 %v2716_v39, %v2722_v59 }
  0x7b   : > { %v423_v9 = vadd.f32 %v422_v60, %v421_v62  ;;  %v387_v60 = vmul.f32 %v355_v45, %v355_v45  ;;  %v438_v62 = vsel %vm260_vm0, %v385_v47, 0.0  ;;  %v393_v47 = vmul.f32 %v361_v32, %v361_v32 }
  0x7d   : > { %v425_v18 = vadd.f32 %v424_v6, %v423_v9  ;;  %v388_v6 = vmul.f32 %v356_v51, %v356_v51  ;;  %v440_v9 = vsel %vm260_vm0, %v386_v53, 0.0  ;;  %v394_v51 = vmul.f32 %v362_v41, %v362_v41 }
  0x7f   : > { %v427_v27 = vadd.f32 %v426_v15, %v425_v18  ;;  %v389_v15 = vmul.f32 %v357_v57, %v357_v57  ;;  %v442_v18 = vsel %vm260_vm0, %v387_v60, 0.0  ;;  %v456_v60 = vsel %vm260_vm0, %v394_v51, 0.0 }
  0x81   : > { %v429_v36 = vadd.f32 %v428_v24, %v427_v27  ;;  %v390_v24 = vmul.f32 %v358_v5, %v358_v5  ;;  %v444_v27 = vsel %vm260_vm0, %v388_v6, 0.0 }
  0x83   : > { %v431_v44 = vadd.f32 %v430_v33, %v429_v36  ;;  %v391_v33 = vmul.f32 %v359_v14, %v359_v14  ;;  %v446_v36 = vsel %vm260_vm0, %v389_v15, 0.0 }
  0x85   : > { %v433_v50 = vadd.f32 %v432_v42, %v431_v44  ;;  %v392_v42 = vmul.f32 %v360_v23, %v360_v23  ;;  %v448_v44 = vsel %vm260_vm0, %v390_v24, 0.0  ;;  %v470_v23 = vlaneseq }
  0x87   : > { %v435_v56 = vadd.f32 %v434_v48, %v433_v50  ;;  %v450_v48 = vsel %vm260_vm0, %v391_v33, 0.0  ;;  %v452_v53 = vsel %vm260_vm0, %v392_v42, 0.0  ;;  %v471_v24 = vshrl.u32 %v470_v23, 7 }
  0x89   : > { %v437_v63 = vadd.f32 %v436_v54, %v435_v56  ;;  %v454_v56 = vsel %vm260_vm0, %v393_v47, 0.0 }
  0x8b   : > { %v439_v11 = vadd.f32 %v438_v62, %v437_v63 }
  0x8d   : > { %v441_v20 = vadd.f32 %v440_v9, %v439_v11 }
  0x8f   : > { %v443_v29 = vadd.f32 %v442_v18, %v441_v20 }
  0x91   : > { %v445_v38 = vadd.f32 %v444_v27, %v443_v29  ;;  %v258_v27 = vld [vmem:[%s3705_s1] sm:$0x1]  ;;  %v472_v29 = vsub.s32 0, %v471_v24 }
  0x93   : > { %v447_v45 = vadd.f32 %v446_v36, %v445_v38  ;;  %v259_v36 = vld [vmem:[%s3706_s2] sm:$0x1] }
  0x95   : > { %v449_v50 = vadd.f32 %v448_v44, %v447_v45 }
  0x97   : > { %v451_v54 = vadd.f32 %v450_v48, %v449_v50 }
  0x99   : > { %v453_v57 = vadd.f32 %v452_v53, %v451_v54 }
  0x9b   : > { %v455_v62 = vadd.f32 %v454_v56, %v453_v57 }
  0x9d   : > { %v457_v63 = vadd.f32 %v456_v60, %v455_v62 }
  0x9f   : > { %v458_v5 = vrot.slane %v457_v63, 4 }
  0xa1   : > { %v459_v6 = vadd.f32 %v458_v5, %v457_v63 }
  0xa3   : > { %v460_v9 = vrot.slane %v459_v6, 2 }
  0xa5   : > { %v461_v11 = vadd.f32 %v460_v9, %v459_v6 }
  0xa7   : > { %v462_v14 = vrot.slane %v461_v11, 1 }
  0xa9   : > { %v463_v15 = vadd.f32 %v462_v14, %v461_v11 }
  0xab   : > { %v464_v18 = vmul.f32 0.00390625, %v463_v15 }
  0xad   : > { %v465_v20 = vadd.f32 1e-06, %v464_v18 }
  0xaf   : > { %2375 = vrsqrt.f32 %v465_v20 }
  0xbc   : > { %v2376_v32 = vpop.eup %2375 }
  0xbd   : > { %v467_v33 = vmul.f32 %v2376_v32, %v258_v27 }
  0xbf   : > { %v468_v38 = vmul.f32 %v467_v33, %v2722_v59  ;;  %v2827_v41 = vrot.slane %v467_v33, %v472_v29 }
  0xc1   : > { %v469_v42 = vsub.f32 %v259_v36, %v468_v38  ;;  %v490_v44 = vmul.f32 %v2827_v41, %v2641_v43  ;;  %v491_v45 = vmul.f32 %v2827_v41, %v2646_v46  ;;  %v474_v47 = vmul.f32 %v2827_v41, %v2563_v0 }
  0xc2   : > { %v475_v48 = vmul.f32 %v2827_v41, %v2566_v1  ;;  %v492_v50 = vmul.f32 %v2827_v41, %v2651_v49  ;;  %v493_v59 = vmul.f32 %v2827_v41, %v2656_v52  ;;  %v476_v43 = vmul.f32 %v2827_v41, %v2569_v2 }
  0xc3   : > { %v2841_v51 = vrot.slane %v469_v42, %v472_v29  ;;  %v477_v46 = vmul.f32 %v2827_v41, %v2572_v3  ;;  %v494_v0 = vmul.f32 %v2827_v41, %v2661_v55  ;;  %v495_v55 = vmul.f32 %v2827_v41, %v2666_v58 }
  0xc4   : > { %v496_v54 = vmul.f32 %v2827_v41, %v2671_v61  ;;  %v497_v58 = vmul.f32 %v2827_v41, %v2676_v4  ;;  %v498_v9 = vmul.f32 %v2827_v41, %v2681_v8  ;;  %v499_v15 = vmul.f32 %v2827_v41, %v2686_v12 }
  0xc5   : > { %v2850_v53 = vadd.f32 %v2841_v51, %v490_v44  ;;  %v2853_v1 = vadd.f32 %v2841_v51, %v491_v45  ;;  %v2856_v49 = vadd.f32 %v2841_v51, %v474_v47  ;;  %v2859_v52 = vadd.f32 %v2841_v51, %v475_v48 }
  0xc6   : > { %v2862_v2 = vadd.f32 %v2841_v51, %v492_v50  ;;  %v2865_v3 = vadd.f32 %v2841_v51, %v493_v59  ;;  %v2875_v62 = vadd.f32 %v2841_v51, %v476_v43  ;;  %v2879_v5 = vadd.f32 %v2841_v51, %v477_v46 }
  0xc7   : > { %v2062_v56 = vmul.f32 -1.442695, %v2850_v53  ;;  %v2063_v57 = vmul.f32 -1.442695, %v2853_v1  ;;  %v2046_v60 = vmul.f32 -1.442695, %v2856_v49  ;;  %v2885_v6 = vadd.f32 %v2841_v51, %v494_v0 }
  0xc8   : > { %v2047_v63 = vmul.f32 -1.442695, %v2859_v52  ;;  %v2064_v61 = vmul.f32 -1.442695, %v2862_v2  ;;  %v2065_v11 = vmul.f32 -1.442695, %v2865_v3  ;;  %v2891_v14 = vadd.f32 %v2841_v51, %v495_v55 }
  0xc9   : > { %2377 = vpow2.f32 %v2062_v56  ;;  %v2048_v4 = vmul.f32 -1.442695, %v2875_v62  ;;  %v2897_v18 = vadd.f32 %v2841_v51, %v496_v54  ;;  %v478_v20 = vmul.f32 %v2827_v41, %v2581_v7 }
  0xca   : > { %2379 = vpow2.f32 %v2063_v57  ;;  %v2049_v8 = vmul.f32 -1.442695, %v2879_v5  ;;  %v2903_v23 = vadd.f32 %v2841_v51, %v497_v58  ;;  %v479_v24 = vmul.f32 %v2827_v41, %v2586_v10 }
  0xcb   : > { %2381 = vpow2.f32 %v2046_v60  ;;  %v2066_v12 = vmul.f32 -1.442695, %v2885_v6  ;;  %v2909_v27 = vadd.f32 %v2841_v51, %v498_v9  ;;  %v2067_v29 = vmul.f32 -1.442695, %v2891_v14 }
  0xcc   : > { %2383 = vpow2.f32 %v2047_v63  ;;  %v2913_v7 = vadd.f32 %v2841_v51, %v499_v15  ;;  %v2068_v32 = vmul.f32 -1.442695, %v2897_v18  ;;  %v2917_v33 = vadd.f32 %v2841_v51, %v478_v20 }
  0xcd   : > { %2385 = vpow2.f32 %v2064_v61  ;;  %v2069_v10 = vmul.f32 -1.442695, %v2903_v23  ;;  %v2921_v36 = vadd.f32 %v2841_v51, %v479_v24  ;;  %v2070_v38 = vmul.f32 -1.442695, %v2909_v27 }
  0xce   : > { %2387 = vpow2.f32 %v2065_v11  ;;  %v2071_v42 = vmul.f32 -1.442695, %v2913_v7  ;;  %v2050_v44 = vmul.f32 -1.442695, %v2917_v33  ;;  %v502_v48 = vmul.f32 %v2827_v41, %v2701_v26 }
  0xcf   : > { %2389 = vpow2.f32 %v2048_v4  ;;  %v2051_v45 = vmul.f32 -1.442695, %v2921_v36  ;;  %v503_v43 = vmul.f32 %v2827_v41, %v2706_v30  ;;  %v480_v56 = vmul.f32 %v2827_v41, %v2591_v13 }
  0xd0   : > { %2391 = vpow2.f32 %v2049_v8  ;;  %v2934_v26 = vadd.f32 %v2841_v51, %v502_v48  ;;  %v481_v63 = vmul.f32 %v2827_v41, %v2596_v16  ;;  %v504_v20 = vmul.f32 %v2827_v41, %v2711_v35 }
  0xd1   : > { %2393 = vpow2.f32 %v2066_v12  ;;  %v2939_v61 = vadd.f32 %v2841_v51, %v503_v43  ;;  %v2942_v4 = vadd.f32 %v2841_v51, %v480_v56  ;;  %v488_v35 = vmul.f32 %v2827_v41, %v2631_v37 }
  0xd2   : > { %2395 = vpow2.f32 %v2067_v29  ;;  %v2074_v24 = vmul.f32 -1.442695, %v2934_v26  ;;  %v2948_v12 = vadd.f32 %v2841_v51, %v481_v63 }
  0xd3   : > { %2397 = vpow2.f32 %v2068_v32 }
  0xd4   : > { %2399 = vpow2.f32 %v2069_v10  ;;  %v2075_v10 = vmul.f32 -1.442695, %v2939_v61 }
  0xd5   : > { %2401 = vpow2.f32 %v2070_v38  ;;  %v505_v38 = vmul.f32 %v2827_v41, %v2716_v39 }
  0xd6   : > { %v2378_v47 = vpop.eup %2377  ;;  %2403 = vpow2.f32 %v2071_v42 }
  0xd7   : > { %v2380_v50 = vpop.eup %2379  ;;  %v656_v59 = vadd.f32 1.0, %v2378_v47  ;;  %2405 = vpow2.f32 %v2050_v44 }
  0xd8   : > { %v2382_v46 = vpop.eup %2381  ;;  %v657_v0 = vadd.f32 1.0, %v2380_v50  ;;  %2407 = vpow2.f32 %v2051_v45  ;;  %v489_v45 = vmul.f32 %v2827_v41, %v2636_v40  ;;  %v2958_v50 = vadd.f32 %v2841_v51, %v504_v20 }
  0xd9   : > { %v2384_v55 = vpop.eup %2383  ;;  %2409 = vrcp.f32 %v656_v59  ;;  %v640_v54 = vadd.f32 1.0, %v2382_v46  ;;  %v500_v59 = vmul.f32 %v2827_v41, %v2691_v17  ;;  %v2963_v46 = vadd.f32 %v2841_v51, %v488_v35 }
  0xda   : > { %v2386_v57 = vpop.eup %2385  ;;  %2411 = vrcp.f32 %v657_v0  ;;  %v641_v60 = vadd.f32 1.0, %v2384_v55  ;;  %v2966_v37 = vadd.f32 %v2841_v51, %v489_v45  ;;  %v2052_v55 = vmul.f32 -1.442695, %v2942_v4 }
  0xdb   : > { %v2388_v58 = vpop.eup %2387  ;;  %2413 = vrcp.f32 %v640_v54  ;;  %v658_v30 = vadd.f32 1.0, %v2386_v57  ;;  %v501_v54 = vmul.f32 %v2827_v41, %v2696_v21  ;;  %v2053_v57 = vmul.f32 -1.442695, %v2948_v12 }
  0xdc   : > { %v2390_v9 = vpop.eup %2389  ;;  %2415 = vrcp.f32 %v641_v60  ;;  %v659_v11 = vadd.f32 1.0, %v2388_v58  ;;  %v2973_v60 = vadd.f32 %v2841_v51, %v505_v38  ;;  %v485_v38 = vmul.f32 %v2827_v41, %v2616_v28 }
  0xdd   : > { %v2392_v15 = vpop.eup %2391  ;;  %2417 = vrcp.f32 %v658_v30  ;;  %v642_v13 = vadd.f32 1.0, %v2390_v9  ;;  %v482_v30 = vmul.f32 %v2827_v41, %v2601_v19  ;;  %v483_v9 = vmul.f32 %v2827_v41, %v2606_v22 }
  0xde   : > { %v2394_v8 = vpop.eup %2393  ;;  %2419 = vrcp.f32 %v659_v11  ;;  %v643_v16 = vadd.f32 1.0, %v2392_v15  ;;  %v2076_v15 = vmul.f32 -1.442695, %v2958_v50  ;;  %v484_v19 = vmul.f32 %v2827_v41, %v2611_v25 }
  0xdf   : > { %v2396_v29 = vpop.eup %2395  ;;  %2421 = vrcp.f32 %v642_v13  ;;  %v660_v32 = vadd.f32 1.0, %v2394_v8  ;;  %v2981_v13 = vadd.f32 %v2841_v51, %v500_v59  ;;  %v2998_v35 = vadd.f32 %v2841_v51, %v483_v9 }
  0xe0   : > { %v2398_v42 = vpop.eup %2397  ;;  %2423 = vrcp.f32 %v643_v16  ;;  %v661_v44 = vadd.f32 1.0, %v2396_v29  ;;  %v2985_v16 = vadd.f32 %v2841_v51, %v501_v54 }
  0xe1   : > { %v2400_v47 = vpop.eup %2399  ;;  %2425 = vrcp.f32 %v660_v32  ;;  %v662_v48 = vadd.f32 1.0, %v2398_v42  ;;  %v2077_v32 = vmul.f32 -1.442695, %v2973_v60 }
  0xe2   : > { %v2402_v43 = vpop.eup %2401  ;;  %2427 = vrcp.f32 %v661_v44  ;;  %v663_v39 = vadd.f32 1.0, %v2400_v47  ;;  %v2072_v47 = vmul.f32 -1.442695, %v2981_v13 }
  0xe3   : > { %v2404_v0 = vpop.eup %2403  ;;  %2429 = vrcp.f32 %v662_v48  ;;  %v664_v40 = vadd.f32 1.0, %v2402_v43 }
  0xe4   : > { %v2406_v56 = vpop.eup %2405  ;;  %2431 = vrcp.f32 %v663_v39  ;;  %v665_v17 = vadd.f32 1.0, %v2404_v0 }
  0xe5   : > { %v2408_v63 = vpop.eup %2407  ;;  %2433 = vrcp.f32 %v664_v40  ;;  %v644_v58 = vadd.f32 1.0, %v2406_v56 }
  0xe6   : > { %v2410_v11 = vpop.eup %2409  ;;  %2435 = vrcp.f32 %v665_v17  ;;  %v645_v21 = vadd.f32 1.0, %v2408_v63 }
  0xe7   : > { %v2412_v20 = vpop.eup %2411  ;;  %v752_v8 = vmul.f32 %v2410_v11, %v2850_v53  ;;  %2437 = vrcp.f32 %v644_v58  ;;  %v2995_v53 = vadd.f32 %v2841_v51, %v482_v30  ;;  %v487_v11 = vmul.f32 %v2827_v41, %v2626_v34 }
  0xe8   : > { %v2414_v29 = vpop.eup %2413  ;;  %v753_v22 = vmul.f32 %v2412_v20, %v2853_v1  ;;  %2439 = vrcp.f32 %v645_v21 }
  0xe9   : > { %v2416_v42 = vpop.eup %2415  ;;  %v736_v44 = vmul.f32 %v2414_v29, %v2856_v49  ;;  %2441 = vpow2.f32 %v2074_v24  ;;  %v2073_v49 = vmul.f32 -1.442695, %v2985_v16  ;;  %v3007_v24 = vadd.f32 %v2841_v51, %v484_v19 }
  0xea   : > { %v2418_v25 = vpop.eup %2417  ;;  %v3000_v45 = vpack.c.bf16 %v753_v22, %v752_v8  ;;  %v737_v1 = vmul.f32 %v2416_v42, %v2859_v52  ;;  %2443 = vpow2.f32 %v2075_v10  ;;  %v3015_v10 = vadd.f32 %v2841_v51, %v485_v38 }
  0xeb   : > { %v2420_v48 = vpop.eup %2419  ;;  %v754_v28 = vmul.f32 %v2418_v25, %v2862_v2  ;;  %2445 = vpow2.f32 %v2052_v55  ;;  %v2054_v0 = vmul.f32 -1.442695, %v2995_v53 }
  0xec   : > { %v2422_v59 = vpop.eup %2421  ;;  %1032 = vrot.lane.b32.xlu0 %v3000_v45, %s2513_s28  ;;  %v3011_v43 = vpack.c.bf16 %v737_v1, %v736_v44  ;;  %v755_v52 = vmul.f32 %v2420_v48, %v2865_v3  ;;  %2447 = vpow2.f32 %v2053_v57  ;;  %v2055_v3 = vmul.f32 -1.442695, %v2998_v35 }
  0xed   : > { %v2424_v2 = vpop.eup %2423  ;;  %v738_v39 = vmul.f32 %v2422_v59, %v2875_v62  ;;  %2449 = vpow2.f32 %v2076_v15  ;;  %v2056_v62 = vmul.f32 -1.442695, %v3007_v24 }
  0xee   : > { %v2426_v40 = vpop.eup %2425  ;;  %1016 = vrot.lane.b32.xlu1 %v3011_v43, %s2513_s28  ;;  %v3021_v55 = vpack.c.bf16 %v755_v52, %v754_v28  ;;  %v739_v54 = vmul.f32 %v2424_v2, %v2879_v5  ;;  %2451 = vpow2.f32 %v2077_v32  ;;  %v2057_v5 = vmul.f32 -1.442695, %v3015_v10 }
  0xef   : > { %v2428_v56 = vpop.eup %2427  ;;  %v756_v17 = vmul.f32 %v2426_v40, %v2885_v6  ;;  %2453 = vpow2.f32 %v2072_v47  ;;  %v486_v6 = vmul.f32 %v2827_v41, %v2621_v31  ;;  %v2060_v28 = vmul.f32 -1.442695, %v2963_v46 }
  0xf0   : > { %v2430_v57 = vpop.eup %2429  ;;  %1034 = vrot.lane.b32.xlu0 %v3021_v55, %s2513_s28  ;;  %v3029_v63 = vpack.c.bf16 %v739_v54, %v738_v39  ;;  %v757_v58 = vmul.f32 %v2428_v56, %v2891_v14  ;;  %2455 = vpow2.f32 %v2073_v49  ;;  %v3071_v49 = vmul.f32 -1.442695, %v2966_v37 }
  0xf1   : > { %v2432_v30 = vpop.eup %2431  ;;  %v758_v9 = vmul.f32 %v2430_v57, %v2897_v18  ;;  %2457 = vpow2.f32 %v2054_v0  ;;  %v3051_v29 = vadd.f32 %v2841_v51, %v486_v6  ;;  %v848_v2 = vshrl.u32 %v3000_v45, 16 }
  0xf2   : > { %v2434_v21 = vpop.eup %2433  ;;  %1018 = vrot.lane.b32.xlu1 %v3029_v63, %s2513_s28  ;;  %v3040_v15 = vpack.c.bf16 %v757_v58, %v756_v17  ;;  %v759_v14 = vmul.f32 %v2432_v30, %v2903_v23  ;;  %2459 = vpow2.f32 %v2055_v3  ;;  %v3054_v23 = vadd.f32 %v2841_v51, %v487_v11 }
  0xf3   : > { %v2436_v20 = vpop.eup %2435  ;;  %v760_v8 = vmul.f32 %v2434_v21, %v2909_v27  ;;  %2461 = vpow2.f32 %v2056_v62  ;;  %v2058_v1 = vmul.f32 -1.442695, %v3051_v29  ;;  %v851_v39 = vshll.u32 %v3000_v45, 16 }
  0xf4   : > { %v2438_v18 = vpop.eup %2437  ;;  %1036 = vrot.lane.b32.xlu0 %v3040_v15, %s2513_s28  ;;  %v3046_v31 = vpack.c.bf16 %v759_v14, %v758_v9  ;;  %v761_v34 = vmul.f32 %v2436_v20, %v2913_v7  ;;  %2463 = vpow2.f32 %v2057_v5  ;;  %v2059_v47 = vmul.f32 -1.442695, %v3054_v23 }
  0xf5   : > { %v2440_v41 = vpop.eup %2439  ;;  %v740_v19 = vmul.f32 %v2438_v18, %v2917_v33  ;;  %v855_v54 = vshrl.u32 %v3021_v55, 16  ;;  %v792_v3 = vshrl.u32 %v3011_v43, 16  ;;  %v795_v62 = vshll.u32 %v3011_v43, 16  ;;  %v2372_v43 = vld [vmem:[%s3707_s3 + $0x8] sm:$0x3f]  }
  0xf6   : > { %v2442_v27 = vpop.eup %2441  ;;  %1038 = vrot.lane.b32.xlu1 %v3046_v31, %s2513_s28  ;;  %v3058_v22 = vpack.c.bf16 %v761_v34, %v760_v8  ;;  %v741_v32 = vmul.f32 %v2440_v41, %v2921_v36  ;;  %v850_v57 = vrot.slane %v848_v2, 7  ;;  %v858_v9 = vshll.u32 %v3021_v55, 16  ;;  %2358 = vmatprep.subr.msk.bf16.mxu1 %vm1242_vm4, %v2372_v43 }
  0xf7   : > { %v2444_v38 = vpop.eup %2443  ;;  %v668_v7 = vadd.f32 1.0, %v2442_v27  ;;  %v857_v30 = vrot.slane %v855_v54, 7  ;;  %v794_v21 = vrot.slane %v792_v3, 7  ;;  %v862_v14 = vshrl.u32 %v3040_v15, 16  ;;  %2357 = vmatprep.subr.msk.bf16.mxu0 %vm1242_vm4, %v2372_v43 }
  0xf8   : > { %v2446_v42 = vpop.eup %2445  ;;  %1040 = vrot.lane.b32.xlu0 %v3058_v22, %s2513_s28  ;;  %v3063_v33 = vpack.c.bf16 %v741_v32, %v740_v19  ;;  %v669_v44 = vadd.f32 1.0, %v2444_v38  ;;  %v799_v18 = vshrl.u32 %v3029_v63, 16  ;;  %v869_v34 = vshrl.u32 %v3046_v31, 16 }
  0xf9   : > { %v2448_v25 = vpop.eup %2447  ;;  %2465 = vrcp.f32 %v668_v7  ;;  %v646_v51 = vadd.f32 1.0, %v2446_v42  ;;  %v933_v27 = vrot.slane %v795_v62, 1  ;;  %v864_v32 = vrot.slane %v862_v14, 7 }
  0xfa   : > { %v2450_v48 = vpop.eup %2449  ;;  %1020 = vrot.lane.b32.xlu1 %v3063_v33, %s2513_s28  ;;  %2467 = vrcp.f32 %v669_v44  ;;  %v647_v36 = vadd.f32 1.0, %v2448_v25  ;;  %v801_v7 = vrot.slane %v799_v18, 7  ;;  %v871_v42 = vrot.slane %v869_v34, 7 }
  0xfb   : > { %v2452_v59 = vpop.eup %2451  ;;  %2469 = vrcp.f32 %v646_v51  ;;  %v670_v52 = vadd.f32 1.0, %v2450_v48  ;;  %v876_v44 = vshrl.u32 %v3058_v22, 16  ;;  %v3097_v25 = vor.u32 %v851_v39, %v850_v57 }
  0xfc   : > { %v2454_v0 = vpop.eup %2453  ;;  %2471 = vrcp.f32 %v647_v36  ;;  %v671_v40 = vadd.f32 1.0, %v2452_v59  ;;  %v3099_v51 = vor.u32 %v795_v62, %v794_v21  ;;  %v802_v48 = vshll.u32 %v3029_v63, 16 }
  0xfd   : > { %v2456_v56 = vpop.eup %2455  ;;  %2473 = vrcp.f32 %v670_v52  ;;  %v666_v17 = vadd.f32 1.0, %v2454_v0  ;;  %v806_v36 = vshrl.u32 %v3063_v33, 16  ;;  %v3103_v59 = vor.u32 %v858_v9, %v857_v30 }
  0xfe   : > { %v2458_v58 = vpop.eup %2457  ;;  %2475 = vrcp.f32 %v671_v40  ;;  %v667_v5 = vadd.f32 1.0, %v2456_v56  ;;  %v865_v52 = vshll.u32 %v3040_v15, 16  ;;  %v872_v0 = vshll.u32 %v3046_v31, 16 }
  0xff   : > { %v2460_v6 = vpop.eup %2459  ;;  %2477 = vrcp.f32 %v666_v17  ;;  %v648_v11 = vadd.f32 1.0, %v2458_v58  ;;  %v878_v40 = vrot.slane %v876_v44, 7  ;;  %v808_v17 = vrot.slane %v806_v36, 7 }
 0x100   : > { %v2462_v20 = vpop.eup %2461  ;;  %2479 = vrcp.f32 %v667_v5  ;;  %v649_v8 = vadd.f32 1.0, %v2460_v6  ;;  %v879_v62 = vshll.u32 %v3058_v22, 16  ;;  %v3114_v57 = vor.u32 %v802_v48, %v801_v7 }
 0x101   : > { %v2464_v41 = vpop.eup %2463  ;;  %2481 = vrcp.f32 %v648_v11  ;;  %v650_v19 = vadd.f32 1.0, %v2462_v20  ;;  %v3117_v30 = vor.u32 %v865_v52, %v864_v32  ;;  %v951_v11 = vrot.slane %v858_v9, 1 }
 0x102   : > { %2483 = vrcp.f32 %v649_v8  ;;  %v651_v38 = vadd.f32 1.0, %v2464_v41  ;;  %v809_v21 = vshll.u32 %v3063_v33, 16  ;;  %v953_v41 = vrot.slane %v865_v52, 1 }
 0x103   : > { %2485 = vrcp.f32 %v650_v19  ;;  %v1244_v15 = vsel %vm1242_vm4, %v2372_v43, 0  ;;  %v2374_v43 = vld [vmem:[%s3707_s3 + $0x10] sm:$0x3f]  }
 0x104   : > { %2487 = vrcp.f32 %v651_v38  ;;  %2356 = vmatpush3.bf16.msra.mxu1 %v1244_v15  ;;  %2254 = vmatpush3.bf16.msra.mxu0 %v1244_v15 }
 0x105   : > { %2489 = vpow2.f32 %v2058_v1  ;;  %v3119_v1 = vor.u32 %v872_v0, %v871_v42  ;;  %v952_v42 = vor.u32 %v951_v11, %v855_v54  ;;  %2360 = vmatprep.subr.msk.bf16.mxu0 %vm1242_vm4, %v2374_v43 }
 0x106   : > { %v2466_v56 = vpop.eup %2465  ;;  %2491 = vpow2.f32 %v2059_v47 }
 0x107   : > { %v2468_v58 = vpop.eup %2467  ;;  %v764_v5 = vmul.f32 %v2466_v56, %v2934_v26  ;;  %2493 = vpow2.f32 %v2060_v28  ;;  %v3127_v26 = vor.u32 %v879_v62, %v878_v40  ;;  %v949_v56 = vrot.slane %v851_v39, 1 }
 0x108   : > { %v2470_v6 = vpop.eup %2469  ;;  %v765_v47 = vmul.f32 %v2468_v58, %v2939_v61  ;;  %2495 = vpow2.f32 %v3071_v49  ;;  %v3134_v61 = vor.u32 %v809_v21, %v808_v17  ;;  %v992_v58 = vsel %vm3150_vm3, %v952_v42, 0 }
 0x109   : > { %v2472_v20 = vpop.eup %2471  ;;  %v742_v8 = vmul.f32 %v2470_v6, %v2942_v4  ;;  %v950_v6 = vor.u32 %v949_v56, %v848_v2 }
 0x10a   : > { %v2474_v28 = vpop.eup %2473  ;;  %v3129_v19 = vpack.c.bf16 %v765_v47, %v764_v5  ;;  %v743_v32 = vmul.f32 %v2472_v20, %v2948_v12  ;;  %v3146_v12 = vor.u32 %v933_v27, %v792_v3  ;;  %v955_v27 = vrot.slane %v872_v0, 1 }
 0x10b   : > { %v2476_v49 = vpop.eup %2475  ;;  %v766_v9 = vmul.f32 %v2474_v28, %v2958_v50 }
 0x10c   : > { %v2478_v4 = vpop.eup %2477  ;;  %1044 = vrot.lane.b32.xlu0 %v3129_v19, %s2513_s28  ;;  %v3139_v38 = vpack.c.bf16 %v743_v32, %v742_v8  ;;  %v767_v7 = vmul.f32 %v2476_v49, %v2973_v60  ;;  %v3158_v60 = vor.u32 %v953_v41, %v862_v14  ;;  %v890_v11 = vshrl.u32 %v3129_v19, 16 }
 0x10d   : > { %v2480_v52 = vpop.eup %2479  ;;  %v762_v40 = vmul.f32 %v2478_v4, %v2981_v13  ;;  %v956_v41 = vor.u32 %v955_v27, %v869_v34  ;;  %v893_v49 = vshll.u32 %v3129_v19, 16 }
 0x10e   : > { %v2482_v55 = vpop.eup %2481  ;;  %1022 = vrot.lane.b32.xlu1 %v3139_v38, %s2513_s28  ;;  %v3165_v13 = vpack.c.bf16 %v767_v7, %v766_v9  ;;  %v763_v54 = vmul.f32 %v2480_v52, %v2985_v16  ;;  %v993_v47 = vsel %vm3150_vm3, %v3158_v60, 0  ;;  %v813_v45 = vshrl.u32 %v3139_v38, 16  ;;  %v2373_v9 = vld [vmem:[%s3707_s3] sm:$0x3f]  }
 0x10f   : > { %v2484_v3 = vpop.eup %2483  ;;  %v744_v39 = vmul.f32 %v2482_v55, %v2995_v53  ;;  %v983_v53 = vsel %vm3150_vm3, %v3146_v12, 0  ;;  %v892_v32 = vrot.slane %v890_v11, 7  ;;  %2359 = vmatprep.subr.msk.bf16.mxu1 %vm1242_vm4, %v2373_v9  ;;  %v816_v55 = vshll.u32 %v3139_v38, 16 }
 0x110   : > { %v2486_v14 = vpop.eup %2485  ;;  %1191 = vrot.lane.b32.xlu0 %v3165_v13, %s2513_s28  ;;  %v3174_v17 = vpack.c.bf16 %v763_v54, %v762_v40  ;;  %v745_v16 = vmul.f32 %v2484_v3, %v2998_v35  ;;  %v815_v4 = vrot.slane %v813_v45, 7  ;;  %v1178_v34 = vshrl.u32 %v3165_v13, 16 }
 0x111   : > { %v2488_v0 = vpop.eup %2487  ;;  %v746_v5 = vmul.f32 %v2486_v14, %v3007_v24  ;;  %v935_v24 = vrot.slane %v802_v48, 1  ;;  %v1181_v15 = vshll.u32 %v3165_v13, 16  ;;  %v3263_v63 = vsel %vm1242_vm4, %v2373_v9, 0 }
 0x112   : > { %v2490_v20 = vpop.eup %2489  ;;  %1042 = vrot.lane.b32.xlu1 %v3174_v17, %s2513_s28  ;;  %v3191_v35 = vpack.c.bf16 %v745_v16, %v744_v39  ;;  %v747_v8 = vmul.f32 %v2488_v0, %v3015_v10  ;;  %v883_v31 = vshrl.u32 %v3174_v17, 16  ;;  %v1180_v60 = vrot.slane %v1178_v34, 7 }
 0x113   : > { %v2492_v2 = vpop.eup %2491  ;;  %v652_v28 = vadd.f32 1.0, %v2490_v20  ;;  %v937_v39 = vrot.slane %v809_v21, 1  ;;  %v886_v27 = vshll.u32 %v3174_v17, 16  ;;  %v3236_v16 = vor.u32 %v893_v49, %v892_v32 }
 0x114   : > { %v2494_v10 = vpop.eup %2493  ;;  %1082 = vrot.lane.b32.xlu0 %v992_v58, %s2514_s8  ;;  %v653_v48 = vadd.f32 1.0, %v2492_v2  ;;  %v3210_v42 = vpack.c.bf16 %v747_v8, %v746_v5  ;;  %v820_v52 = vshrl.u32 %v3191_v35, 16  ;;  %v885_v56 = vrot.slane %v883_v31, 7 }
 0x115   : > { %v2496_v7 = vpop.eup %2495  ;;  %2497 = vrcp.f32 %v652_v28  ;;  %v654_v12 = vadd.f32 1.0, %v2494_v10  ;;  %v823_v58 = vshll.u32 %v3191_v35, 16  ;;  %v3242_v21 = vor.u32 %v1181_v15, %v1180_v60 }
 0x116   : > { %1024 = vrot.lane.b32.xlu1 %v3191_v35, %s2513_s28  ;;  %2499 = vrcp.f32 %v653_v48  ;;  %v655_v40 = vadd.f32 1.0, %v2496_v7  ;;  %v827_v54 = vshrl.u32 %v3210_v42, 16  ;;  %v822_v3 = vrot.slane %v820_v52, 7 }
 0x117   : > { %2501 = vrcp.f32 %v654_v12  ;;  %v3244_v17 = vor.u32 %v886_v27, %v885_v56  ;;  %v991_v0 = vsel %vm3150_vm3, %v950_v6, 0  ;;  %v936_v5 = vor.u32 %v935_v24, %v799_v18 }
 0x118   : > { %1064 = vrot.lane.b32.xlu0 %v983_v53, %s2514_s8  ;;  %2503 = vrcp.f32 %v655_v40  ;;  %v829_v14 = vrot.slane %v827_v54, 7  ;;  %v3238_v53 = vor.u32 %v816_v55, %v815_v4  ;;  %v830_v20 = vshll.u32 %v3210_v42, 16 }
 0x119   : > { %v3251_v8 = vor.u32 %v823_v58, %v822_v3  ;;  %v994_v2 = vsel %vm3150_vm3, %v956_v41, 0  ;;  %v938_v28 = vor.u32 %v937_v39, %v806_v36  ;;  %v957_v32 = vrot.slane %v879_v62, 1 }
 0x11a   : > { %1026 = vrot.lane.b32.xlu1 %v3210_v42, %s2513_s28  ;;  %v3260_v10 = vor.u32 %v830_v20, %v829_v14  ;;  %v3267_v18 = vsel %vm1242_vm4, %v2374_v43, 0  ;;  %v984_v6 = vsel %vm3150_vm3, %v936_v5, 0  ;;  %v939_v33 = vrot.slane %v816_v55, 1 }
 0x11b   : > { %v985_v36 = vsel %vm3150_vm3, %v938_v28, 0  ;;  %v958_v62 = vor.u32 %v957_v32, %v876_v44  ;;  %v941_v56 = vrot.slane %v823_v58, 1  ;;  %v943_v38 = vrot.slane %v830_v20, 1 }
 0x11c   : > { %1084 = vrot.lane.b32.xlu0 %v993_v47, %s2514_s8  ;;  %v959_v47 = vrot.slane %v886_v27, 1  ;;  %v940_v7 = vor.u32 %v939_v33, %v813_v45  ;;  %v961_v27 = vrot.slane %v893_v49, 1  ;;  %v2515_v32 = vmov 0  }
 0x11d   : > { %v995_v22 = vsel %vm3150_vm3, %v958_v62, 0  ;;  %v944_v5 = vor.u32 %v943_v38, %v827_v54 }
 0x11e   : > { %1080 = vrot.lane.b32.xlu1 %v991_v0, %s2514_s8  ;;  %v960_v40 = vor.u32 %v959_v47, %v883_v31  ;;  %v1186_v31 = vrot.slane %v1181_v15, 1  ;;  %v962_v49 = vor.u32 %v961_v27, %v890_v11 }
 0x11f   : > { %v988_v42 = vsel %vm3150_vm3, %v944_v5, 0 }
 0x120   : > { %1086 = vrot.lane.b32.xlu0 %v994_v2, %s2514_s8  ;;  %v996_v55 = vsel %vm3150_vm3, %v960_v40, 0  ;;  %v997_v13 = vsel %vm3150_vm3, %v962_v49, 0  ;;  %v928_v49 = vsel %vm3337_vm7, 0, %v3127_v26  ;;  %v919_v26 = vsel %vm3337_vm7, 0, %v3238_v53 }
 0x121   : > { %v920_v53 = vsel %vm3337_vm7, 0, %v3251_v8 }
 0x122   : > { %v2498_v24 = vpop.eup %2497  ;;  %1066 = vrot.lane.b32.xlu1 %v984_v6, %s2514_s8  ;;  %v931_v6 = vrot.slane %v2515_v32, 1 }
 0x123   : > { %v2500_v41 = vpop.eup %2499  ;;  %v748_v9 = vmul.f32 %v2498_v24, %v3051_v29  ;;  %v986_v29 = vsel %vm3150_vm3, %v940_v7, 0 }
 0x124   : > { %v2502_v48 = vpop.eup %2501  ;;  %v749_v4 = vmul.f32 %v2500_v41, %v3054_v23  ;;  %1068 = vrot.lane.b32.xlu0 %v985_v36, %s2514_s8  ;;  %v982_v33 = vsel %vm3150_vm3, %v931_v6, 0 }
 0x125   : > { %v2504_v12 = vpop.eup %2503  ;;  %v750_v44 = vmul.f32 %v2502_v48, %v2963_v46  ;;  %v942_v46 = vor.u32 %v941_v56, %v820_v52  ;;  %v1187_v52 = vor.u32 %v1186_v31, %v1178_v34  ;;  %v916_v56 = vsel %vm3337_vm7, 0, %v3099_v51 }
 0x126   : > { %v774_v60 = vpack.c.bf16 %v749_v4, %v748_v9  ;;  %v751_v43 = vmul.f32 %v2504_v12, %v2966_v37  ;;  %v925_v51 = vsel %vm3337_vm7, 0, %v3103_v59 }
 0x127   : > { %v987_v35 = vsel %vm3150_vm3, %v942_v46, 0  ;;  %v1189_v54 = vsel %vm3150_vm3, %v1187_v52, 0  ;;  %v926_v46 = vsel %vm3337_vm7, 0, %v3117_v30 }
 0x128   : > { %1028 = vrot.lane.b32.xlu1 %v774_v60, %s2513_s28  ;;  %1088 = vrot.lane.b32.xlu0 %v995_v22, %s2514_s8  ;;  %v775_v23 = vpack.c.bf16 %v751_v43, %v750_v44  ;;  %v834_v45 = vshrl.u32 %v774_v60, 16  ;;  %v837_v3 = vshll.u32 %v774_v60, 16 }
 0x12a   : > { %v841_v39 = vshrl.u32 %v775_v23, 16  ;;  %v836_v37 = vrot.slane %v834_v45, 7  ;;  %v844_v58 = vshll.u32 %v775_v23, 16  ;;  %v945_v15 = vrot.slane %v837_v3, 1 }
 0x12c   : > { %1070 = vrot.lane.b32.xlu1 %v986_v29, %s2514_s8  ;;  %1090 = vrot.lane.b32.xlu0 %v996_v55, %s2514_s8  ;;  %v843_v14 = vrot.slane %v841_v39, 7  ;;  %v3298_v0 = vor.u32 %v837_v3, %v836_v37  ;;  %v947_v2 = vrot.slane %v844_v58, 1  ;;  %v946_v28 = vor.u32 %v945_v15, %v834_v45 }
 0x12d   : > { %v924_v45 = vsel %vm3337_vm7, 0, %v3097_v25  ;;  %v917_v37 = vsel %vm3337_vm7, 0, %v3114_v57 }
 0x12e   : > { %v3306_v20 = vor.u32 %v844_v58, %v843_v14  ;;  %v948_v34 = vor.u32 %v947_v2, %v841_v39  ;;  %v989_v19 = vsel %vm3150_vm3, %v946_v28, 0  ;;  %v918_v14 = vsel %vm3337_vm7, 0, %v3134_v61 }
 0x12f   : > { %v927_v61 = vsel %vm3337_vm7, 0, %v3119_v1 }
 0x130   : > { %1030 = vrot.lane.b32.xlu1 %v775_v23, %s2513_s28  ;;  %1072 = vrot.lane.b32.xlu0 %v987_v35, %s2514_s8  ;;  %v990_v11 = vsel %vm3150_vm3, %v948_v34, 0 }
 0x134   : > { %1074 = vrot.lane.b32.xlu1 %v988_v42, %s2514_s8  ;;  %1194 = vrot.lane.b32.xlu0 %v1189_v54, %s2514_s8 }
 0x138   : > { %1092 = vrot.lane.b32.xlu1 %v997_v13, %s2514_s8  ;;  %1076 = vrot.lane.b32.xlu0 %v989_v19, %s2514_s8  ;;  %v929_v13 = vsel %vm3337_vm7, 0, %v3244_v17 }
 0x13c   : > { %1078 = vrot.lane.b32.xlu1 %v990_v11, %s2514_s8  ;;  %1014 = vrot.lane.b32.xlu0 %v2515_v32, %s2513_s28 }
 0x140   : > { %1062 = vrot.lane.b32.xlu1 %v982_v33, %s2514_s8 }
 0x15e   : > { %v1033_v36 = vpop.permute.xlu0 %1032 }
 0x15f   : > { %v1123_v31 = vsel %vm260_vm0, %v924_v45, %v1033_v36 }
 0x160   : > { %v1017_v62 = vpop.permute.xlu1 %1016 }
 0x161   : > { %v1099_v43 = vsel %vm260_vm0, %v916_v56, %v1017_v62 }
 0x162   : > { %v1035_v47 = vpop.permute.xlu0 %1034 }
 0x163   : > { %v1126_v39 = vsel %vm260_vm0, %v925_v51, %v1035_v47 }
 0x164   : > { %v1019_v24 = vpop.permute.xlu1 %1018 }
 0x165   : > { %v1102_v57 = vsel %vm260_vm0, %v917_v37, %v1019_v24  ;;  %v921_v24 = vsel %vm3337_vm7, 0, %v3260_v10  ;;  %v922_v10 = vsel %vm3337_vm7, 0, %v3298_v0  ;;  %v923_v0 = vsel %vm3337_vm7, 0, %v3306_v20 }
 0x166   : > { %v1037_v41 = vpop.permute.xlu0 %1036 }
 0x167   : > { %v1129_v27 = vsel %vm260_vm0, %v926_v46, %v1037_v41  ;;  %v1185_v41 = vsel %vm3337_vm7, 0, %v3242_v21 }
 0x168   : > { %v1039_v9 = vpop.permute.xlu1 %1038 }
 0x169   : > { %v1132_v1 = vsel %vm260_vm0, %v927_v61, %v1039_v9 }
 0x16a   : > { %v1041_v48 = vpop.permute.xlu0 %1040 }
 0x16b   : > { %v1135_v42 = vsel %vm260_vm0, %v928_v49, %v1041_v48 }
 0x16c   : > { %v1021_v4 = vpop.permute.xlu1 %1020 }
 0x16d   : > { %v1105_v52 = vsel %vm260_vm0, %v918_v14, %v1021_v4 }
 0x17e   : > { %v3333_v7 = vpop.permute.xlu0 %1044 }
 0x180   : > { %v1023_v12 = vpop.permute.xlu1 %1022 }
 0x181   : > { %v1108_v34 = vsel %vm260_vm0, %v919_v26, %v1023_v12  ;;  %v930_v12 = vsel %vm3337_vm7, 0, %v3236_v16 }
 0x182   : > { %v3335_v22 = vpop.permute.xlu0 %1191  ;;  %v1141_v56 = vsel %vm260_vm0, %v930_v12, %v3333_v7 }
 0x183   : > { %v1198_v21 = vsel %vm260_vm0, %v1185_v41, %v3335_v22 }
 0x184   : > { %v1043_v44 = vpop.permute.xlu1 %1042 }
 0x185   : > { %v1138_v6 = vsel %vm260_vm0, %v929_v13, %v1043_v44 }
 0x186   : > { %v1083_v40 = vpop.permute.xlu0 %1082 }
 0x187   : > { %v3369_v59 = vsel %vm1142_vm9, %v1126_v39, %v1083_v40  ;;  %v787_v40 = vrot.slane %v2515_v32, 7 }
 0x188   : > { %v1025_v60 = vpop.permute.xlu1 %1024 }
 0x189   : > { %v1111_v17 = vsel %vm260_vm0, %v920_v53, %v1025_v60  ;;  %v915_v7 = vsel %vm3337_vm7, 0, %v787_v40 }
 0x18a   : > { %v1065_v29 = vpop.permute.xlu0 %1064 }
 0x18b   : > { %v3346_v23 = vsel %vm1142_vm9, %v1099_v43, %v1065_v29 }
 0x18c   : > { %v1027_v38 = vpop.permute.xlu1 %1026  ;;  %2255 = vmatprep.mubr.msk.bf16.mxu0 %vm1209_vm8, %v3346_v23 }
 0x18d   : > { %v1114_v9 = vsel %vm260_vm0, %v921_v24, %v1027_v38  ;;  %v3573_v24 = vld [vmem:[%s3708_s4] ss:$0 sm:$0xff] }
 0x18e   : > { %v1085_v55 = vpop.permute.xlu0 %1084 }
 0x18f   : > { %v3377_v58 = vsel %vm1142_vm9, %v1129_v27, %v1085_v55 }
 0x190   : > { %v1081_v3 = vpop.permute.xlu1 %1080 }
 0x191   : > { %v3365_v25 = vsel %vm1142_vm9, %v1123_v31, %v1081_v3 }
 0x192   : > { %2271 = vmatprep.mubr.msk.bf16.mxu1 %vm1209_vm8, %v3365_v25  ;;  %v1087_v30 = vpop.permute.xlu0 %1086 }
 0x193   : > { %2272 = vmatmul.mubr.msk.bf16.vlgmr.msra.gmra.mxu1 %vm1209_vm8, %v3369_v59  ;;  %v3406_v54 = vsel %vm1142_vm9, %v1132_v1, %v1087_v30 }
 0x194   : > { %v1067_v5 = vpop.permute.xlu1 %1066  ;;  %2275 = vmatprep.mubr.msk.bf16.mxu1 %vm1209_vm8, %v3377_v58  ;;  %2288 = vmatpush3.bf16.msra.mxu1 %v3263_v63 }
 0x195   : > { %v3386_v35 = vsel %vm1142_vm9, %v1102_v57, %v1067_v5 }
 0x196   : > { %2256 = vmatmul.mubr.msk.bf16.vlgmr.msra.gmra.mxu0 %vm1209_vm8, %v3386_v35  ;;  %v1069_v15 = vpop.permute.xlu0 %1068 }
 0x197   : > { %2322 = vmatpush3.bf16.msra.mxu0 %v3267_v18  ;;  %v3399_v63 = vsel %vm1142_vm9, %v1105_v52, %v1069_v15 }
 0x198   : > { %2259 = vmatprep.mubr.msk.bf16.mxu0 %vm1209_vm8, %v3399_v63 }
 0x19a   : > { %v1029_v2 = vpop.permute.xlu1 %1028  ;;  %v1089_v28 = vpop.permute.xlu0 %1088 }
 0x19b   : > { %2276 = vmatmul.mubr.msk.bf16.gmra.mxu1 %vm1209_vm8, %v3406_v54  ;;  %v3414_v18 = vsel %vm1142_vm9, %v1135_v42, %v1089_v28  ;;  %v1117_v60 = vsel %vm260_vm0, %v922_v10, %v1029_v2 }
 0x19c   : > { %2279 = vmatprep.mubr.msk.bf16.mxu1 %vm1209_vm8, %v3414_v18 }
 0x19e   : > { %v1071_v19 = vpop.permute.xlu1 %1070  ;;  %v1091_v11 = vpop.permute.xlu0 %1090 }
 0x19f   : > { %v1152_v33 = vsel %vm1142_vm9, %v1108_v34, %v1071_v19  ;;  %v3429_v36 = vsel %vm1142_vm9, %v1138_v6, %v1091_v11 }
 0x1a0   : > { %2260 = vmatmul.mubr.msk.bf16.gmra.mxu0 %vm1209_vm8, %v1152_v33 }
 0x1a2   : > { %v1031_v62 = vpop.permute.xlu1 %1030  ;;  %v1073_v47 = vpop.permute.xlu0 %1072 }
 0x1a3   : > { %2280 = vmatmul.mubr.msk.bf16.gmra.mxu1 %vm1209_vm8, %v3429_v36  ;;  %v1154_v8 = vsel %vm1142_vm9, %v1111_v17, %v1073_v47  ;;  %v1120_v22 = vsel %vm260_vm0, %v923_v0, %v1031_v62 }
 0x1a4   : > { %2263 = vmatprep.mubr.msk.bf16.mxu0 %vm1209_vm8, %v1154_v8 }
 0x1a6   : > { %v1075_v48 = vpop.permute.xlu1 %1074  ;;  %v1195_v4 = vpop.permute.xlu0 %1194 }
 0x1a7   : > { %v1156_v44 = vsel %vm1142_vm9, %v1114_v9, %v1075_v48  ;;  %v1200_v16 = vsel %vm1142_vm9, %v1198_v21, %v1195_v4 }
 0x1a8   : > { %2264 = vmatmul.mubr.msk.bf16.gmra.mxu0 %vm1209_vm8, %v1156_v44 }
 0x1aa   : > { %v1093_v43 = vpop.permute.xlu1 %1092  ;;  %v1077_v29 = vpop.permute.xlu0 %1076 }
 0x1ab   : > { %v1174_v38 = vsel %vm1142_vm9, %v1141_v56, %v1093_v43  ;;  %v1158_v32 = vsel %vm1142_vm9, %v1117_v60, %v1077_v29 }
 0x1ac   : > { %2283 = vmatprep.mubr.msk.bf16.mxu1 %vm1209_vm8, %v1174_v38  ;;  %2267 = vmatprep.mubr.msk.bf16.mxu0 %vm1209_vm8, %v1158_v32 }
 0x1ad   : > { %2284 = vmatmul.mubr.msk.bf16.gmra.mxu1 %vm1209_vm8, %v1200_v16 }
 0x1ae   : > { %v1079_v45 = vpop.permute.xlu1 %1078  ;;  %v1015_v51 = vpop.permute.xlu0 %1014 }
 0x1af   : > { %v1160_v55 = vsel %vm1142_vm9, %v1120_v22, %v1079_v45  ;;  %v1096_v20 = vsel %vm260_vm0, %v915_v7, %v1015_v51 }
 0x1b0   : > { %2268 = vmatmul.mubr.msk.bf16.gmra.mxu0 %vm1209_vm8, %v1160_v55 }
 0x1b1   : > { %2323 = vmatprep.mubr.msk.bf16.mxu0 %vm1209_vm8, %v3386_v35 }
 0x1b2   : > { %v1063_v46 = vpop.permute.xlu1 %1062 }
 0x1b3   : > { %v1144_v31 = vsel %vm1142_vm9, %v1096_v20, %v1063_v46 }
 0x1b4   : > { %2289 = vmatprep.mubr.msk.bf16.mxu1 %vm1209_vm8, %v1144_v31 }
 0x1b5   : > { %2290 = vmatmul.mubr.msk.bf16.vlgmr.msra.gmra.mxu1 %vm1209_vm8, %v3346_v23 }
 0x1b6   : > { %2293 = vmatprep.mubr.msk.bf16.mxu1 %vm1209_vm8, %v3386_v35 }
 0x1b8   : > { %2324 = vmatmul.mubr.msk.bf16.vlgmr.msra.gmra.mxu0 %vm1209_vm8, %v3399_v63 }
 0x1b9   : > { %2327 = vmatprep.mubr.msk.bf16.mxu0 %vm1209_vm8, %v1152_v33 }
 0x1bd   : > { %2294 = vmatmul.mubr.msk.bf16.gmra.mxu1 %vm1209_vm8, %v3399_v63 }
 0x1be   : > { %2297 = vmatprep.mubr.msk.bf16.mxu1 %vm1209_vm8, %v1152_v33 }
 0x1c0   : > { %2328 = vmatmul.mubr.msk.bf16.gmra.mxu0 %vm1209_vm8, %v1154_v8 }
 0x1c1   : > { %2331 = vmatprep.mubr.msk.bf16.mxu0 %vm1209_vm8, %v1156_v44 }
 0x1c5   : > { %2298 = vmatmul.mubr.msk.bf16.gmra.mxu1 %vm1209_vm8, %v1154_v8 }
 0x1c6   : > { %2301 = vmatprep.mubr.msk.bf16.mxu1 %vm1209_vm8, %v1156_v44 }
 0x1c8   : > { %2332 = vmatmul.mubr.msk.bf16.gmra.mxu0 %vm1209_vm8, %v1158_v32 }
 0x1c9   : > { %2335 = vmatprep.mubr.msk.bf16.mxu0 %vm1209_vm8, %v1160_v55 }
 0x1cd   : > { %2302 = vmatmul.mubr.msk.bf16.gmra.mxu1 %vm1209_vm8, %v1158_v32 }
 0x1ce   : > { %2305 = vmatprep.mubr.msk.bf16.mxu1 %vm1209_vm8, %v1160_v55 }
 0x1d0   : > { %2336 = vmatmul.mubr.msk.bf16.gmra.mxu0 %vm1209_vm8, %v3365_v25 }
 0x1d1   : > { %2339 = vmatprep.mubr.msk.bf16.mxu0 %vm1209_vm8, %v3369_v59 }
 0x1d5   : > { %2306 = vmatmul.mubr.msk.bf16.gmra.mxu1 %vm1209_vm8, %v3365_v25 }
 0x1d6   : > { %2309 = vmatprep.mubr.msk.bf16.mxu1 %vm1209_vm8, %v3369_v59 }
 0x1d8   : > { %2340 = vmatmul.mubr.msk.bf16.gmra.mxu0 %vm1209_vm8, %v3377_v58 }
 0x1d9   : > { %2343 = vmatprep.mubr.msk.bf16.mxu0 %vm1209_vm8, %v3406_v54 }
 0x1dd   : > { %2310 = vmatmul.mubr.msk.bf16.gmra.mxu1 %vm1209_vm8, %v3377_v58 }
 0x1de   : > { %2313 = vmatprep.mubr.msk.bf16.mxu1 %vm1209_vm8, %v3406_v54 }
 0x1e0   : > { %2344 = vmatmul.mubr.msk.bf16.gmra.mxu0 %vm1209_vm8, %v3414_v18 }
 0x1e1   : > { %2347 = vmatprep.mubr.msk.bf16.mxu0 %vm1209_vm8, %v3429_v36 }
 0x1e5   : > { %2314 = vmatmul.mubr.msk.bf16.gmra.mxu1 %vm1209_vm8, %v3414_v18 }
 0x1e6   : > { %2317 = vmatprep.mubr.msk.bf16.mxu1 %vm1209_vm8, %v3429_v36 }
 0x1e8   : > { %2348 = vmatmul.mubr.msk.bf16.gmra.mxu0 %vm1209_vm8, %v1174_v38 }
 0x1e9   : > { %2351 = vmatprep.mubr.msk.bf16.mxu0 %vm1209_vm8, %v1200_v16 }
 0x1ed   : > { %2318 = vmatmul.mubr.msk.bf16.gmra.mxu1 %vm1209_vm8, %v1174_v38 }
 0x1f0   : > { %2352 = vmatmul.mubr.msk.bf16.gmra.mxu0 %vm1209_vm8, %v1144_v31 }
 0x253   : > { %v3522_v50 = vpop.f32.mrf.mxu1 }
 0x255   : > { %v3524_v23 = vpop.f32.mrf.mxu1 }
 0x256   : > { %v2257_v3 = vpop.f32.mrf.mxu0 }
 0x257   : > { %v3526_v39 = vpop.f32.mrf.mxu1 }
 0x258   : > { %v1280_v37 = vpop.f32.mrf.mxu0 }
 0x259   : > { %v3528_v25 = vpop.f32.mrf.mxu1 }
 0x25a   : > { %v2258_v27 = vpop.f32.mrf.mxu0 }
 0x25b   : > { %v3530_v59 = vpop.f32.mrf.mxu1 }
 0x25c   : > { %v1283_v30 = vpop.f32.mrf.mxu0 }
 0x25d   : > { %v3532_v14 = vpop.f32.mrf.mxu1 }
 0x25f   : > { %v3534_v58 = vpop.f32.mrf.mxu1 }
 0x260   : > { %v2261_v57 = vpop.f32.mrf.mxu0 }
 0x261   : > { %v3536_v5 = vpop.f32.mrf.mxu1 }
 0x262   : > { %v1296_v35 = vpop.f32.mrf.mxu0 }
 0x263   : > { %v3538_v61 = vpop.f32.mrf.mxu1 }
 0x264   : > { %v2262_v52 = vpop.f32.mrf.mxu0 }
 0x265   : > { %v3540_v15 = vpop.f32.mrf.mxu1 }
 0x266   : > { %v1299_v49 = vpop.f32.mrf.mxu0 }
 0x267   : > { %v3542_v63 = vpop.f32.mrf.mxu1 }
 0x268   : > { %v3544_v1 = vpop.f32.mrf.mxu0 }
 0x269   : > { %v3546_v42 = vpop.f32.mrf.mxu1 }
 0x26a   : > { %v3548_v54 = vpop.f32.mrf.mxu0 }
 0x26c   : > { %v3550_v2 = vpop.f32.mrf.mxu0 }
 0x26d   : > { %v3552_v28 = vpop.f32.mrf.mxu1 }
 0x26e   : > { %v3554_v26 = vpop.f32.mrf.mxu0 }
 0x26f   : > { %v3556_v18 = vpop.f32.mrf.mxu1 }
 0x270   : > { %v3558_v13 = vpop.f32.mrf.mxu0 }
 0x271   : > { %v3560_v34 = vpop.f32.mrf.mxu1 }
 0x272   : > { %v3562_v19 = vpop.f32.mrf.mxu0 }
 0x273   : > { %v3564_v11 = vpop.f32.mrf.mxu1 }
 0x274   : > { %v3566_v6 = vpop.f32.mrf.mxu0 }
 0x275   : > { %v2291_v53 = vpop.f32.mrf.mxu1 }
 0x276   : > { %v1460_v33 = vadd.f32 %v2291_v53, %v2257_v3  ;;  %v3568_v36 = vpop.f32.mrf.mxu0 }
 0x277   : > { %v1451_v17 = vpop.f32.mrf.mxu1 }
 0x278   : > { %v1452_v62 = vadd.f32 %v1451_v17, %v1280_v37  ;;  %v2325_v47 = vpop.f32.mrf.mxu0 }
 0x279   : > { %v1752_v8 = vadd.f32 %v2325_v47, %v1460_v33  ;;  %v2292_v41 = vpop.f32.mrf.mxu1 }
 0x27a   : > { %v1463_v9 = vadd.f32 %v2292_v41, %v2258_v27  ;;  %v1623_v48 = vpop.f32.mrf.mxu0 }
 0x27b   : > { %v1791_v4 = vadd.f32 %v3573_v24, %v1752_v8  ;;  %v1750_v12 = vadd.f32 %v1623_v48, %v1452_v62  ;;  %v1454_v10 = vpop.f32.mrf.mxu1 }
 0x27c   : > { %v1455_v44 = vadd.f32 %v1454_v10, %v1283_v30  ;;  %v2326_v40 = vpop.f32.mrf.mxu0 }
 0x27d   : > { %v2172_v21 = vpack.c.bf16 %v1791_v4, %v1791_v4  ;;  %v1789_v56 = vadd.f32 %v3573_v24, %v1750_v12  ;;  %v1753_v60 = vadd.f32 %v2326_v40, %v1463_v9  ;;  %v2295_v43 = vpop.f32.mrf.mxu1 }
 0x27e   : > { %v1476_v16 = vadd.f32 %v2295_v43, %v2261_v57  ;;  %v1626_v29 = vpop.f32.mrf.mxu0 }
 0x27f   : > { %1952 = vst.msk [vmem:[%s3580_s16 + $0x8] sm:$0xf] %vm1949_vm10, %v2172_v21  ;;  %v2170_v0 = vpack.c.bf16 %v1789_v56, %v1789_v56  ;;  %v1792_v38 = vadd.f32 %v3573_v24, %v1753_v60  ;;  %v1751_v32 = vadd.f32 %v1626_v29, %v1455_v44  ;;  %v1467_v7 = vpop.f32.mrf.mxu1 }
 0x280   : > { %v1468_v22 = vadd.f32 %v1467_v7, %v1296_v35  ;;  %v2329_v45 = vpop.f32.mrf.mxu0 }
 0x281   : > { %1950 = vst.msk [vmem:[%s3580_s16] sm:$0xf] %vm1949_vm10, %v2170_v0  ;;  %v2173_v51 = vpack.c.bf16 %v1792_v38, %v1792_v38  ;;  %v1790_v55 = vadd.f32 %v3573_v24, %v1751_v32  ;;  %v1756_v20 = vadd.f32 %v2329_v45, %v1476_v16  ;;  %v2296_v46 = vpop.f32.mrf.mxu1 }
 0x282   : > { %v1479_v31 = vadd.f32 %v2296_v46, %v2262_v52  ;;  %v1639_v3 = vpop.f32.mrf.mxu0 }
 0x283   : > { %1953 = vst.msk [vmem:[%s3580_s16 + $0xc] sm:$0xf] %vm1949_vm10, %v2173_v51  ;;  %v2171_v37 = vpack.c.bf16 %v1790_v55, %v1790_v55  ;;  %v1795_v27 = vadd.f32 %v3573_v24, %v1756_v20  ;;  %v1754_v30 = vadd.f32 %v1639_v3, %v1468_v22  ;;  %v1470_v57 = vpop.f32.mrf.mxu1 }
 0x284   : > { %v1471_v35 = vadd.f32 %v1470_v57, %v1299_v49  ;;  %v2330_v53 = vpop.f32.mrf.mxu0 }
 0x285   : > { %1951 = vst.msk [vmem:[%s3580_s16 + $0x4] sm:$0xf] %vm1949_vm10, %v2171_v37  ;;  %v2176_v33 = vpack.c.bf16 %v1795_v27, %v1795_v27  ;;  %v1793_v17 = vadd.f32 %v3573_v24, %v1754_v30  ;;  %v1757_v62 = vadd.f32 %v2330_v53, %v1479_v31  ;;  %v2299_v47 = vpop.f32.mrf.mxu1 }
 0x286   : > { %v1492_v52 = vadd.f32 %v2299_v47, %v3544_v1  ;;  %v1642_v8 = vpop.f32.mrf.mxu0 }
 0x287   : > { %1956 = vst.msk [vmem:[%s3580_s16 + $0x18] sm:$0xf] %vm1949_vm10, %v2176_v33  ;;  %v2174_v41 = vpack.c.bf16 %v1793_v17, %v1793_v17  ;;  %v1796_v9 = vadd.f32 %v3573_v24, %v1757_v62  ;;  %v1755_v48 = vadd.f32 %v1642_v8, %v1471_v35  ;;  %v1483_v49 = vpop.f32.mrf.mxu1 }
 0x288   : > { %v1484_v4 = vadd.f32 %v1483_v49, %v3548_v54  ;;  %v2333_v12 = vpop.f32.mrf.mxu0 }
 0x289   : > { %1954 = vst.msk [vmem:[%s3580_s16 + $0x10] sm:$0xf] %vm1949_vm10, %v2174_v41  ;;  %v2177_v10 = vpack.c.bf16 %v1796_v9, %v1796_v9  ;;  %v1794_v44 = vadd.f32 %v3573_v24, %v1755_v48  ;;  %v1760_v40 = vadd.f32 %v2333_v12, %v1492_v52  ;;  %v2300_v1 = vpop.f32.mrf.mxu1 }
 0x28a   : > { %v1495_v21 = vadd.f32 %v2300_v1, %v3550_v2  ;;  %v1655_v56 = vpop.f32.mrf.mxu0 }
 0x28b   : > { %1957 = vst.msk [vmem:[%s3580_s16 + $0x1c] sm:$0xf] %vm1949_vm10, %v2177_v10  ;;  %v2175_v60 = vpack.c.bf16 %v1794_v44, %v1794_v44  ;;  %v1799_v43 = vadd.f32 %v3573_v24, %v1760_v40  ;;  %v1758_v16 = vadd.f32 %v1655_v56, %v1484_v4  ;;  %v1486_v54 = vpop.f32.mrf.mxu1 }
 0x28c   : > { %v1487_v29 = vadd.f32 %v1486_v54, %v3554_v26  ;;  %v2334_v0 = vpop.f32.mrf.mxu0 }
 0x28d   : > { %1955 = vst.msk [vmem:[%s3580_s16 + $0x14] sm:$0xf] %vm1949_vm10, %v2175_v60  ;;  %v2180_v38 = vpack.c.bf16 %v1799_v43, %v1799_v43  ;;  %v1797_v32 = vadd.f32 %v3573_v24, %v1758_v16  ;;  %v1761_v7 = vadd.f32 %v2334_v0, %v1495_v21  ;;  %v2303_v2 = vpop.f32.mrf.mxu1 }
 0x28e   : > { %v1508_v22 = vadd.f32 %v2303_v2, %v3558_v13  ;;  %v1658_v45 = vpop.f32.mrf.mxu0 }
 0x28f   : > { %1960 = vst.msk [vmem:[%s3580_s16 + $0x28] sm:$0xf] %vm1949_vm10, %v2180_v38  ;;  %v2178_v51 = vpack.c.bf16 %v1797_v32, %v1797_v32  ;;  %v1800_v55 = vadd.f32 %v3573_v24, %v1761_v7  ;;  %v1759_v20 = vadd.f32 %v1658_v45, %v1487_v29  ;;  %v1499_v26 = vpop.f32.mrf.mxu1 }
 0x290   : > { %v1500_v46 = vadd.f32 %v1499_v26, %v3562_v19  ;;  %v2337_v31 = vpop.f32.mrf.mxu0 }
 0x291   : > { %1958 = vst.msk [vmem:[%s3580_s16 + $0x20] sm:$0xf] %vm1949_vm10, %v2178_v51  ;;  %v2181_v3 = vpack.c.bf16 %v1800_v55, %v1800_v55  ;;  %v1798_v37 = vadd.f32 %v3573_v24, %v1759_v20  ;;  %v1764_v27 = vadd.f32 %v2337_v31, %v1508_v22  ;;  %v2304_v13 = vpop.f32.mrf.mxu1 }
 0x292   : > { %v1511_v30 = vadd.f32 %v2304_v13, %v3566_v6  ;;  %v1671_v57 = vpop.f32.mrf.mxu0 }
 0x293   : > { %1961 = vst.msk [vmem:[%s3580_s16 + $0x2c] sm:$0xf] %vm1949_vm10, %v2181_v3  ;;  %v2179_v35 = vpack.c.bf16 %v1798_v37, %v1798_v37  ;;  %v1803_v53 = vadd.f32 %v3573_v24, %v1764_v27  ;;  %v1762_v33 = vadd.f32 %v1671_v57, %v1500_v46  ;;  %v1502_v19 = vpop.f32.mrf.mxu1 }
 0x294   : > { %v1503_v17 = vadd.f32 %v1502_v19, %v3568_v36  ;;  %v2338_v62 = vpop.f32.mrf.mxu0 }
 0x295   : > { %1959 = vst.msk [vmem:[%s3580_s16 + $0x24] sm:$0xf] %vm1949_vm10, %v2179_v35  ;;  %v2184_v47 = vpack.c.bf16 %v1803_v53, %v1803_v53  ;;  %v1801_v52 = vadd.f32 %v3573_v24, %v1762_v33  ;;  %v1765_v8 = vadd.f32 %v2338_v62, %v1511_v30  ;;  %v2307_v6 = vpop.f32.mrf.mxu1 }
 0x296   : > { %v1524_v41 = vadd.f32 %v2307_v6, %v3522_v50  ;;  %v1674_v9 = vpop.f32.mrf.mxu0 }
 0x297   : > { %1964 = vst.msk [vmem:[%s3580_s16 + $0x38] sm:$0xf] %vm1949_vm10, %v2184_v47  ;;  %v2182_v48 = vpack.c.bf16 %v1801_v52, %v1801_v52  ;;  %v1804_v49 = vadd.f32 %v3573_v24, %v1765_v8  ;;  %v1763_v4 = vadd.f32 %v1674_v9, %v1503_v17  ;;  %v1515_v36 = vpop.f32.mrf.mxu1 }
 0x298   : > { %v1516_v12 = vadd.f32 %v1515_v36, %v3524_v23  ;;  %v2341_v10 = vpop.f32.mrf.mxu0 }
 0x299   : > { %1962 = vst.msk [vmem:[%s3580_s16 + $0x30] sm:$0xf] %vm1949_vm10, %v2182_v48  ;;  %v2185_v44 = vpack.c.bf16 %v1804_v49, %v1804_v49  ;;  %v1802_v40 = vadd.f32 %v3573_v24, %v1763_v4  ;;  %v1768_v1 = vadd.f32 %v2341_v10, %v1524_v41  ;;  %v2308_v50 = vpop.f32.mrf.mxu1 }
 0x29a   : > { %v1527_v21 = vadd.f32 %v2308_v50, %v3526_v39  ;;  %v1687_v56 = vpop.f32.mrf.mxu0 }
 0x29b   : > { %1965 = vst.msk [vmem:[%s3580_s16 + $0x3c] sm:$0xf] %vm1949_vm10, %v2185_v44  ;;  %v2183_v60 = vpack.c.bf16 %v1802_v40, %v1802_v40  ;;  %v1807_v43 = vadd.f32 %v3573_v24, %v1768_v1  ;;  %v1766_v16 = vadd.f32 %v1687_v56, %v1516_v12  ;;  %v1518_v23 = vpop.f32.mrf.mxu1 }
 0x29c   : > { %v1519_v54 = vadd.f32 %v1518_v23, %v3528_v25  ;;  %v2342_v29 = vpop.f32.mrf.mxu0 }
 0x29d   : > { %1963 = vst.msk [vmem:[%s3580_s16 + $0x34] sm:$0xf] %vm1949_vm10, %v2183_v60  ;;  %v2188_v0 = vpack.c.bf16 %v1807_v43, %v1807_v43  ;;  %v1805_v38 = vadd.f32 %v3573_v24, %v1766_v16  ;;  %v1769_v32 = vadd.f32 %v2342_v29, %v1527_v21  ;;  %v2311_v39 = vpop.f32.mrf.mxu1 }
 0x29e   : > { %v1540_v7 = vadd.f32 %v2311_v39, %v3530_v59  ;;  %v1690_v2 = vpop.f32.mrf.mxu0 }
 0x29f   : > { %1968 = vst.msk [vmem:[%s3580_s16 + $0x48] sm:$0xf] %vm1949_vm10, %v2188_v0  ;;  %v2186_v22 = vpack.c.bf16 %v1805_v38, %v1805_v38  ;;  %v1808_v45 = vadd.f32 %v3573_v24, %v1769_v32  ;;  %v1767_v51 = vadd.f32 %v1690_v2, %v1519_v54  ;;  %v1531_v25 = vpop.f32.mrf.mxu1 }
 0x2a0   : > { %v1532_v55 = vadd.f32 %v1531_v25, %v3532_v14  ;;  %v2345_v20 = vpop.f32.mrf.mxu0 }
 0x2a1   : > { %1966 = vst.msk [vmem:[%s3580_s16 + $0x40] sm:$0xf] %vm1949_vm10, %v2186_v22  ;;  %v2189_v26 = vpack.c.bf16 %v1808_v45, %v1808_v45  ;;  %v1806_v46 = vadd.f32 %v3573_v24, %v1767_v51  ;;  %v1772_v31 = vadd.f32 %v2345_v20, %v1540_v7  ;;  %v2312_v59 = vpop.f32.mrf.mxu1 }
 0x2a2   : > { %v1543_v3 = vadd.f32 %v2312_v59, %v3534_v58  ;;  %v1703_v37 = vpop.f32.mrf.mxu0 }
 0x2a3   : > { %1969 = vst.msk [vmem:[%s3580_s16 + $0x4c] sm:$0xf] %vm1949_vm10, %v2189_v26  ;;  %v2187_v27 = vpack.c.bf16 %v1806_v46, %v1806_v46  ;;  %v1811_v13 = vadd.f32 %v3573_v24, %v1772_v31  ;;  %v1770_v30 = vadd.f32 %v1703_v37, %v1532_v55  ;;  %v1534_v14 = vpop.f32.mrf.mxu1 }
 0x2a4   : > { %v1535_v57 = vadd.f32 %v1534_v14, %v3536_v5  ;;  %v2346_v35 = vpop.f32.mrf.mxu0 }
 0x2a5   : > { %1967 = vst.msk [vmem:[%s3580_s16 + $0x44] sm:$0xf] %vm1949_vm10, %v2187_v27  ;;  %v2192_v53 = vpack.c.bf16 %v1811_v13, %v1811_v13  ;;  %v1809_v33 = vadd.f32 %v3573_v24, %v1770_v30  ;;  %v1773_v19 = vadd.f32 %v2346_v35, %v1543_v3  ;;  %v2315_v58 = vpop.f32.mrf.mxu1 }
 0x2a6   : > { %v1556_v17 = vadd.f32 %v2315_v58, %v3538_v61  ;;  %v1706_v62 = vpop.f32.mrf.mxu0 }
 0x2a7   : > { %1972 = vst.msk [vmem:[%s3580_s16 + $0x58] sm:$0xf] %vm1949_vm10, %v2192_v53  ;;  %v2190_v47 = vpack.c.bf16 %v1809_v33, %v1809_v33  ;;  %v1812_v52 = vadd.f32 %v3573_v24, %v1773_v19  ;;  %v1771_v8 = vadd.f32 %v1706_v62, %v1535_v57  ;;  %v1547_v5 = vpop.f32.mrf.mxu1 }
 0x2a8   : > { %v1548_v6 = vadd.f32 %v1547_v5, %v3540_v15  ;;  %v2349_v41 = vpop.f32.mrf.mxu0 }
 0x2a9   : > { %1970 = vst.msk [vmem:[%s3580_s16 + $0x50] sm:$0xf] %vm1949_vm10, %v2190_v47  ;;  %v2193_v9 = vpack.c.bf16 %v1812_v52, %v1812_v52  ;;  %v1810_v48 = vadd.f32 %v3573_v24, %v1771_v8  ;;  %v1776_v49 = vadd.f32 %v2349_v41, %v1556_v17  ;;  %v2316_v61 = vpop.f32.mrf.mxu1 }
 0x2aa   : > { %v1559_v4 = vadd.f32 %v2316_v61, %v3542_v63  ;;  %v1719_v36 = vpop.f32.mrf.mxu0 }
 0x2ab   : > { %1973 = vst.msk [vmem:[%s3580_s16 + $0x5c] sm:$0xf] %vm1949_vm10, %v2193_v9  ;;  %v2191_v12 = vpack.c.bf16 %v1810_v48, %v1810_v48  ;;  %v1815_v10 = vadd.f32 %v3573_v24, %v1776_v49  ;;  %v1774_v44 = vadd.f32 %v1719_v36, %v1548_v6  ;;  %v1550_v15 = vpop.f32.mrf.mxu1 }
 0x2ac   : > { %v1551_v40 = vadd.f32 %v1550_v15, %v3546_v42  ;;  %v2350_v1 = vpop.f32.mrf.mxu0 }
 0x2ad   : > { %1971 = vst.msk [vmem:[%s3580_s16 + $0x54] sm:$0xf] %vm1949_vm10, %v2191_v12  ;;  %v2196_v50 = vpack.c.bf16 %v1815_v10, %v1815_v10  ;;  %v1813_v21 = vadd.f32 %v3573_v24, %v1774_v44  ;;  %v1777_v56 = vadd.f32 %v2350_v1, %v1559_v4  ;;  %v2319_v63 = vpop.f32.mrf.mxu1 }
 0x2ae   : > { %v1572_v60 = vadd.f32 %v2319_v63, %v3552_v28  ;;  %v1722_v43 = vpop.f32.mrf.mxu0 }
 0x2af   : > { %1976 = vst.msk [vmem:[%s3580_s16 + $0x68] sm:$0xf] %vm1949_vm10, %v2196_v50  ;;  %v2194_v16 = vpack.c.bf16 %v1813_v21, %v1813_v21  ;;  %v1816_v23 = vadd.f32 %v3573_v24, %v1777_v56  ;;  %v1775_v54 = vadd.f32 %v1722_v43, %v1551_v40  ;;  %v1563_v42 = vpop.f32.mrf.mxu1 }
 0x2b0   : > { %v1564_v29 = vadd.f32 %v1563_v42, %v3556_v18  ;;  %v2353_v0 = vpop.f32.mrf.mxu0 }
 0x2b1   : > { %1974 = vst.msk [vmem:[%s3580_s16 + $0x60] sm:$0xf] %vm1949_vm10, %v2194_v16  ;;  %v2197_v38 = vpack.c.bf16 %v1816_v23, %v1816_v23  ;;  %v1814_v32 = vadd.f32 %v3573_v24, %v1775_v54  ;;  %v1780_v39 = vadd.f32 %v2353_v0, %v1572_v60  ;;  %v2320_v28 = vpop.f32.mrf.mxu1 }
 0x2b2   : > { %v1575_v7 = vadd.f32 %v2320_v28, %v3560_v34  ;;  %v1735_v2 = vpop.f32.mrf.mxu0 }
 0x2b3   : > { %1977 = vst.msk [vmem:[%s3580_s16 + $0x6c] sm:$0xf] %vm1949_vm10, %v2197_v38  ;;  %v2195_v22 = vpack.c.bf16 %v1814_v32, %v1814_v32  ;;  %v1819_v45 = vadd.f32 %v3573_v24, %v1780_v39  ;;  %v1778_v18 = vadd.f32 %v1735_v2, %v1564_v29  ;;  %v1566_v51 = vpop.f32.mrf.mxu1 }
 0x2b4   : > { %v1567_v25 = vadd.f32 %v1566_v51, %v3564_v11  ;;  %v2354_v55 = vpop.f32.mrf.mxu0 }
 0x2b5   : > { %1975 = vst.msk [vmem:[%s3580_s16 + $0x64] sm:$0xf] %vm1949_vm10, %v2195_v22  ;;  %v2200_v20 = vpack.c.bf16 %v1819_v45, %v1819_v45  ;;  %v1817_v26 = vadd.f32 %v3573_v24, %v1778_v18  ;;  %v1781_v34 = vadd.f32 %v2354_v55, %v1575_v7 }
 0x2b6   : > { %v1738_v46 = vpop.f32.mrf.mxu0 }
 0x2b7   : > { %1980 = vst.msk [vmem:[%s3580_s16 + $0x78] sm:$0xf] %vm1949_vm10, %v2200_v20  ;;  %v2198_v31 = vpack.c.bf16 %v1817_v26, %v1817_v26  ;;  %v1820_v59 = vadd.f32 %v3573_v24, %v1781_v34  ;;  %v1779_v3 = vadd.f32 %v1738_v46, %v1567_v25 }
 0x2b9   : > { %1978 = vst.msk [vmem:[%s3580_s16 + $0x70] sm:$0xf] %vm1949_vm10, %v2198_v31  ;;  %v2201_v37 = vpack.c.bf16 %v1820_v59, %v1820_v59  ;;  %v1818_v11 = vadd.f32 %v3573_v24, %v1779_v3 }
 0x2bb   : > { %1981 = vst.msk [vmem:[%s3580_s16 + $0x7c] sm:$0xf] %vm1949_vm10, %v2201_v37  ;;  %v2199_v27 = vpack.c.bf16 %v1818_v11, %v1818_v11 }
 0x2bd   : > { %1979 = vst.msk [vmem:[%s3580_s16 + $0x74] sm:$0xf] %vm1949_vm10, %v2199_v27 }
 0x2be PF: > { %s15_s18 = sadd.s32 1, %s2511_s18  }
 0x2bf   : > { %p12_p4 = scmp.ge.s32.totalorder %s15_s18, 4  }
 0x2c1   :  { %14 = sbr.rel (!%p12_p4) target bundleno = 1 (0x1), region = 72 }

</bundles_post_ra>
